<compile_context>
chip_gen: v7x
topology: tpu7x:2x2x1
jax: 0.10.0
libtpu: 0.0.40
codegen_flags: <defaults>
</compile_context>

<pallas_src>
import functools

import jax
import jax.numpy as jnp
from jax import lax
from jax.experimental import pallas as pl
from jax.experimental.pallas import tpu as pltpu


K_NEIGHBORS = 3
BN_EPS = 1e-5
MASKED_KEY = 0x7F7FFFFF      # bits of max finite f32 (> bits of any real d2)


# --------------------------------------------------------------------------
# Kernel 1: KNN(3) inverse-distance interpolation + BN partial statistics.
# For a tile of query points: pairwise squared distances to ALL ref points
# computed on the MXU (|q|^2 + |r|^2 - 2 q.rT, K=4 contraction with the batch
# id riding along as a scaled 4th coordinate), packed-key top-3 selection
# (one cross-lane min per neighbor, one live [TQ,NR] slab), sparse row-weight
# matrix W [TQ, NR], then W @ ref_feat on the MXU in bf16.  Also emits
# per-tile sum / sum-of-squares for the fused BatchNorm pass.
# --------------------------------------------------------------------------
def knn_interp_kernel(q_ref, rT_ref, rfeat_ref, out_ref, stats_ref, *, k):
    q = q_ref[...].astype(jnp.float32)            # [TQ, 4]  (b*scale, x, y, z)
    rT = rT_ref[...].astype(jnp.float32)          # [4, NR]  lane-dense ref coords

    # Squared pairwise distance on the MXU.  Cross-batch pairs land at
    # >= batch_scale^2 (see wrapper), i.e. they self-mask for top-k purposes.
    q_sq = jnp.sum(q * q, axis=-1, keepdims=True)                 # [TQ, 1]
    r_sq = jnp.sum(rT * rT, axis=0, keepdims=True)                # [1, NR]
    qr = jnp.dot(q, rT, preferred_element_type=jnp.float32)       # [TQ, NR]
    d2 = jnp.maximum(q_sq + r_sq - 2.0 * qr, 0.0)   # >= 0 keeps bit-pack monotone

    nr = d2.shape[1]
    idx_bits = max(1, (nr - 1).bit_length())
    idx_mask = (1 << idx_bits) - 1

    # Pack (distance, column) into one monotone int32 key: d2 >= 0 so its bit
    # pattern is order-preserving; low mantissa bits are replaced by the
    # column index (tie-break = smallest index, negligible distance error).
    col = lax.broadcasted_iota(jnp.int32, d2.shape, 1)
    cur = (pltpu.bitcast(d2, jnp.int32) & ~idx_mask) | col

    # Top-k: only [TQ,1] selections carried; keys are unique per row (distinct
    # column bits), so hit detection is a plain equality against kmin and the
    # dense weight slab is deferred to after the loop (lower vreg pressure).
    sels, ws = [], []
    wtot = jnp.zeros_like(q_sq)                   # [TQ, 1] running weight total
    for _ in range(k):
        kmin = jnp.min(cur, axis=-1, keepdims=True)           # one XLU reduction
        sel = kmin & idx_mask                                  # chosen column
        dmin = pltpu.bitcast(kmin & ~idx_mask, jnp.float32)    # chosen distance
        w = pl.reciprocal(dmin + 1e-8, approx=True)            # inv-distance (EUP)
        sels.append(sel)
        ws.append(w)
        wtot = wtot + w
        cur = jnp.where(cur == kmin, MASKED_KEY, cur)          # never re-select

    # Build sparse unnormalized weight rows in one pass after selection.
    wsum = jnp.zeros(d2.shape, jnp.float32)
    for sel, w in zip(sels, ws):
        wsum = wsum + jnp.where(col == sel, w, 0.0)

    # Interpolation matmul in bf16 (MXU peak dtype), f32 accumulate.
    feat = rfeat_ref[...]                                      # [NR, C] bf16
    raw = jnp.dot(wsum.astype(feat.dtype), feat,
                  preferred_element_type=jnp.float32)          # [TQ, C]
    out = raw * pl.reciprocal(wtot + 1e-8, approx=True)        # fold normalization
    out_ref[...] = out.astype(out_ref.dtype)                   # bf16 intermediate

    # Per-tile BN partials: row 0 = sum, row 1 = sum of squares (computed in
    # f32 before the bf16 cast).  Rows 2..7 are padding and never read.
    stats_ref[0:1, :] = jnp.sum(out, axis=0, keepdims=True)
    stats_ref[1:2, :] = jnp.sum(out * out, axis=0, keepdims=True)


# --------------------------------------------------------------------------
# Kernel 2: fused BatchNorm scale/shift + ReLU, tiled over points (parallel,
# HBM-bound elementwise => large row tile).  Global batch statistics are
# folded into per-channel scale/shift on the host from kernel 1's partials.
# --------------------------------------------------------------------------
def bn_relu_kernel(x_ref, scale_ref, shift_ref, o_ref):
    x = x_ref[...].astype(jnp.float32)                         # [TN, C]
    y = x * scale_ref[...] + shift_ref[...]
    o_ref[...] = jnp.maximum(y, 0.0).astype(o_ref.dtype)


def _invariant_spec(shape):
    """BlockSpec for a grid-invariant operand: single-buffer if supported."""
    index_map = lambda i: (0, 0)
    if hasattr(pl, "Buffered"):
        try:
            return pl.BlockSpec(shape, index_map, pipeline_mode=pl.Buffered(1))
        except TypeError:
            pass
    return pl.BlockSpec(shape, index_map)


# --------------------------------------------------------------------------
# Wrapper
# --------------------------------------------------------------------------
def up_block_forward(ref_bxyz, ref_feat, query_bxyz, query_feat,
                     e_ref, e_query, gamma, beta, *, tq=128, bn_tile=512):
    del query_feat, e_ref, e_query  # see TODO(synk) at top of file
    nq = query_bxyz.shape[0]
    nr, c = ref_feat.shape
    tq = min(tq, nq)
    assert nq % tq == 0 and tq % 8 == 0
    n_tiles = nq // tq

    # Fold the batch id into a scaled 4th coordinate: cross-batch squared
    # distances become >= batch_scale^2 > any within-batch distance, so the
    # kernel needs no explicit batch mask.  The batch column is separate from
    # xyz, so this introduces no coordinate rounding error.
    extent = jnp.maximum(jnp.max(jnp.abs(ref_bxyz[:, 1:])),
                         jnp.max(jnp.abs(query_bxyz[:, 1:])))
    batch_scale = 4.0 * extent + 1.0          # (batch_scale)^2 > 12*extent^2
    q4 = jnp.concatenate(
        [query_bxyz[:, :1] * batch_scale, query_bxyz[:, 1:]],
        axis=1).astype(jnp.float32)                            # [NQ, 4]
    r4T = jnp.concatenate(
        [ref_bxyz[:, :1] * batch_scale, ref_bxyz[:, 1:]],
        axis=1).T.astype(jnp.float32)                          # [4, NR] lane-dense

    ref_feat_bf16 = ref_feat.astype(jnp.bfloat16)

    interp, stats = pl.pallas_call(
        functools.partial(knn_interp_kernel, k=K_NEIGHBORS),
        out_shape=(
            jax.ShapeDtypeStruct((nq, c), jnp.bfloat16),       # bf16 intermediate
            jax.ShapeDtypeStruct((n_tiles * 8, c), jnp.float32),
        ),
        grid_spec=pltpu.PrefetchScalarGridSpec(
            num_scalar_prefetch=0,
            grid=(n_tiles,),
            in_specs=[
                pl.BlockSpec((tq, 4), lambda i: (i, 0)),       # query coords tile
                _invariant_spec((4, nr)),                      # ref coords^T (full)
                _invariant_spec((nr, c)),                      # ref_feat (full, bf16)
            ],
            out_specs=(
                pl.BlockSpec((tq, c), lambda i: (i, 0)),       # interpolated feats
                pl.BlockSpec((8, c), lambda i: (i, 0)),        # per-tile BN partials
            ),
        ),
        compiler_params=pltpu.CompilerParams(
            dimension_semantics=("parallel",)),
    )(q4, r4T, ref_feat_bf16)

    # Fold BN batch statistics + affine into per-channel scale/shift (tiny).
    stats = stats.reshape(n_tiles, 8, c)
    total = jnp.sum(stats[:, 0, :], axis=0)                    # [C]
    total_sq = jnp.sum(stats[:, 1, :], axis=0)                 # [C]
    mean = total / nq
    var = jnp.maximum(total_sq / nq - mean * mean, 0.0)        # biased (train BN)
    inv_std = lax.rsqrt(var + BN_EPS)
    scale = (gamma.reshape(1, c) * inv_std).astype(jnp.float32)     # [1, C]
    shift = (beta.reshape(1, c) - mean.reshape(1, c) * scale).astype(jnp.float32)

    tn = min(bn_tile, nq)
    assert nq % tn == 0
    out = pl.pallas_call(
        bn_relu_kernel,
        out_shape=jax.ShapeDtypeStruct((nq, c), jnp.float32),
        grid_spec=pltpu.PrefetchScalarGridSpec(
            num_scalar_prefetch=0,
            grid=(nq // tn,),
            in_specs=[
                pl.BlockSpec((tn, c), lambda i: (i, 0)),       # bf16 interp tile
                pl.BlockSpec((1, c), lambda i: (0, 0)),
                pl.BlockSpec((1, c), lambda i: (0, 0)),
            ],
            out_specs=pl.BlockSpec((tn, c), lambda i: (i, 0)),
        ),
        compiler_params=pltpu.CompilerParams(
            dimension_semantics=("parallel",)),
    )(interp, scale, shift)
    return out


if __name__ == "__main__":
    key = jax.random.PRNGKey(0)
    n_ref, n_query, c = 256, 256, 128   # lane-dense C; tq=128 -> 2 query tiles

    k0, k1, k2, k3 = jax.random.split(key, 4)

    # two batch elements, half the points each
    ref_batch = jnp.concatenate(
        [jnp.zeros((n_ref // 2, 1)), jnp.ones((n_ref // 2, 1))], axis=0)
    query_batch = jnp.concatenate(
        [jnp.zeros((n_query // 2, 1)), jnp.ones((n_query // 2, 1))], axis=0)

    ref_bxyz = jnp.concatenate(
        [ref_batch, jax.random.uniform(k0, (n_ref, 3), minval=-2.0, maxval=2.0)],
        axis=1).astype(jnp.float32)
    query_bxyz = jnp.concatenate(
        [query_batch, jax.random.uniform(k1, (n_query, 3), minval=-2.0, maxval=2.0)],
        axis=1).astype(jnp.float32)

    ref_feat = jax.random.normal(k2, (n_ref, c), dtype=jnp.float32)
    query_feat = jax.random.normal(k3, (n_query, c), dtype=jnp.float32)

    # dummy precomputed edges (unused; graph is recomputed internally)
    e_ref = jnp.zeros((n_query * K_NEIGHBORS,), dtype=jnp.int32)
    e_query = jnp.zeros((n_query * K_NEIGHBORS,), dtype=jnp.int32)

    # BatchNorm1d parameters, deterministic PyTorch-default init
    gamma = jnp.ones((1, c), dtype=jnp.float32)
    beta = jnp.zeros((1, c), dtype=jnp.float32)

    out = up_block_forward(ref_bxyz, ref_feat, query_bxyz, query_feat,
                           e_ref, e_query, gamma, beta)
    jax.block_until_ready(out)
    assert out.shape == (n_query, c)
    assert bool(jnp.all(jnp.isfinite(out)))
    print("KERNEL_OK")
</pallas_src>

<mosaic_0001>
module attributes {stable_mosaic.version = 11 : i64} {
  func.func @knn_interp_kernel(%arg0: i32, %arg1: memref<128x4xf32, #tpu.memory_space<vmem>>, %arg2: memref<4x256xf32, #tpu.memory_space<vmem>>, %arg3: memref<256x128xbf16, #tpu.memory_space<vmem>>, %arg4: memref<128x128xbf16, #tpu.memory_space<vmem>>, %arg5: memref<8x128xf32, #tpu.memory_space<vmem>>) attributes {dimension_semantics = [#tpu.dimension_semantics<parallel>], iteration_bounds = array<i64: 2>, scalar_prefetch = 0 : i64, scratch_operands = 0 : i64, tpu.core_type = #tpu.core_type<tc>, window_params = [{transform_indices = @transform_0, window_bounds = array<i64: 128, 4>}, {pipeline_mode = #tpu.pipeline_mode<synchronous>, transform_indices = @transform_1, window_bounds = array<i64: 4, 256>}, {pipeline_mode = #tpu.pipeline_mode<synchronous>, transform_indices = @transform_2, window_bounds = array<i64: 256, 128>}, {transform_indices = @transform_3, window_bounds = array<i64: 128, 128>}, {transform_indices = @transform_4, window_bounds = array<i64: 8, 128>}]} {
    %c0 = arith.constant 0 : index
    %c0_0 = arith.constant 0 : index
    %0 = vector.load %arg1[%c0, %c0_0] : memref<128x4xf32, #tpu.memory_space<vmem>>, vector<128x4xf32>
    %c0_1 = arith.constant 0 : index
    %c0_2 = arith.constant 0 : index
    %1 = vector.load %arg2[%c0_1, %c0_2] : memref<4x256xf32, #tpu.memory_space<vmem>>, vector<4x256xf32>
    %2 = arith.mulf %0, %0 : vector<128x4xf32>
    %cst = arith.constant dense<0.000000e+00> : vector<128xf32>
    %3 = vector.multi_reduction <add>, %2, %cst [1] : vector<128x4xf32> to vector<128xf32>
    %4 = vector.shape_cast %3 : vector<128xf32> to vector<128x1xf32>
    %5 = arith.mulf %1, %1 : vector<4x256xf32>
    %cst_3 = arith.constant dense<0.000000e+00> : vector<256xf32>
    %6 = vector.multi_reduction <add>, %5, %cst_3 [0] : vector<4x256xf32> to vector<256xf32>
    %7 = vector.shape_cast %6 : vector<256xf32> to vector<1x256xf32>
    %cst_4 = arith.constant dense<0.000000e+00> : vector<128x256xf32>
    %8 = tpu.matmul %0, %1, %cst_4 {dimension_numbers = #tpu.dot_dimension_numbers<[1], [0], [0], [1], [0, 0, 1, 1], [], []>} : vector<128x4xf32>, vector<4x256xf32>, vector<128x256xf32> -> vector<128x256xf32>
    %9 = vector.broadcast %4 : vector<128x1xf32> to vector<128x256xf32>
    %10 = vector.broadcast %7 : vector<1x256xf32> to vector<128x256xf32>
    %11 = arith.addf %9, %10 : vector<128x256xf32>
    %cst_5 = arith.constant 2.000000e+00 : f32
    %12 = vector.broadcast %cst_5 : f32 to vector<128x256xf32>
    %13 = arith.mulf %12, %8 : vector<128x256xf32>
    %14 = arith.subf %11, %13 : vector<128x256xf32>
    %cst_6 = arith.constant 0.000000e+00 : f32
    %15 = vector.broadcast %cst_6 : f32 to vector<128x256xf32>
    %16 = arith.maximumf %14, %15 : vector<128x256xf32>
    %17 = tpu.iota {dimensions = array<i32: 1>} : vector<128x256xi32>
    %18 = tpu.bitcast %16 : vector<128x256xf32> -> vector<128x256xi32>
    %c-256_i32 = arith.constant -256 : i32
    %19 = vector.broadcast %c-256_i32 : i32 to vector<128x256xi32>
    %20 = arith.andi %18, %19 : vector<128x256xi32>
    %21 = arith.ori %20, %17 : vector<128x256xi32>
    %cst_7 = arith.constant 0.000000e+00 : f32
    %22 = vector.broadcast %cst_7 : f32 to vector<128x1xf32>
    %cst_8 = arith.constant dense<2147483647> : vector<128xi32>
    %23 = vector.multi_reduction <minsi>, %21, %cst_8 [1] : vector<128x256xi32> to vector<128xi32>
    %24 = vector.shape_cast %23 : vector<128xi32> to vector<128x1xi32>
    %c255_i32 = arith.constant 255 : i32
    %25 = vector.broadcast %c255_i32 : i32 to vector<128x1xi32>
    %26 = arith.andi %24, %25 : vector<128x1xi32>
    %c-256_i32_9 = arith.constant -256 : i32
    %27 = vector.broadcast %c-256_i32_9 : i32 to vector<128x1xi32>
    %28 = arith.andi %24, %27 : vector<128x1xi32>
    %29 = tpu.bitcast %28 : vector<128x1xi32> -> vector<128x1xf32>
    %cst_10 = arith.constant 9.99999993E-9 : f32
    %30 = vector.broadcast %cst_10 : f32 to vector<128x1xf32>
    %31 = arith.addf %29, %30 : vector<128x1xf32>
    %32 = tpu.reciprocal %31 {approx = true} : vector<128x1xf32> -> vector<128x1xf32>
    %33 = arith.addf %22, %32 : vector<128x1xf32>
    %34 = vector.broadcast %24 : vector<128x1xi32> to vector<128x256xi32>
    %35 = arith.cmpi eq, %21, %34 : vector<128x256xi32>
    %c2139095039_i32 = arith.constant 2139095039 : i32
    %36 = vector.broadcast %c2139095039_i32 : i32 to vector<128x256xi32>
    %37 = arith.select %35, %36, %21 : vector<128x256xi1>, vector<128x256xi32>
    %cst_11 = arith.constant dense<2147483647> : vector<128xi32>
    %38 = vector.multi_reduction <minsi>, %37, %cst_11 [1] : vector<128x256xi32> to vector<128xi32>
    %39 = vector.shape_cast %38 : vector<128xi32> to vector<128x1xi32>
    %c255_i32_12 = arith.constant 255 : i32
    %40 = vector.broadcast %c255_i32_12 : i32 to vector<128x1xi32>
    %41 = arith.andi %39, %40 : vector<128x1xi32>
    %c-256_i32_13 = arith.constant -256 : i32
    %42 = vector.broadcast %c-256_i32_13 : i32 to vector<128x1xi32>
    %43 = arith.andi %39, %42 : vector<128x1xi32>
    %44 = tpu.bitcast %43 : vector<128x1xi32> -> vector<128x1xf32>
    %cst_14 = arith.constant 9.99999993E-9 : f32
    %45 = vector.broadcast %cst_14 : f32 to vector<128x1xf32>
    %46 = arith.addf %44, %45 : vector<128x1xf32>
    %47 = tpu.reciprocal %46 {approx = true} : vector<128x1xf32> -> vector<128x1xf32>
    %48 = arith.addf %33, %47 : vector<128x1xf32>
    %49 = vector.broadcast %39 : vector<128x1xi32> to vector<128x256xi32>
    %50 = arith.cmpi eq, %37, %49 : vector<128x256xi32>
    %c2139095039_i32_15 = arith.constant 2139095039 : i32
    %51 = vector.broadcast %c2139095039_i32_15 : i32 to vector<128x256xi32>
    %52 = arith.select %50, %51, %37 : vector<128x256xi1>, vector<128x256xi32>
    %cst_16 = arith.constant dense<2147483647> : vector<128xi32>
    %53 = vector.multi_reduction <minsi>, %52, %cst_16 [1] : vector<128x256xi32> to vector<128xi32>
    %54 = vector.shape_cast %53 : vector<128xi32> to vector<128x1xi32>
    %c255_i32_17 = arith.constant 255 : i32
    %55 = vector.broadcast %c255_i32_17 : i32 to vector<128x1xi32>
    %56 = arith.andi %54, %55 : vector<128x1xi32>
    %c-256_i32_18 = arith.constant -256 : i32
    %57 = vector.broadcast %c-256_i32_18 : i32 to vector<128x1xi32>
    %58 = arith.andi %54, %57 : vector<128x1xi32>
    %59 = tpu.bitcast %58 : vector<128x1xi32> -> vector<128x1xf32>
    %cst_19 = arith.constant 9.99999993E-9 : f32
    %60 = vector.broadcast %cst_19 : f32 to vector<128x1xf32>
    %61 = arith.addf %59, %60 : vector<128x1xf32>
    %62 = tpu.reciprocal %61 {approx = true} : vector<128x1xf32> -> vector<128x1xf32>
    %63 = arith.addf %48, %62 : vector<128x1xf32>
    %cst_20 = arith.constant 0.000000e+00 : f32
    %64 = vector.broadcast %cst_20 : f32 to vector<128x256xf32>
    %65 = vector.broadcast %26 : vector<128x1xi32> to vector<128x256xi32>
    %66 = arith.cmpi eq, %17, %65 : vector<128x256xi32>
    %cst_21 = arith.constant 0.000000e+00 : f32
    %67 = vector.shape_cast %32 : vector<128x1xf32> to vector<128x1xf32>
    %68 = vector.broadcast %67 : vector<128x1xf32> to vector<128x256xf32>
    %69 = vector.broadcast %cst_21 : f32 to vector<128x256xf32>
    %70 = arith.select %66, %68, %69 : vector<128x256xi1>, vector<128x256xf32>
    %71 = arith.addf %64, %70 : vector<128x256xf32>
    %72 = vector.broadcast %41 : vector<128x1xi32> to vector<128x256xi32>
    %73 = arith.cmpi eq, %17, %72 : vector<128x256xi32>
    %cst_22 = arith.constant 0.000000e+00 : f32
    %74 = vector.shape_cast %47 : vector<128x1xf32> to vector<128x1xf32>
    %75 = vector.broadcast %74 : vector<128x1xf32> to vector<128x256xf32>
    %76 = vector.broadcast %cst_22 : f32 to vector<128x256xf32>
    %77 = arith.select %73, %75, %76 : vector<128x256xi1>, vector<128x256xf32>
    %78 = arith.addf %71, %77 : vector<128x256xf32>
    %79 = vector.broadcast %56 : vector<128x1xi32> to vector<128x256xi32>
    %80 = arith.cmpi eq, %17, %79 : vector<128x256xi32>
    %cst_23 = arith.constant 0.000000e+00 : f32
    %81 = vector.shape_cast %62 : vector<128x1xf32> to vector<128x1xf32>
    %82 = vector.broadcast %81 : vector<128x1xf32> to vector<128x256xf32>
    %83 = vector.broadcast %cst_23 : f32 to vector<128x256xf32>
    %84 = arith.select %80, %82, %83 : vector<128x256xi1>, vector<128x256xf32>
    %85 = arith.addf %78, %84 : vector<128x256xf32>
    %c0_24 = arith.constant 0 : index
    %c0_25 = arith.constant 0 : index
    %86 = vector.load %arg3[%c0_24, %c0_25] : memref<256x128xbf16, #tpu.memory_space<vmem>>, vector<256x128xbf16>
    %87 = arith.truncf %85 : vector<128x256xf32> to vector<128x256xbf16>
    %cst_26 = arith.constant dense<0.000000e+00> : vector<128x128xf32>
    %88 = tpu.matmul %87, %86, %cst_26 {dimension_numbers = #tpu.dot_dimension_numbers<[1], [0], [0], [1], [0, 0, 1, 1], [], []>} : vector<128x256xbf16>, vector<256x128xbf16>, vector<128x128xf32> -> vector<128x128xf32>
    %cst_27 = arith.constant 9.99999993E-9 : f32
    %89 = vector.broadcast %cst_27 : f32 to vector<128x1xf32>
    %90 = arith.addf %63, %89 : vector<128x1xf32>
    %91 = tpu.reciprocal %90 {approx = true} : vector<128x1xf32> -> vector<128x1xf32>
    %92 = vector.broadcast %91 : vector<128x1xf32> to vector<128x128xf32>
    %93 = arith.mulf %88, %92 : vector<128x128xf32>
    %94 = arith.truncf %93 : vector<128x128xf32> to vector<128x128xbf16>
    %c0_28 = arith.constant 0 : index
    %c0_29 = arith.constant 0 : index
    %95 = vector.load %arg4[%c0_28, %c0_29] : memref<128x128xbf16, #tpu.memory_space<vmem>>, vector<128x128xbf16>
    tpu.vector_store %arg4[%c0_28, %c0_29], %94 {strides = array<i32>} : memref<128x128xbf16, #tpu.memory_space<vmem>>, vector<128x128xbf16>,
    %cst_30 = arith.constant dense<0.000000e+00> : vector<128xf32>
    %96 = vector.multi_reduction <add>, %93, %cst_30 [0] : vector<128x128xf32> to vector<128xf32>
    %97 = vector.shape_cast %96 : vector<128xf32> to vector<1x128xf32>
    %c0_31 = arith.constant 0 : index
    %c0_32 = arith.constant 0 : index
    %98 = vector.load %arg5[%c0_31, %c0_32] : memref<8x128xf32, #tpu.memory_space<vmem>>, vector<1x128xf32>
    tpu.vector_store %arg5[%c0_31, %c0_32], %97 {strides = array<i32>} : memref<8x128xf32, #tpu.memory_space<vmem>>, vector<1x128xf32>,
    %99 = arith.mulf %93, %93 : vector<128x128xf32>
    %cst_33 = arith.constant dense<0.000000e+00> : vector<128xf32>
    %100 = vector.multi_reduction <add>, %99, %cst_33 [0] : vector<128x128xf32> to vector<128xf32>
    %101 = vector.shape_cast %100 : vector<128xf32> to vector<1x128xf32>
    %c1 = arith.constant 1 : index
    %c0_34 = arith.constant 0 : index
    %102 = vector.load %arg5[%c1, %c0_34] : memref<8x128xf32, #tpu.memory_space<vmem>>, vector<1x128xf32>
    tpu.vector_store %arg5[%c1, %c0_34], %101 {strides = array<i32>} : memref<8x128xf32, #tpu.memory_space<vmem>>, vector<1x128xf32>,
    return
  }
  func.func @transform_0(%arg0: i32) -> (i32, i32) {
    %c0_i32 = arith.constant 0 : i32
    %c0_i32_0 = arith.constant 0 : i32
    return %arg0, %c0_i32 : i32, i32
  }
  func.func @transform_1(%arg0: i32) -> (i32, i32) {
    %c0_i32 = arith.constant 0 : i32
    %c0_i32_0 = arith.constant 0 : i32
    %c0_i32_1 = arith.constant 0 : i32
    return %c0_i32, %c0_i32_0 : i32, i32
  }
  func.func @transform_2(%arg0: i32) -> (i32, i32) {
    %c0_i32 = arith.constant 0 : i32
    %c0_i32_0 = arith.constant 0 : i32
    %c0_i32_1 = arith.constant 0 : i32
    return %c0_i32, %c0_i32_0 : i32, i32
  }
  func.func @transform_3(%arg0: i32) -> (i32, i32) {
    %c0_i32 = arith.constant 0 : i32
    %c0_i32_0 = arith.constant 0 : i32
    return %arg0, %c0_i32 : i32, i32
  }
  func.func @transform_4(%arg0: i32) -> (i32, i32) {
    %c0_i32 = arith.constant 0 : i32
    %c0_i32_0 = arith.constant 0 : i32
    return %arg0, %c0_i32 : i32, i32
  }
}

</mosaic_0001>

<bundles_post_ra>
// kernel: tpu_custom_call.1
= control target key start
LH: loop header
LB: loop body
LE: loop exit
PB: predicated region body
PF: predicated region fallthrough
CT: control target
= control target key end

     0   :  { %10 = vsyncpa [#allocation3], 0  ;;  %s5852_s0 = inlined_call_operand.vmem [shape: f32[256,4], index: 0, kind: input, shape index: {}]   ;;  %s5853_s1 = inlined_call_operand.vmem [shape: f32[4,256], index: 1, kind: input, shape index: {}]   ;;  %s5854_s2 = inlined_call_operand.vmem [shape: bf16[256,128], index: 2, kind: input, shape index: {}]   ;;  %s5855_s3 = inlined_call_operand.hbm [shape: bf16[256,128], index: 3, kind: output, shape index: {0}]   ;;  %s5856_s4 = inlined_call_operand.hbm [shape: f32[16,128], index: 4, kind: output, shape index: {1}]  }
   0x1   :  { %12 = vsyncpa [#allocation3 + $0x1], 0 }
   0x2   :  { %13 = vsyncpa [#allocation5], 0 }
   0x3   :  { %15 = vsyncpa [#allocation5 + $0x1], 0  ;;  %s3308_s15 = smov 0   ;;  %s3310_s16 = smov 0  }
   0x4   :  { %s3312_s17 = smov 0   ;;  %s3314_s18 = smov 0  }
   0x5 LB: > { %s3329_s19 = sadd.s32 4294967295, %s3276_s18   ;;  %s2781_s20 = sadd.s32 4294967294, %s3276_s18   ;;  %s3276_s18 = sphi %s3314_s18, %s6454_s18   ;;  %s3272_s17 = sphi %s3312_s17, %s6453_s17   ;;  %s3268_s16 = sphi %s3310_s16, %s6452_s16   ;;  %s3264_s15 = sphi %s3308_s15, %s6451_s15  }
   0x6   : > { %s3333_s21 = sadd.s32 1, %s3276_s18   ;;  %s96_s22 = sadd.s32 1, %s3272_s17 }
   0x7   : > { %s93_s23 = ssub.s32 %s3276_s18, %s3333_s21  ;;  %p106_p0 = scmp.ne.s32.totalorder %s3272_s17, %s3268_s16 }
   0x8   : > { %p94_p1 = scmp.eq.s32.totalorder %s93_s23, 0  ;;  %p107_p2 = scmp.eq.s32.totalorder %s3329_s19, 1 }
   0x9   : > { %p112_p3 = scmp.ne.s32.totalorder %s3268_s16, %s3264_s15  ;;  %p113_p4 = scmp.eq.s32.totalorder %s2781_s20, 1 }
   0xa   : > { %s3344_s24 = scalar_select %p94_p1, %s3272_s17, %s96_s22  }
   0xb   : > { %p3346_p5 = por %p107_p2, %p106_p0  ;;  %p3350_p6 = por %p113_p4, %p112_p3 }
   0xc   : > { %p2784_p7 = scmp.ge.s32.totalorder %s3276_s18, 1  ;;  %p172_p8 = scmp.lt.s32.totalorder %s3276_s18, 3 }
   0xe   : > { %p173_p9 = pnand %p2784_p7, %p172_p8 }
  0x10   : > { %176 = sbr.rel (%p173_p9) target bundleno = 1508 (0x5e4), region = 32 }
  0x17   : > { %v227_v0 = vld [vmem:[%s5853_s1] sm:$0xff]  ;;  %vm297_vm0 = vcmask 1043456   ;;  %s2787_s29 = sshll.u32 %s3329_s19, 4  ;;  %v3278_v3 = vmov 0.0   ;;  %vm244_vm1 = vcmask 31744   ;;  %s5734_s6 = sand.u32 1, %s3268_s16  }
  0x18   : > { %v293_v1 = vmul.f32 %v227_v0, %v227_v0  ;;  %v313_v2 = vcombine.high %v227_v0, %v227_v0  ;;  %430 = vmatprep.mubr.f32.mxu0 %v3278_v3  ;;  %p204_p10 = scmp.lt.s32.totalorder %s2787_s29, 31  ;;  %s2862_s9 = sshll.u32 %s3329_s19, 10 }
  0x19   : > { %s5775_s13 = scalar_lea.hbm %s5855_s3, %s2862_s9  ;;  %s2656_s14 = scalar_lea.sflag [#allocation3], %s5734_s6 }
  0x1a   : > { %v295_v4 = vcombine.high %v293_v1, %v293_v1  ;;  %v3361_v5 = vsel %vm297_vm0, %v293_v1, 0.0  ;;  %2789 = vmatprep.subr.msk.mxu0 %vm297_vm0, %v313_v2  ;;  %s6456_s29 = smov (!%p204_p10, %s2787_s29), 31  ;;  %s3279_s22 = smov [#allocation2]  }
  0x1b   : > { %2790 = vmatpush1.msk.msra.mxu0 %vm297_vm0, %v227_v0  ;;  %s2788_s30 = sshll.u32 %s6456_s29, 3  ;;  %v299_v55 = vrot.slane %v3361_v5, 4  ;;  %s3186_s23 = sshll.u32 %s3279_s22, 4  ;;  %s3187_s23 = int_to_ptr.vmem [resolvable:$false] %s3186_s23 }
  0x1c   : > { %v3363_v6 = vsel %vm297_vm0, %v295_v4, 0.0  ;;  %s3368_s7 = scalar_lea.vmem %s5852_s0, %s2788_s30  ;;  %s3188_s27 = scalar_lea.vmem %s3187_s23, 2048 }
  0x1d   : > { %v211_v7 = vld [vmem:[%s3368_s7] sm:$0xff]  ;;  %v213_v8 = vld [vmem:[%s3368_s7 + $0x10] sm:$0xff]  ;;  %v214_v9 = vld [vmem:[%s3368_s7 + $0x18] sm:$0xff]  ;;  %v306_v56 = vrot.slane %v3363_v6, 4  ;;  %v300_v58 = vadd.f32 %v299_v55, %v3361_v5 }
  0x1e   : > { %2791 = vmatmul.mubr.msk.f32.vlgmr.msra.gmra.mrb[0].mxu0 %vm244_vm1, %v211_v7  ;;  %v215_v10 = vld [vmem:[%s3368_s7 + $0x20] sm:$0xff]  ;;  %v216_v11 = vld [vmem:[%s3368_s7 + $0x28] sm:$0xff]  ;;  %v230_v12 = vmul.f32 %v213_v8, %v213_v8  ;;  %v231_v15 = vmul.f32 %v214_v9, %v214_v9  ;;  %v217_v18 = vld [vmem:[%s3368_s7 + $0x30] sm:$0xff]  ;;  %v228_v25 = vmul.f32 %v211_v7, %v211_v7 }
  0x1f   : > { %436 = vmatprep.mubr.f32.mxu0 %v3278_v3  ;;  %v212_v13 = vld [vmem:[%s3368_s7 + $0x8] sm:$0xff]  ;;  %v232_v14 = vmul.f32 %v215_v10, %v215_v10  ;;  %v233_v16 = vmul.f32 %v216_v11, %v216_v11  ;;  %v218_v20 = vld [vmem:[%s3368_s7 + $0x38] sm:$0xff]  ;;  %v234_v22 = vmul.f32 %v217_v18, %v217_v18  ;;  %v219_v29 = vld [vmem:[%s3368_s7 + $0x40] sm:$0xff]  ;;  %v307_v59 = vadd.f32 %v306_v56, %v3363_v6 }
  0x20   : > { %v251_v17 = vsel %vm244_vm1, %v230_v12, 0.0  ;;  %v254_v21 = vsel %vm244_vm1, %v231_v15, 0.0  ;;  %v235_v24 = vmul.f32 %v218_v20, %v218_v20  ;;  %v229_v28 = vmul.f32 %v212_v13, %v212_v13  ;;  %v220_v30 = vld [vmem:[%s3368_s7 + $0x48] sm:$0xff]  ;;  %v221_v35 = vld [vmem:[%s3368_s7 + $0x50] sm:$0xff]  ;;  %v222_v36 = vld [vmem:[%s3368_s7 + $0x58] sm:$0xff] }
  0x21   : > { %252 = vadd.xlane.f32.xlu0 %v251_v17  ;;  %v257_v19 = vsel %vm244_vm1, %v232_v14, 0.0  ;;  %v260_v23 = vsel %vm244_vm1, %v233_v16, 0.0  ;;  %v263_v26 = vsel %vm244_vm1, %v234_v22, 0.0  ;;  %v245_v31 = vsel %vm244_vm1, %v228_v25, 0.0  ;;  %v223_v41 = vld [vmem:[%s3368_s7 + $0x60] sm:$0xff]  ;;  %v224_v42 = vld [vmem:[%s3368_s7 + $0x68] sm:$0xff] }
  0x22   : > { %2792 = vmatmul.mubr.msk.f32.gmra.mrb[2].mxu0 %vm244_vm1, %v212_v13  ;;  %258 = vadd.xlane.f32.xlu1 %v257_v19  ;;  %v266_v27 = vsel %vm244_vm1, %v235_v24, 0.0  ;;  %v236_v32 = vmul.f32 %v219_v29, %v219_v29  ;;  %v248_v33 = vsel %vm244_vm1, %v229_v28, 0.0  ;;  %v237_v34 = vmul.f32 %v220_v30, %v220_v30  ;;  %v225_v47 = vld [vmem:[%s3368_s7 + $0x70] sm:$0xff]  ;;  %v226_v48 = vld [vmem:[%s3368_s7 + $0x78] sm:$0xff]  ;;  %s2785_s7 = sshll.u32 %s5734_s6, 6 }
  0x23   : > { %442 = vmatprep.mubr.f32.mxu0 %v3278_v3  ;;  %v238_v38 = vmul.f32 %v221_v35, %v221_v35  ;;  %v239_v40 = vmul.f32 %v222_v36, %v222_v36  ;;  %v240_v44 = vmul.f32 %v223_v41, %v223_v41  ;;  %v241_v46 = vmul.f32 %v224_v42, %v224_v42  ;;  %s5740_s8 = scalar_lea.vmem [#allocation2], %s2785_s7 }
  0x24   : > { %v269_v37 = vsel %vm244_vm1, %v236_v32, 0.0  ;;  %v272_v39 = vsel %vm244_vm1, %v237_v34, 0.0  ;;  %v242_v50 = vmul.f32 %v225_v47, %v225_v47  ;;  %v243_v52 = vmul.f32 %v226_v48, %v226_v48  ;;  %s2674_s10 = sshll.u32 %s5740_s8, 4  ;;  %s5777_s10 = int_to_ptr.vmem [resolvable:$true] %s2674_s10 }
  0x25   : > { %255 = vadd.xlane.f32.xlu0 %v254_v21  ;;  %v275_v43 = vsel %vm244_vm1, %v238_v38, 0.0  ;;  %v278_v45 = vsel %vm244_vm1, %v239_v40, 0.0  ;;  %v281_v49 = vsel %vm244_vm1, %v240_v44, 0.0  ;;  %v284_v51 = vsel %vm244_vm1, %v241_v46, 0.0  ;;  %s3182_s20 = scalar_lea.vmem %s5777_s10, 1024  ;;  %p3189_p0 = scmp.lt.s32.totalorder %s5777_s10, %s3187_s23 }
  0x26   : > { %2793 = vmatmul.mubr.msk.f32.gmra.mrb[4].mxu0 %vm244_vm1, %v213_v8  ;;  %261 = vadd.xlane.f32.xlu1 %v260_v23  ;;  %v287_v53 = vsel %vm244_vm1, %v242_v50, 0.0  ;;  %v290_v54 = vsel %vm244_vm1, %v243_v52, 0.0  ;;  %v301_v61 = vrot.slane %v300_v58, 2  ;;  %v308_v62 = vrot.slane %v307_v59, 2  ;;  %p3183_p11 = scmp.ne.s32.totalorder %s5777_s10, %s3182_s20  ;;  %p3190_p1 = scmp.lt.s32.totalorder %s3188_s27, %s3182_s20 }
  0x27   : > { %448 = vmatprep.mubr.f32.mxu0 %v3278_v3  ;;  %v655_v6 = vlaneseq }
  0x28   : > { %v302_v0 = vadd.f32 %v301_v61, %v300_v58  ;;  %v309_v1 = vadd.f32 %v308_v62, %v307_v59  ;;  %p3184_p12 = pnand %p3183_p11, %p3346_p5  ;;  %p3191_p2 = por %p3190_p1, %p3189_p0 }
  0x29   : > { %264 = vadd.xlane.f32.xlu0 %v263_v26 }
  0x2a   : > { %2794 = vmatmul.mubr.msk.f32.gmra.mrb[6].mxu0 %vm244_vm1, %v214_v9  ;;  %267 = vadd.xlane.f32.xlu1 %v266_v27  ;;  %v310_v7 = vrot.slane %v309_v1, 1  ;;  %p3185_p13 = pneg %p3184_p12 }
  0x2b   : > { %454 = vmatprep.mubr.f32.mxu0 %v3278_v3 }
  0x2c   : > { %p3192_p3 = pnand %p3191_p2, %p3185_p13 }
  0x2d   : > { %246 = vadd.xlane.f32.xlu0 %v245_v31 }
  0x2e   : > { %2795 = vmatmul.mubr.msk.f32.gmra.mrb[8].mxu0 %vm244_vm1, %v215_v10  ;;  %249 = vadd.xlane.f32.xlu1 %v248_v33  ;;  %v3439_v10 = vadd.f32 %v310_v7, %v309_v1 }
  0x2f   : > { %460 = vmatprep.mubr.f32.mxu0 %v3278_v3 }
  0x31   : > { %270 = vadd.xlane.f32.xlu0 %v269_v37 }
  0x32   : > { %2796 = vmatmul.mubr.msk.f32.gmra.mrb[10].mxu0 %vm244_vm1, %v216_v11  ;;  %273 = vadd.xlane.f32.xlu1 %v272_v39 }
  0x33   : > { %466 = vmatprep.mubr.f32.mxu0 %v3278_v3 }
  0x35   : > { %276 = vadd.xlane.f32.xlu0 %v275_v43 }
  0x36   : > { %2797 = vmatmul.mubr.msk.f32.gmra.mrb[12].mxu0 %vm244_vm1, %v217_v18  ;;  %279 = vadd.xlane.f32.xlu1 %v278_v45 }
  0x37   : > { %472 = vmatprep.mubr.f32.mxu0 %v3278_v3 }
  0x39   : > { %282 = vadd.xlane.f32.xlu0 %v281_v49 }
  0x3a   : > { %2798 = vmatmul.mubr.msk.f32.gmra.mrb[14].mxu0 %vm244_vm1, %v218_v20  ;;  %285 = vadd.xlane.f32.xlu1 %v284_v51  ;;  %v3446_v20 = vand.u32 127, %v655_v6 }
  0x3b   : > { %478 = vmatprep.mubr.f32.mxu0 %v3278_v3 }
  0x3c   : > { %6024 = vst [vmem:[#allocation8_spill] sm:$0xff] %v3446_v20  ;;  %v3460_v32 = vadd.s32 128, %v3446_v20 }
  0x3d   : > { %288 = vadd.xlane.f32.xlu0 %v287_v53 }
  0x3e   : > { %2799 = vmatmul.mubr.msk.f32.gmra.mrb[16].mxu0 %vm244_vm1, %v219_v29  ;;  %291 = vadd.xlane.f32.xlu1 %v290_v54  ;;  %6025 = vst [vmem:[#allocation9_spill] sm:$0xff] %v3460_v32 }
  0x3f   : > { %484 = vmatprep.mubr.f32.mxu0 %v3278_v3 }
  0x42   : > { %2800 = vmatmul.mubr.msk.f32.gmra.mrb[18].mxu0 %vm244_vm1, %v220_v30 }
  0x43   : > { %490 = vmatprep.mubr.f32.mxu0 %v3278_v3 }
  0x46   : > { %2801 = vmatmul.mubr.msk.f32.gmra.mrb[20].mxu0 %vm244_vm1, %v221_v35 }
  0x47   : > { %496 = vmatprep.mubr.f32.mxu0 %v3278_v3 }
  0x4a   : > { %2802 = vmatmul.mubr.msk.f32.gmra.mrb[22].mxu0 %vm244_vm1, %v222_v36 }
  0x4b   : > { %502 = vmatprep.mubr.f32.mxu0 %v3278_v3 }
  0x4e   : > { %2803 = vmatmul.mubr.msk.f32.gmra.mrb[24].mxu0 %vm244_vm1, %v223_v41 }
  0x4f   : > { %508 = vmatprep.mubr.f32.mxu0 %v3278_v3 }
  0x52   : > { %2804 = vmatmul.mubr.msk.f32.gmra.mrb[26].mxu0 %vm244_vm1, %v224_v42 }
  0x53   : > { %514 = vmatprep.mubr.f32.mxu0 %v3278_v3 }
  0x56   : > { %2805 = vmatmul.mubr.msk.f32.gmra.mrb[28].mxu0 %vm244_vm1, %v225_v47 }
  0x57   : > { %520 = vmatprep.mubr.f32.mxu0 %v3278_v3  ;;  %v303_v3 = vrot.slane %v302_v0, 1 }
  0x59   : > { %v3437_v9 = vadd.f32 %v303_v3, %v302_v0 }
  0x5a   : > { %2806 = vmatmul.mubr.msk.f32.gmra.mrb[30].mxu0 %vm244_vm1, %v226_v48 }
  0xae   : > { %v253_v57 = vpop.xlane.xlu0 %252 }
  0xaf   : > { %v259_v60 = vpop.xlane.xlu1 %258  ;;  %v531_v27 = vadd.f32 %v3437_v9, %v253_v57  ;;  %v532_v30 = vadd.f32 %v3439_v10, %v253_v57 }
  0xb0   : > { %v3457_v31 = vadd.f32 %v3437_v9, %v259_v60  ;;  %v3465_v35 = vadd.f32 %v3439_v10, %v259_v60 }
  0xb2   : > { %v256_v63 = vpop.xlane.xlu0 %255 }
  0xb3   : > { %v262_v2 = vpop.xlane.xlu1 %261  ;;  %v533_v36 = vadd.f32 %v3437_v9, %v256_v63  ;;  %v534_v37 = vadd.f32 %v3439_v10, %v256_v63 }
  0xb4   : > { %v3470_v41 = vadd.f32 %v3437_v9, %v262_v2  ;;  %v3473_v42 = vadd.f32 %v3439_v10, %v262_v2 }
  0xb6   : > { %v265_v4 = vpop.xlane.xlu0 %264 }
  0xb7   : > { %v268_v8 = vpop.xlane.xlu1 %267  ;;  %v3476_v43 = vadd.f32 %v3437_v9, %v265_v4  ;;  %v3479_v45 = vadd.f32 %v3439_v10, %v265_v4 }
  0xb8   : > { %v3482_v46 = vadd.f32 %v3437_v9, %v268_v8  ;;  %v3485_v50 = vadd.f32 %v3439_v10, %v268_v8 }
  0xba   : > { %v247_v11 = vpop.xlane.xlu0 %246 }
  0xbb   : > { %v527_v5 = vadd.f32 %v3437_v9, %v247_v11  ;;  %v528_v13 = vadd.f32 %v3439_v10, %v247_v11  ;;  %v250_v14 = vpop.xlane.xlu1 %249 }
  0xbc   : > { %v3444_v19 = vadd.f32 %v3437_v9, %v250_v14  ;;  %v3449_v22 = vadd.f32 %v3439_v10, %v250_v14 }
  0xbe   : > { %v271_v29 = vpop.xlane.xlu0 %270 }
  0xbf   : > { %v274_v40 = vpop.xlane.xlu1 %273  ;;  %v3488_v54 = vadd.f32 %v3437_v9, %v271_v29  ;;  %v3491_v58 = vadd.f32 %v3439_v10, %v271_v29 }
  0xc0   : > { %v3494_v59 = vadd.f32 %v3437_v9, %v274_v40  ;;  %v3497_v63 = vadd.f32 %v3439_v10, %v274_v40 }
  0xc2   : > { %v277_v49 = vpop.xlane.xlu0 %276 }
  0xc3   : > { %v280_v60 = vpop.xlane.xlu1 %279  ;;  %v3500_v0 = vadd.f32 %v3437_v9, %v277_v49  ;;  %v3503_v3 = vadd.f32 %v3439_v10, %v277_v49 }
  0xc4   : > { %v3508_v6 = vadd.f32 %v3437_v9, %v280_v60 }
  0xc6   : > { %v3505_v7 = vpop.xlane.xlu0 %282 }
  0xf1   : > { %v432_v12 = vpop.f32.mrb[0].mxu0 }
  0xf2   : > { %v559_v15 = vmul.f32 2.0, %v432_v12  ;;  %v434_v16 = vpop.f32.mrb[1].mxu0 }
  0xf3   : > { %v560_v17 = vmul.f32 2.0, %v434_v16 }
  0xf4   : > { %v591_v18 = vsub.f32 %v527_v5, %v559_v15 }
  0xf5   : > { %v592_v21 = vsub.f32 %v528_v13, %v560_v17  ;;  %v438_v23 = vpop.f32.mrb[2].mxu0  ;;  %v3514_v17 = vadd.f32 %v3439_v10, %v280_v60 }
  0xf6   : > { %v561_v24 = vmul.f32 2.0, %v438_v23  ;;  %v440_v25 = vpop.f32.mrb[3].mxu0  ;;  %v623_v47 = vmax.f32 %v591_v18, 0.0  ;;  %v3521_v23 = vadd.f32 %v3437_v9, %v3505_v7 }
  0xf7   : > { %v3451_v26 = vmul.f32 2.0, %v440_v25  ;;  %v624_v51 = vmax.f32 %v592_v21, 0.0 }
  0xf8   : > { %v593_v28 = vsub.f32 %v3444_v19, %v561_v24  ;;  %v690_v1 = vand.u32 4294967040, %v623_v47 }
  0xf9   : > { %v594_v33 = vsub.f32 %v3449_v22, %v3451_v26  ;;  %v444_v34 = vpop.f32.mrb[4].mxu0  ;;  %v691_v8 = vand.u32 4294967040, %v624_v51 }
  0xfa   : > { %v563_v38 = vmul.f32 2.0, %v444_v34  ;;  %v446_v39 = vpop.f32.mrb[5].mxu0  ;;  %v3524_v24 = vor.u32 %v690_v1, %v3446_v20  ;;  %v625_v25 = vmax.f32 %v593_v28, 0.0 }
  0xfb   : > { %v564_v44 = vmul.f32 2.0, %v446_v39  ;;  %v626_v51 = vmax.f32 %v594_v33, 0.0 }
  0xfc   : > { %v595_v48 = vsub.f32 %v531_v27, %v563_v38  ;;  %v692_v49 = vand.u32 4294967040, %v625_v25 }
  0xfd   : > { %v596_v52 = vsub.f32 %v532_v30, %v564_v44  ;;  %v450_v53 = vpop.f32.mrb[6].mxu0  ;;  %v3528_v30 = vor.u32 %v691_v8, %v3460_v32 }
  0xfe   : > { %v627_v55 = vmax.f32 %v595_v48, 0.0  ;;  %v565_v56 = vmul.f32 2.0, %v450_v53  ;;  %v452_v57 = vpop.f32.mrb[7].mxu0 }
  0xff   : > { %v628_v61 = vmax.f32 %v596_v52, 0.0  ;;  %v566_v62 = vmul.f32 2.0, %v452_v57  ;;  %vm754_vm4 = vcmp.lt.s32.totalorder %v3524_v24, %v3528_v30 }
 0x100   : > { %v694_v2 = vand.u32 4294967040, %v627_v55  ;;  %v597_v4 = vsub.f32 %v533_v36, %v565_v56 }
 0x101   : > { %v695_v11 = vand.u32 4294967040, %v628_v61  ;;  %v598_v5 = vsub.f32 %v534_v37, %v566_v62  ;;  %v456_v12 = vpop.f32.mrb[8].mxu0 }
 0x102   : > { %v3511_v13 = vor.u32 %v694_v2, %v3446_v20  ;;  %v629_v14 = vmax.f32 %v597_v4, 0.0  ;;  %v567_v15 = vmul.f32 2.0, %v456_v12  ;;  %v458_v16 = vpop.f32.mrb[9].mxu0  ;;  %v693_v4 = vand.u32 4294967040, %v626_v51 }
 0x103   : > { %v3517_v18 = vor.u32 %v695_v11, %v3460_v32  ;;  %v630_v19 = vmax.f32 %v598_v5, 0.0  ;;  %v568_v21 = vmul.f32 2.0, %v458_v16 }
 0x104   : > { %v696_v27 = vand.u32 4294967040, %v629_v14  ;;  %v599_v29 = vsub.f32 %v3457_v31, %v567_v15 }
 0x105   : > { %v697_v34 = vand.u32 4294967040, %v630_v19  ;;  %v600_v36 = vsub.f32 %v3465_v35, %v568_v21  ;;  %v462_v37 = vpop.f32.mrb[10].mxu0  ;;  %vm786_vm2 = vcmp.lt.s32.totalorder %v3511_v13, %v3517_v18 }
 0x106   : > { %v3534_v38 = vor.u32 %v696_v27, %v3446_v20  ;;  %v631_v39 = vmax.f32 %v599_v29, 0.0  ;;  %v569_v40 = vmul.f32 2.0, %v462_v37  ;;  %v464_v44 = vpop.f32.mrb[11].mxu0  ;;  %v3538_v28 = vsel %vm786_vm2, %v3511_v13, %v3517_v18 }
 0x107   : > { %v3541_v31 = vor.u32 %v697_v34, %v3460_v32  ;;  %v632_v47 = vmax.f32 %v600_v36, 0.0  ;;  %v570_v48 = vmul.f32 2.0, %v464_v44  ;;  %v789_v35 = vshra.s32 %v3538_v28, 16 }
 0x108   : > { %v698_v52 = vand.u32 4294967040, %v631_v39  ;;  %v601_v53 = vsub.f32 %v3470_v41, %v569_v40  ;;  %v3586_v36 = vor.u32 %v692_v49, %v3446_v20  ;;  %v3589_v37 = vor.u32 %v693_v4, %v3460_v32 }
 0x109   : > { %v699_v55 = vand.u32 4294967040, %v632_v47  ;;  %v602_v56 = vsub.f32 %v3473_v42, %v570_v48  ;;  %v468_v57 = vpop.f32.mrb[12].mxu0  ;;  %v3549_v60 = vcvt.s32.f32 %v789_v35  ;;  %vm802_vm3 = vcmp.lt.s32.totalorder %v3534_v38, %v3541_v31 }
 0x10a   : > { %v3554_v61 = vor.u32 %v698_v52, %v3446_v20  ;;  %v633_v62 = vmax.f32 %v601_v53, 0.0  ;;  %v571_v1 = vmul.f32 2.0, %v468_v57  ;;  %v470_v2 = vpop.f32.mrb[13].mxu0  ;;  %v3558_v22 = vsel %vm802_vm3, %v3534_v38, %v3541_v31  ;;  %6026 = vst [vmem:[#allocation10_spill] sm:$0xff] %v3589_v37 }
 0x10b   : > { %v3561_v26 = vor.u32 %v699_v55, %v3460_v32  ;;  %v634_v33 = vmax.f32 %v602_v56, 0.0  ;;  %v572_v41 = vmul.f32 2.0, %v470_v2  ;;  %792 = vmin.xlane.f32.xlu0 %v3549_v60  ;;  %v805_v42 = vshra.s32 %v3558_v22, 16 }
 0x10c   : > { %v700_v8 = vand.u32 4294967040, %v633_v62  ;;  %v603_v11 = vsub.f32 %v3476_v43, %v571_v1  ;;  %v3615_v2 = vsel %vm754_vm4, %v3524_v24, %v3528_v30  ;;  %vm770_vm7 = vcmp.lt.s32.totalorder %v3586_v36, %v3589_v37 }
 0x10d   : > { %v701_v5 = vand.u32 4294967040, %v634_v33  ;;  %v604_v12 = vsub.f32 %v3479_v45, %v572_v41  ;;  %v474_v14 = vpop.f32.mrb[14].mxu0  ;;  %v3569_v15 = vcvt.s32.f32 %v805_v42  ;;  %vm818_vm5 = vcmp.lt.s32.totalorder %v3554_v61, %v3561_v26 }
 0x10e   : > { %v3574_v16 = vor.u32 %v700_v8, %v3446_v20  ;;  %v635_v19 = vmax.f32 %v603_v11, 0.0  ;;  %v573_v21 = vmul.f32 2.0, %v474_v14  ;;  %v476_v25 = vpop.f32.mrb[15].mxu0  ;;  %v3578_v43 = vsel %vm818_vm5, %v3554_v61, %v3561_v26 }
 0x10f   : > { %v3581_v27 = vor.u32 %v701_v5, %v3460_v32  ;;  %v636_v45 = vmax.f32 %v604_v12, 0.0  ;;  %v574_v29 = vmul.f32 2.0, %v476_v25  ;;  %808 = vmin.xlane.f32.xlu1 %v3569_v15  ;;  %v821_v34 = vshra.s32 %v3578_v43, 16 }
 0x110   : > { %v702_v39 = vand.u32 4294967040, %v635_v19  ;;  %v605_v40 = vsub.f32 %v3482_v46, %v573_v21 }
 0x111   : > { %v703_v44 = vand.u32 4294967040, %v636_v45  ;;  %v606_v47 = vsub.f32 %v3485_v50, %v574_v29  ;;  %v480_v48 = vpop.f32.mrb[16].mxu0  ;;  %v3593_v35 = vcvt.s32.f32 %v821_v34  ;;  %vm834_vm6 = vcmp.lt.s32.totalorder %v3574_v16, %v3581_v27 }
 0x112   : > { %v3598_v51 = vor.u32 %v702_v39, %v3446_v20  ;;  %v637_v49 = vmax.f32 %v605_v40, 0.0  ;;  %v575_v52 = vmul.f32 2.0, %v480_v48  ;;  %v482_v53 = vpop.f32.mrb[17].mxu0  ;;  %v3602_v55 = vsel %vm834_vm6, %v3574_v16, %v3581_v27 }
 0x113   : > { %v3605_v46 = vor.u32 %v703_v44, %v3460_v32  ;;  %v638_v50 = vmax.f32 %v606_v47, 0.0  ;;  %v576_v56 = vmul.f32 2.0, %v482_v53  ;;  %824 = vmin.xlane.f32.xlu0 %v3593_v35  ;;  %v837_v57 = vshra.s32 %v3602_v55, 16 }
 0x114   : > { %v704_v62 = vand.u32 4294967040, %v637_v49  ;;  %v607_v1 = vsub.f32 %v3488_v54, %v575_v52  ;;  %v757_v29 = vshra.s32 %v3615_v2, 16  ;;  %v3643_v34 = vsel %vm770_vm7, %v3586_v36, %v3589_v37 }
 0x115   : > { %v705_v33 = vand.u32 4294967040, %v638_v50  ;;  %v608_v41 = vsub.f32 %v3491_v58, %v576_v56  ;;  %v486_v42 = vpop.f32.mrb[18].mxu0  ;;  %v3620_v4 = vcvt.s32.f32 %v837_v57  ;;  %vm850_vm8 = vcmp.lt.s32.totalorder %v3598_v51, %v3605_v46 }
 0x116   : > { %v3625_v54 = vor.u32 %v704_v62, %v3446_v20  ;;  %v639_v8 = vmax.f32 %v607_v1, 0.0  ;;  %v577_v11 = vmul.f32 2.0, %v486_v42  ;;  %v488_v5 = vpop.f32.mrb[19].mxu0  ;;  %v3629_v12 = vsel %vm850_vm8, %v3598_v51, %v3605_v46 }
 0x117   : > { %v3632_v14 = vor.u32 %v705_v33, %v3460_v32  ;;  %v640_v58 = vmax.f32 %v608_v41, 0.0  ;;  %v578_v19 = vmul.f32 2.0, %v488_v5  ;;  %840 = vmin.xlane.f32.xlu1 %v3620_v4  ;;  %v853_v21 = vshra.s32 %v3629_v12, 16 }
 0x118   : > { %v706_v25 = vand.u32 4294967040, %v639_v8  ;;  %v609_v45 = vsub.f32 %v3494_v59, %v577_v11  ;;  %v3663_v33 = vcvt.s32.f32 %v757_v29  ;;  %v773_v41 = vshra.s32 %v3643_v34, 16 }
 0x119   : > { %v707_v39 = vand.u32 4294967040, %v640_v58  ;;  %v610_v40 = vsub.f32 %v3497_v63, %v578_v19  ;;  %v492_v44 = vpop.f32.mrb[20].mxu0  ;;  %v3646_v47 = vcvt.s32.f32 %v853_v21  ;;  %vm866_vm9 = vcmp.lt.s32.totalorder %v3625_v54, %v3632_v14 }
 0x11a   : > { %v3651_v59 = vor.u32 %v706_v25, %v3446_v20  ;;  %v641_v48 = vmax.f32 %v609_v45, 0.0  ;;  %v579_v49 = vmul.f32 2.0, %v492_v44  ;;  %v494_v52 = vpop.f32.mrb[21].mxu0  ;;  %v3655_v53 = vsel %vm866_vm9, %v3625_v54, %v3632_v14 }
 0x11b   : > { %v3658_v50 = vor.u32 %v707_v39, %v3460_v32  ;;  %v642_v63 = vmax.f32 %v610_v40, 0.0  ;;  %v580_v56 = vmul.f32 2.0, %v494_v52  ;;  %856 = vmin.xlane.f32.xlu0 %v3646_v47  ;;  %v869_v57 = vshra.s32 %v3655_v53, 16 }
 0x11c   : > { %6027 = vst [vmem:[#allocation11_spill] sm:$0xff] %v3651_v59  ;;  %v708_v62 = vand.u32 4294967040, %v641_v48  ;;  %v611_v1 = vsub.f32 %v3500_v0, %v579_v49  ;;  %v552_v48 = vadd.f32 %v3439_v10, %v3505_v7  ;;  %v3687_v49 = vcvt.s32.f32 %v773_v41 }
 0x11d   : > { %6028 = vst [vmem:[#allocation12_spill] sm:$0xff] %v3658_v50  ;;  %v709_v42 = vand.u32 4294967040, %v642_v63  ;;  %v612_v8 = vsub.f32 %v3503_v3, %v580_v56  ;;  %v498_v11 = vpop.f32.mrb[22].mxu0  ;;  %v3667_v5 = vcvt.s32.f32 %v869_v57  ;;  %vm882_vm10 = vcmp.lt.s32.totalorder %v3651_v59, %v3658_v50 }
 0x11e   : > { %v3672_v58 = vor.u32 %v708_v62, %v3446_v20  ;;  %v643_v19 = vmax.f32 %v611_v1, 0.0  ;;  %v581_v21 = vmul.f32 2.0, %v498_v11  ;;  %v500_v25 = vpop.f32.mrb[23].mxu0  ;;  %v3676_v0 = vsel %vm882_vm10, %v3651_v59, %v3658_v50  ;;  %v286_v62 = vpop.xlane.xlu1 %285 }
 0x11f   : > { %v3679_v45 = vor.u32 %v709_v42, %v3460_v32  ;;  %v644_v3 = vmax.f32 %v612_v8, 0.0  ;;  %v582_v29 = vmul.f32 2.0, %v500_v25  ;;  %872 = vmin.xlane.f32.xlu1 %v3667_v5  ;;  %760 = vmin.xlane.f32.xlu0 %v3663_v33  ;;  %v885_v39 = vshra.s32 %v3676_v0, 16 }
 0x120   : > { %6029 = vst [vmem:[#allocation13_spill] sm:$0xff] %v3672_v58  ;;  %v710_v40 = vand.u32 4294967040, %v643_v19  ;;  %v613_v44 = vsub.f32 %v3508_v6, %v581_v21 }
 0x121   : > { %6030 = vst [vmem:[#allocation14_spill] sm:$0xff] %v3679_v45  ;;  %v711_v52 = vand.u32 4294967040, %v644_v3  ;;  %v614_v63 = vsub.f32 %v3514_v17, %v582_v29  ;;  %v504_v56 = vpop.f32.mrb[24].mxu0  ;;  %v3690_v57 = vcvt.s32.f32 %v885_v39  ;;  %vm898_vm11 = vcmp.lt.s32.totalorder %v3672_v58, %v3679_v45 }
 0x122   : > { %v3695_v1 = vor.u32 %v710_v40, %v3446_v20  ;;  %v645_v42 = vmax.f32 %v613_v44, 0.0  ;;  %v583_v6 = vmul.f32 2.0, %v504_v56  ;;  %v506_v8 = vpop.f32.mrb[25].mxu0  ;;  %v3699_v7 = vsel %vm898_vm11, %v3672_v58, %v3679_v45 }
 0x123   : > { %v3702_v41 = vor.u32 %v711_v52, %v3460_v32  ;;  %v646_v17 = vmax.f32 %v614_v63, 0.0  ;;  %v584_v11 = vmul.f32 2.0, %v506_v8  ;;  %776 = vmin.xlane.f32.xlu1 %v3687_v49  ;;  %888 = vmin.xlane.f32.xlu0 %v3690_v57  ;;  %v901_v19 = vshra.s32 %v3699_v7, 16  ;;  %v289_v63 = vpop.xlane.xlu0 %288 }
 0x124   : > { %6031 = vst [vmem:[#allocation15_spill] sm:$0xff] %v3695_v1  ;;  %v712_v21 = vand.u32 4294967040, %v645_v42  ;;  %v615_v25 = vsub.f32 %v3521_v23, %v583_v6  ;;  %v553_v3 = vadd.f32 %v3437_v9, %v286_v62  ;;  %v554_v29 = vadd.f32 %v3439_v10, %v286_v62 }
 0x125   : > { %6032 = vst [vmem:[#allocation16_spill] sm:$0xff] %v3702_v41  ;;  %v713_v39 = vand.u32 4294967040, %v646_v17  ;;  %v616_v40 = vsub.f32 %v552_v48, %v584_v11  ;;  %v510_v44 = vpop.f32.mrb[26].mxu0  ;;  %v3710_v52 = vcvt.s32.f32 %v901_v19  ;;  %vm914_vm12 = vcmp.lt.s32.totalorder %v3695_v1, %v3702_v41 }
 0x126   : > { %v3715_v56 = vor.u32 %v712_v21, %v3446_v20  ;;  %v647_v8 = vmax.f32 %v615_v25, 0.0  ;;  %v585_v42 = vmul.f32 2.0, %v510_v44  ;;  %v512_v45 = vpop.f32.mrb[27].mxu0  ;;  %v3719_v23 = vsel %vm914_vm12, %v3695_v1, %v3702_v41  ;;  %v292_v1 = vpop.xlane.xlu1 %291 }
 0x127   : > { %v3722_v62 = vor.u32 %v713_v39, %v3460_v32  ;;  %v648_v48 = vmax.f32 %v616_v40, 0.0  ;;  %v586_v6 = vmul.f32 2.0, %v512_v45  ;;  %904 = vmin.xlane.f32.xlu1 %v3710_v52  ;;  %v917_v17 = vshra.s32 %v3719_v23, 16 }
 0x128   : > { %6033 = vst [vmem:[#allocation17_spill] sm:$0xff] %v3715_v56  ;;  %v714_v11 = vand.u32 4294967040, %v647_v8  ;;  %v617_v19 = vsub.f32 %v553_v3, %v585_v42  ;;  %v555_v21 = vadd.f32 %v3437_v9, %v289_v63  ;;  %v556_v25 = vadd.f32 %v3439_v10, %v289_v63 }
 0x129   : > { %6034 = vst [vmem:[#allocation18_spill] sm:$0xff] %v3722_v62  ;;  %v715_v44 = vand.u32 4294967040, %v648_v48  ;;  %v618_v58 = vsub.f32 %v554_v29, %v586_v6  ;;  %v516_v50 = vpop.f32.mrb[28].mxu0  ;;  %v3728_v41 = vcvt.s32.f32 %v917_v17  ;;  %vm930_vm13 = vcmp.lt.s32.totalorder %v3715_v56, %v3722_v62 }
 0x12a   : > { %v3733_v45 = vor.u32 %v714_v11, %v3446_v20  ;;  %v649_v39 = vmax.f32 %v617_v19, 0.0  ;;  %v587_v40 = vmul.f32 2.0, %v516_v50  ;;  %v518_v8 = vpop.f32.mrb[29].mxu0  ;;  %v3737_v3 = vsel %vm930_vm13, %v3715_v56, %v3722_v62 }
 0x12b   : > { %v3740_v63 = vor.u32 %v715_v44, %v3460_v32  ;;  %v650_v29 = vmax.f32 %v618_v58, 0.0  ;;  %v588_v42 = vmul.f32 2.0, %v518_v8  ;;  %920 = vmin.xlane.f32.xlu0 %v3728_v41  ;;  %v933_v48 = vshra.s32 %v3737_v3, 16 }
 0x12c   : > { %v716_v6 = vand.u32 4294967040, %v649_v39  ;;  %v619_v17 = vsub.f32 %v555_v21, %v587_v40  ;;  %v557_v11 = vadd.f32 %v3437_v9, %v292_v1  ;;  %v558_v50 = vadd.f32 %v3439_v10, %v292_v1 }
 0x12d   : > { %v717_v19 = vand.u32 4294967040, %v650_v29  ;;  %v620_v59 = vsub.f32 %v556_v25, %v588_v42  ;;  %v522_v37 = vpop.f32.mrb[30].mxu0  ;;  %v3746_v62 = vcvt.s32.f32 %v933_v48  ;;  %vm946_vm14 = vcmp.lt.s32.totalorder %v3733_v45, %v3740_v63 }
 0x12e   : > { %v3751_v58 = vor.u32 %v716_v6, %v3446_v20  ;;  %v651_v44 = vmax.f32 %v619_v17, 0.0  ;;  %v589_v8 = vmul.f32 2.0, %v522_v37  ;;  %v524_v56 = vpop.f32.mrb[31].mxu0  ;;  %v3755_v21 = vsel %vm946_vm14, %v3733_v45, %v3740_v63 }
 0x12f   : > { %v3758_v9 = vor.u32 %v717_v19, %v3460_v32  ;;  %v652_v10 = vmax.f32 %v620_v59, 0.0  ;;  %v590_v1 = vmul.f32 2.0, %v524_v56  ;;  %936 = vmin.xlane.f32.xlu1 %v3746_v62  ;;  %v949_v25 = vshra.s32 %v3755_v21, 16 }
 0x130   : > { %v718_v39 = vand.u32 4294967040, %v651_v44  ;;  %v621_v40 = vsub.f32 %v557_v11, %v589_v8 }
 0x131   : > { %v719_v29 = vand.u32 4294967040, %v652_v10  ;;  %v622_v42 = vsub.f32 %v558_v50, %v590_v1  ;;  %v3762_v48 = vcvt.s32.f32 %v949_v25  ;;  %vm962_vm15 = vcmp.lt.s32.totalorder %v3751_v58, %v3758_v9 }
 0x132   : > { %v3767_v37 = vor.u32 %v718_v39, %v3446_v20  ;;  %v653_v6 = vmax.f32 %v621_v40, 0.0  ;;  %v3771_v59 = vsel %vm962_vm15, %v3751_v58, %v3758_v9 }
 0x133   : > { %v3774_v56 = vor.u32 %v719_v29, %v3460_v32  ;;  %v654_v17 = vmax.f32 %v622_v42, 0.0  ;;  %952 = vmin.xlane.f32.xlu0 %v3762_v48  ;;  %v965_v11 = vshra.s32 %v3771_v59, 16 }
 0x134   : > { %v720_v50 = vand.u32 4294967040, %v653_v6  ;;  %v788_v6 = vand.u32 65535, %v3538_v28 }
 0x135   : > { %v721_v19 = vand.u32 4294967040, %v654_v17  ;;  %v3778_v44 = vcvt.s32.f32 %v965_v11  ;;  %vm978_vm0 = vcmp.lt.s32.totalorder %v3767_v37, %v3774_v56 }
 0x136   : > { %v3783_v8 = vor.u32 %v720_v50, %v3446_v20  ;;  %v3787_v10 = vsel %vm978_vm0, %v3767_v37, %v3774_v56  ;;  %v790_v11 = vcvt.s32.f32 %v788_v6  ;;  %v804_v50 = vand.u32 65535, %v3558_v22 }
 0x137   : > { %v3790_v1 = vor.u32 %v721_v19, %v3460_v32  ;;  %968 = vmin.xlane.f32.xlu1 %v3778_v44  ;;  %v981_v25 = vshra.s32 %v3787_v10, 16  ;;  %v836_v22 = vand.u32 65535, %v3602_v55  ;;  %v868_v55 = vand.u32 65535, %v3655_v53 }
 0x138   : > { %v806_v20 = vcvt.s32.f32 %v804_v50 }
 0x139   : > { %v3794_v39 = vcvt.s32.f32 %v981_v25  ;;  %vm994_vm1 = vcmp.lt.s32.totalorder %v3783_v8, %v3790_v1  ;;  %v838_v50 = vcvt.s32.f32 %v836_v22  ;;  %v772_v22 = vand.u32 65535, %v3643_v34 }
 0x13a   : > { %v3800_v40 = vsel %vm994_vm1, %v3783_v8, %v3790_v1  ;;  %v900_v34 = vand.u32 65535, %v3699_v7 }
 0x13b   : > { %984 = vmin.xlane.f32.xlu0 %v3794_v39  ;;  %v997_v29 = vshra.s32 %v3800_v40, 16 }
 0x13d   : > { %v3804_v42 = vcvt.s32.f32 %v997_v29  ;;  %v820_v29 = vand.u32 65535, %v3578_v43  ;;  %v852_v43 = vand.u32 65535, %v3629_v12 }
 0x13f   : > { %1000 = vmin.xlane.f32.xlu1 %v3804_v42  ;;  %v822_v6 = vcvt.s32.f32 %v820_v29 }
 0x198   : > { %v3808_v17 = vpop.xlane.xlu0 %792 }
 0x199   : > { %vm794_vm2 = vcmp.eq.f32.partialorder %v3549_v60, %v3808_v17 }
 0x19a   : > { %v795_v19 = vsel %vm794_vm2, %v790_v11, inf }
 0x19b   : > { %796 = vmin.xlane.f32.xlu0 %v795_v19  ;;  %v756_v19 = vand.u32 65535, %v3615_v2 }
 0x19c   : > { %v3813_v25 = vpop.xlane.xlu1 %808 }
 0x19d   : > { %vm810_vm3 = vcmp.eq.f32.partialorder %v3569_v15, %v3813_v25  ;;  %v854_v15 = vcvt.s32.f32 %v852_v43  ;;  %v774_v43 = vcvt.s32.f32 %v772_v22 }
 0x19e   : > { %v811_v32 = vsel %vm810_vm3, %v806_v20, inf }
 0x19f   : > { %812 = vmin.xlane.f32.xlu1 %v811_v32 }
 0x1a0   : > { %v3818_v28 = vpop.xlane.xlu0 %824 }
 0x1a1   : > { %vm826_vm4 = vcmp.eq.f32.partialorder %v3593_v35, %v3818_v28 }
 0x1a2   : > { %v827_v60 = vsel %vm826_vm4, %v822_v6, inf  ;;  %v870_v6 = vcvt.s32.f32 %v868_v55  ;;  %v916_v55 = vand.u32 65535, %v3719_v23  ;;  %v948_v23 = vand.u32 65535, %v3755_v21 }
 0x1a3   : > { %828 = vmin.xlane.f32.xlu0 %v827_v60  ;;  %v884_v60 = vand.u32 65535, %v3676_v0  ;;  %v980_v21 = vand.u32 65535, %v3787_v10 }
 0x1a4   : > { %v3823_v11 = vpop.xlane.xlu1 %840 }
 0x1a5   : > { %vm842_vm5 = vcmp.eq.f32.partialorder %v3620_v4, %v3823_v11  ;;  %v758_v4 = vcvt.s32.f32 %v756_v19 }
 0x1a6   : > { %v843_v20 = vsel %vm842_vm5, %v838_v50, inf }
 0x1a7   : > { %844 = vmin.xlane.f32.xlu1 %v843_v20  ;;  %v886_v20 = vcvt.s32.f32 %v884_v60  ;;  %v950_v60 = vcvt.s32.f32 %v948_v23 }
 0x1a8   : > { %v3828_v32 = vpop.xlane.xlu0 %856 }
 0x1a9   : > { %vm858_vm6 = vcmp.eq.f32.partialorder %v3646_v47, %v3828_v32 }
 0x1aa   : > { %v859_v35 = vsel %vm858_vm6, %v854_v15, inf  ;;  %v902_v15 = vcvt.s32.f32 %v900_v34 }
 0x1ab   : > { %860 = vmin.xlane.f32.xlu0 %v859_v35  ;;  %v932_v35 = vand.u32 65535, %v3737_v3  ;;  %v964_v3 = vand.u32 65535, %v3771_v59  ;;  %v996_v59 = vand.u32 65535, %v3800_v40 }
 0x1ac   : > { %v3834_v29 = vpop.xlane.xlu1 %872  ;;  %v3836_v12 = vpop.xlane.xlu0 %760 }
 0x1ad   : > { %vm874_vm7 = vcmp.eq.f32.partialorder %v3667_v5, %v3834_v29  ;;  %vm762_vm8 = vcmp.eq.f32.partialorder %v3663_v33, %v3836_v12 }
 0x1ae   : > { %v875_v2 = vsel %vm874_vm7, %v870_v6, inf  ;;  %v763_v47 = vsel %vm762_vm8, %v758_v4, inf  ;;  %v934_v4 = vcvt.s32.f32 %v932_v35  ;;  %v831_v35 = vcvt.f32.s32 %v3818_v28 }
 0x1af   : > { %876 = vmin.xlane.f32.xlu1 %v875_v2  ;;  %764 = vmin.xlane.f32.xlu0 %v763_v47  ;;  %v966_v47 = vcvt.s32.f32 %v964_v3 }
 0x1b0   : > { %v3844_v53 = vpop.xlane.xlu1 %776  ;;  %v3846_v50 = vpop.xlane.xlu0 %888  ;;  %v832_v23 = vshll.u32 %v831_v35, 16  ;;  %v767_v35 = vcvt.f32.s32 %v3836_v12 }
 0x1b1   : > { %vm778_vm9 = vcmp.eq.f32.partialorder %v3687_v49, %v3844_v53  ;;  %vm890_vm10 = vcmp.eq.f32.partialorder %v3690_v57, %v3846_v50  ;;  %v918_v49 = vcvt.s32.f32 %v916_v55 }
 0x1b2   : > { %v779_v5 = vsel %vm778_vm9, %v774_v43, inf  ;;  %v891_v33 = vsel %vm890_vm10, %v886_v20, inf  ;;  %v982_v20 = vcvt.s32.f32 %v980_v21 }
 0x1b3   : > { %780 = vmin.xlane.f32.xlu1 %v779_v5  ;;  %892 = vmin.xlane.f32.xlu0 %v891_v33  ;;  %v998_v5 = vcvt.s32.f32 %v996_v59  ;;  %v815_v33 = vcvt.f32.s32 %v3813_v25 }
 0x1b4   : > { %v3853_v0 = vpop.xlane.xlu1 %904 }
 0x1b5   : > { %vm906_vm11 = vcmp.eq.f32.partialorder %v3710_v52, %v3853_v0 }
 0x1b6   : > { %v907_v19 = vsel %vm906_vm11, %v902_v15, inf }
 0x1b7   : > { %908 = vmin.xlane.f32.xlu1 %v907_v19 }
 0x1b8   : > { %v3858_v7 = vpop.xlane.xlu0 %920 }
 0x1b9   : > { %vm922_vm12 = vcmp.eq.f32.partialorder %v3728_v41, %v3858_v7 }
 0x1ba   : > { %v923_v57 = vsel %vm922_vm12, %v918_v49, inf }
 0x1bb   : > { %924 = vmin.xlane.f32.xlu0 %v923_v57 }
 0x1bc   : > { %v3863_v6 = vpop.xlane.xlu1 %936 }
 0x1bd   : > { %vm938_vm13 = vcmp.eq.f32.partialorder %v3746_v62, %v3863_v6 }
 0x1be   : > { %v939_v52 = vsel %vm938_vm13, %v934_v4, inf }
 0x1bf   : > { %940 = vmin.xlane.f32.xlu1 %v939_v52  ;;  %v847_v52 = vcvt.f32.s32 %v3823_v11 }
 0x1c0   : > { %v3868_v22 = vpop.xlane.xlu0 %952 }
 0x1c1   : > { %vm954_vm14 = vcmp.eq.f32.partialorder %v3762_v48, %v3868_v22  ;;  %v848_v11 = vshll.u32 %v847_v52, 16 }
 0x1c2   : > { %v955_v41 = vsel %vm954_vm14, %v950_v60, inf }
 0x1c3   : > { %956 = vmin.xlane.f32.xlu0 %v955_v41 }
 0x1c4   : > { %v3873_v2 = vpop.xlane.xlu1 %968 }
 0x1c5   : > { %vm970_vm15 = vcmp.eq.f32.partialorder %v3778_v44, %v3873_v2  ;;  %v799_v44 = vcvt.f32.s32 %v3808_v17 }
 0x1c6   : > { %v971_v62 = vsel %vm970_vm15, %v966_v47, inf }
 0x1c7   : > { %972 = vmin.xlane.f32.xlu1 %v971_v62  ;;  %v800_v55 = vshll.u32 %v799_v44, 16  ;;  %v863_v62 = vcvt.f32.s32 %v3828_v32  ;;  %v879_v44 = vcvt.f32.s32 %v3834_v29 }
 0x1c8   : > { %v3878_v43 = vpop.xlane.xlu0 %984 }
 0x1c9   : > { %vm986_vm0 = vcmp.eq.f32.partialorder %v3794_v39, %v3878_v43  ;;  %v816_v39 = vshll.u32 %v815_v33, 16 }
 0x1ca   : > { %v987_v48 = vsel %vm986_vm0, %v982_v20, inf }
 0x1cb   : > { %988 = vmin.xlane.f32.xlu0 %v987_v48 }
 0x1cc   : > { %v3883_v34 = vpop.xlane.xlu1 %1000 }
 0x1cd   : > { %vm1002_vm1 = vcmp.eq.f32.partialorder %v3804_v42, %v3883_v34 }
 0x1ce   : > { %v1003_v10 = vsel %vm1002_vm1, %v998_v5, inf }
 0x1cf   : > { %1004 = vmin.xlane.f32.xlu1 %v1003_v10  ;;  %v864_v10 = vshll.u32 %v863_v62, 16  ;;  %v783_v62 = vcvt.f32.s32 %v3844_v53 }
 0x1d1   : > { %v784_v53 = vshll.u32 %v783_v62, 16 }
 0x228   : > { %v797_v15 = vpop.xlane.xlu0 %796 }
 0x229   : > { %v798_v40 = vcvt.f32.s32 %v797_v15 }
 0x22b   : > { %v3889_v19 = vadd.s32 %v800_v55, %v798_v40 }
 0x22c   : > { %v813_v49 = vpop.xlane.xlu1 %812 }
 0x22d   : > { %v814_v57 = vcvt.f32.s32 %v813_v49  ;;  %vm1110_vm2 = vcmp.eq.s32.totalorder %v3511_v13, %v3889_v19  ;;  %vm1111_vm3 = vcmp.eq.s32.totalorder %v3517_v18, %v3889_v19 }
 0x22e   : > { %v3897_v42 = vsel %vm1110_vm2, 2139095039, %v3511_v13  ;;  %v3900_v17 = vsel %vm1111_vm3, 2139095039, %v3517_v18 }
 0x22f   : > { %v3902_v25 = vadd.s32 %v816_v39, %v814_v57  ;;  %vm1202_vm4 = vcmp.lt.s32.totalorder %v3897_v42, %v3900_v17 }
 0x230   : > { %v829_v4 = vpop.xlane.xlu0 %828  ;;  %v3908_v28 = vsel %vm1202_vm4, %v3897_v42, %v3900_v17 }
 0x231   : > { %v830_v60 = vcvt.f32.s32 %v829_v4  ;;  %v1205_v13 = vshra.s32 %v3908_v28, 16  ;;  %vm1112_vm5 = vcmp.eq.s32.totalorder %v3534_v38, %v3902_v25  ;;  %vm1113_vm6 = vcmp.eq.s32.totalorder %v3541_v31, %v3902_v25 }
 0x232   : > { %v3921_v41 = vsel %vm1112_vm5, 2139095039, %v3534_v38  ;;  %v3924_v21 = vsel %vm1113_vm6, 2139095039, %v3541_v31  ;;  %v880_v4 = vshll.u32 %v879_v44, 16 }
 0x233   : > { %v3916_v18 = vadd.s32 %v832_v23, %v830_v60  ;;  %v3918_v3 = vcvt.s32.f32 %v1205_v13  ;;  %vm1218_vm7 = vcmp.lt.s32.totalorder %v3921_v41, %v3924_v21 }
 0x234   : > { %v845_v47 = vpop.xlane.xlu1 %844  ;;  %v3938_v31 = vsel %vm1218_vm7, %v3921_v41, %v3924_v21 }
 0x235   : > { %v846_v20 = vcvt.f32.s32 %v845_v47  ;;  %1208 = vmin.xlane.f32.xlu0 %v3918_v3  ;;  %vm1114_vm8 = vcmp.eq.s32.totalorder %v3554_v61, %v3916_v18  ;;  %vm1115_vm9 = vcmp.eq.s32.totalorder %v3561_v26, %v3916_v18  ;;  %v1221_v48 = vshra.s32 %v3938_v31, 16 }
 0x236   : > { %v3941_v32 = vsel %vm1114_vm8, 2139095039, %v3554_v61  ;;  %v3945_v5 = vsel %vm1115_vm9, 2139095039, %v3561_v26  ;;  %v768_v47 = vshll.u32 %v767_v35, 16 }
 0x237   : > { %v3934_v38 = vadd.s32 %v848_v11, %v846_v20  ;;  %v3948_v15 = vcvt.s32.f32 %v1221_v48  ;;  %vm1234_vm10 = vcmp.lt.s32.totalorder %v3941_v32, %v3945_v5  ;;  %v895_v20 = vcvt.f32.s32 %v3846_v50 }
 0x238   : > { %v861_v59 = vpop.xlane.xlu0 %860  ;;  %v3960_v26 = vsel %vm1234_vm10, %v3941_v32, %v3945_v5 }
 0x239   : > { %v862_v33 = vcvt.f32.s32 %v861_v59  ;;  %vm1116_vm11 = vcmp.eq.s32.totalorder %v3574_v16, %v3934_v38  ;;  %vm1117_vm12 = vcmp.eq.s32.totalorder %v3581_v27, %v3934_v38  ;;  %1224 = vmin.xlane.f32.xlu1 %v3948_v15  ;;  %v1237_v39 = vshra.s32 %v3960_v26, 16 }
 0x23a   : > { %v3963_v29 = vsel %vm1116_vm11, 2139095039, %v3574_v16  ;;  %v3968_v49 = vsel %vm1117_vm12, 2139095039, %v3581_v27  ;;  %v896_v50 = vshll.u32 %v895_v20, 16 }
 0x23b   : > { %v3956_v61 = vadd.s32 %v864_v10, %v862_v33  ;;  %6035 = vst [vmem:[#allocation19_spill] sm:$0xff] %v3963_v29  ;;  %6036 = vst [vmem:[#allocation20_spill] sm:$0xff] %v3968_v49  ;;  %v3971_v23 = vcvt.s32.f32 %v1237_v39  ;;  %vm1250_vm13 = vcmp.lt.s32.totalorder %v3963_v29, %v3968_v49 }
 0x23c   : > { %v877_v55 = vpop.xlane.xlu1 %876  ;;  %v765_v40 = vpop.xlane.xlu0 %764  ;;  %v3979_v52 = vsel %vm1250_vm13, %v3963_v29, %v3968_v49 }
 0x23d   : > { %v878_v57 = vcvt.f32.s32 %v877_v55  ;;  %vm1118_vm14 = vcmp.eq.s32.totalorder %v3598_v51, %v3956_v61  ;;  %v766_v16 = vcvt.f32.s32 %v765_v40  ;;  %vm1119_vm15 = vcmp.eq.s32.totalorder %v3605_v46, %v3956_v61  ;;  %1240 = vmin.xlane.f32.xlu0 %v3971_v23 }
 0x23e   : > { %v1253_v12 = vshra.s32 %v3979_v52, 16  ;;  %v3988_v60 = vsel %vm1118_vm14, 2139095039, %v3598_v51  ;;  %v3991_v13 = vsel %vm1119_vm15, 2139095039, %v3605_v46  ;;  %v911_v55 = vcvt.f32.s32 %v3853_v0 }
 0x23f   : > { %v3983_v27 = vadd.s32 %v880_v4, %v878_v57  ;;  %6037 = vst [vmem:[#allocation21_spill] sm:$0xff] %v3988_v60  ;;  %6038 = vst [vmem:[#allocation22_spill] sm:$0xff] %v3991_v13  ;;  %v3997_v10 = vadd.s32 %v768_v47, %v766_v16  ;;  %vm1266_vm0 = vcmp.lt.s32.totalorder %v3988_v60, %v3991_v13  ;;  %v927_v40 = vcvt.f32.s32 %v3858_v7 }
 0x240   : > { %v781_v11 = vpop.xlane.xlu1 %780  ;;  %v893_v59 = vpop.xlane.xlu0 %892  ;;  %v3995_v48 = vcvt.s32.f32 %v1253_v12  ;;  %v4004_v51 = vsel %vm1266_vm0, %v3988_v60, %v3991_v13  ;;  %v912_v12 = vshll.u32 %v911_v55, 16 }
 0x241   : > { %v782_v44 = vcvt.f32.s32 %v781_v11  ;;  %vm1120_vm1 = vcmp.eq.s32.totalorder %v3625_v54, %v3983_v27  ;;  %vm1121_vm2 = vcmp.eq.s32.totalorder %v3632_v14, %v3983_v27  ;;  %v894_v46 = vcvt.f32.s32 %v893_v59  ;;  %v6043_v59 = vld [vmem:[#allocation10_spill] sm:$0xff] }
 0x242   : > { %1256 = vmin.xlane.f32.xlu1 %v3995_v48  ;;  %v1269_v33 = vshra.s32 %v4004_v51, 16  ;;  %v4014_v39 = vsel %vm1120_vm1, 2139095039, %v3625_v54  ;;  %v4017_v35 = vsel %vm1121_vm2, 2139095039, %v3632_v14  ;;  %vm1106_vm4 = vcmp.eq.s32.totalorder %v3524_v24, %v3997_v10 }
 0x243   : > { %6039 = vst [vmem:[#allocation23_spill] sm:$0xff] %v4014_v39  ;;  %6040 = vst [vmem:[#allocation24_spill] sm:$0xff] %v4017_v35  ;;  %v4019_v57 = vadd.s32 %v784_v53, %v782_v44  ;;  %vm1282_vm3 = vcmp.lt.s32.totalorder %v4014_v39, %v4017_v35  ;;  %v4027_v0 = vadd.s32 %v896_v50, %v894_v46  ;;  %v4037_v7 = vsel %vm1106_vm4, 2139095039, %v3524_v24  ;;  %v6044_v50 = vld [vmem:[#allocation11_spill] sm:$0xff] }
 0x244   : > { %v909_v4 = vpop.xlane.xlu1 %908  ;;  %v4021_v16 = vcvt.s32.f32 %v1269_v33  ;;  %v4032_v14 = vsel %vm1282_vm3, %v4014_v39, %v4017_v35  ;;  %vm1107_vm5 = vcmp.eq.s32.totalorder %v3528_v30, %v3997_v10  ;;  %6041 = vst [vmem:[#allocation25_spill] sm:$0xff] %v4037_v7  ;;  %v928_v20 = vshll.u32 %v927_v40, 16 }
 0x245   : > { %v910_v47 = vcvt.f32.s32 %v909_v4  ;;  %v1285_v11 = vshra.s32 %v4032_v14, 16  ;;  %v4041_v62 = vsel %vm1107_vm5, 2139095039, %v3528_v30  ;;  %vm1108_vm7 = vcmp.eq.s32.totalorder %v3586_v36, %v4019_v57 }
 0x246   : > { %1272 = vmin.xlane.f32.xlu0 %v4021_v16  ;;  %6042 = vst [vmem:[#allocation26_spill] sm:$0xff] %v4041_v62  ;;  %vm1170_vm6 = vcmp.lt.s32.totalorder %v4037_v7, %v4041_v62  ;;  %vm1109_vm8 = vcmp.eq.s32.totalorder %v6043_v59, %v4019_v57  ;;  %v943_v24 = vcvt.f32.s32 %v3863_v6  ;;  %vm1122_vm9 = vcmp.eq.s32.totalorder %v6044_v50, %v4027_v0 }
 0x247   : > { %v4050_v46 = vcvt.s32.f32 %v1285_v11  ;;  %v959_v30 = vcvt.f32.s32 %v3868_v22  ;;  %v4057_v33 = vsel %vm1170_vm6, %v4037_v7, %v4041_v62  ;;  %v4060_v55 = vsel %vm1108_vm7, 2139095039, %v3586_v36  ;;  %v6047_v22 = vld [vmem:[#allocation12_spill] sm:$0xff] }
 0x248   : > { %v925_v54 = vpop.xlane.xlu0 %924  ;;  %6045 = vst [vmem:[#allocation10_spill] sm:$0xff] %v4060_v55  ;;  %v4063_v40 = vsel %vm1109_vm8, 2139095039, %v6043_v59  ;;  %v4065_v6 = vadd.s32 %v912_v12, %v910_v47  ;;  %v1173_v4 = vshra.s32 %v4057_v33, 16  ;;  %vm1123_vm11 = vcmp.eq.s32.totalorder %v6047_v22, %v4027_v0 }
 0x249   : > { %v926_v44 = vcvt.f32.s32 %v925_v54  ;;  %6046 = vst [vmem:[#allocation11_spill] sm:$0xff] %v4063_v40  ;;  %1288 = vmin.xlane.f32.xlu1 %v4050_v46  ;;  %vm1186_vm10 = vcmp.lt.s32.totalorder %v4060_v55, %v4063_v40  ;;  %v4078_v11 = vsel %vm1122_vm9, 2139095039, %v6044_v50  ;;  %v4081_v12 = vsel %vm1123_vm11, 2139095039, %v6047_v22 }
 0x24a   : > { %v4075_v36 = vsel %vm1186_vm10, %v4060_v55, %v4063_v40  ;;  %6048 = vst [vmem:[#allocation12_spill] sm:$0xff] %v4078_v11  ;;  %6049 = vst [vmem:[#allocation27_spill] sm:$0xff] %v4081_v12  ;;  %v4085_v62 = vcvt.s32.f32 %v1173_v4  ;;  %vm1298_vm12 = vcmp.lt.s32.totalorder %v4078_v11, %v4081_v12  ;;  %v6051_v4 = vld [vmem:[#allocation14_spill] sm:$0xff]  ;;  %v960_v55 = vshll.u32 %v959_v30, 16  ;;  %v6054_v30 = vld [vmem:[#allocation15_spill] sm:$0xff] }
 0x24b   : > { %v4083_v59 = vadd.s32 %v928_v20, %v926_v44  ;;  %v1189_v7 = vshra.s32 %v4075_v36, 16  ;;  %v4092_v40 = vsel %vm1298_vm12, %v4078_v11, %v4081_v12  ;;  %v6050_v44 = vld [vmem:[#allocation13_spill] sm:$0xff]  ;;  %vm1125_vm14 = vcmp.eq.s32.totalorder %v6051_v4, %v4065_v6 }
 0x24c   : > { %v941_v53 = vpop.xlane.xlu1 %940  ;;  %1176 = vmin.xlane.f32.xlu0 %v4085_v62  ;;  %v1301_v20 = vshra.s32 %v4092_v40, 16  ;;  %vm1124_vm13 = vcmp.eq.s32.totalorder %v6050_v44, %v4065_v6  ;;  %v991_v39 = vcvt.f32.s32 %v3878_v43 }
 0x24d   : > { %v942_v54 = vcvt.f32.s32 %v941_v53  ;;  %v944_v53 = vshll.u32 %v943_v24, 16  ;;  %v4095_v22 = vcvt.s32.f32 %v1189_v7  ;;  %v4105_v24 = vsel %vm1124_vm13, 2139095039, %v6050_v44 }
 0x24e   : > { %6052 = vst [vmem:[#allocation13_spill] sm:$0xff] %v4105_v24  ;;  %v975_v7 = vcvt.f32.s32 %v3873_v2  ;;  %v4112_v11 = vcvt.s32.f32 %v1301_v20  ;;  %vm1126_vm0 = vcmp.eq.s32.totalorder %v6054_v30, %v4083_v59  ;;  %v6055_v20 = vld [vmem:[#allocation16_spill] sm:$0xff] }
 0x24f   : > { %v4102_v35 = vadd.s32 %v944_v53, %v942_v54  ;;  %1192 = vmin.xlane.f32.xlu1 %v4095_v22  ;;  %vm1127_vm1 = vcmp.eq.s32.totalorder %v6055_v20, %v4083_v59 }
 0x250   : > { %v957_v47 = vpop.xlane.xlu0 %956  ;;  %1304 = vmin.xlane.f32.xlu0 %v4112_v11  ;;  %v976_v13 = vshll.u32 %v975_v7, 16 }
 0x251   : > { %v958_v50 = vcvt.f32.s32 %v957_v47  ;;  %v4108_v47 = vsel %vm1125_vm14, 2139095039, %v6051_v4  ;;  %v4129_v4 = vsel %vm1126_vm0, 2139095039, %v6054_v30  ;;  %v1007_v30 = vcvt.f32.s32 %v3883_v34 }
 0x252   : > { %6053 = vst [vmem:[#allocation14_spill] sm:$0xff] %v4108_v47  ;;  %vm1314_vm15 = vcmp.lt.s32.totalorder %v4105_v24, %v4108_v47  ;;  %6056 = vst [vmem:[#allocation15_spill] sm:$0xff] %v4129_v4  ;;  %v992_v34 = vshll.u32 %v991_v39, 16 }
 0x253   : > { %v4118_v54 = vadd.s32 %v960_v55, %v958_v50  ;;  %v4122_v53 = vsel %vm1314_vm15, %v4105_v24, %v4108_v47  ;;  %v4133_v55 = vsel %vm1127_vm1, 2139095039, %v6055_v20  ;;  %v6058_v47 = vld [vmem:[#allocation17_spill] sm:$0xff]  ;;  %v6059_v24 = vld [vmem:[#allocation18_spill] sm:$0xff] }
 0x254   : > { %v973_v12 = vpop.xlane.xlu1 %972  ;;  %v1317_v2 = vshra.s32 %v4122_v53, 16  ;;  %6057 = vst [vmem:[#allocation16_spill] sm:$0xff] %v4133_v55  ;;  %vm1128_vm2 = vcmp.eq.s32.totalorder %v6058_v47, %v4102_v35  ;;  %vm1129_vm3 = vcmp.eq.s32.totalorder %v6059_v24, %v4102_v35  ;;  %vm1330_vm4 = vcmp.lt.s32.totalorder %v4129_v4, %v4133_v55 }
 0x255   : > { %v974_v44 = vcvt.f32.s32 %v973_v12  ;;  %v4146_v43 = vsel %vm1330_vm4, %v4129_v4, %v4133_v55  ;;  %v4149_v60 = vsel %vm1128_vm2, 2139095039, %v6058_v47  ;;  %vm1130_vm5 = vcmp.eq.s32.totalorder %v3733_v45, %v4118_v54 }
 0x256   : > { %v4139_v12 = vcvt.s32.f32 %v1317_v2  ;;  %6060 = vst [vmem:[#allocation17_spill] sm:$0xff] %v4149_v60  ;;  %v1333_v7 = vshra.s32 %v4146_v43, 16  ;;  %v4156_v2 = vsel %vm1129_vm3, 2139095039, %v6059_v24  ;;  %vm1131_vm7 = vcmp.eq.s32.totalorder %v3740_v63, %v4118_v54 }
 0x257   : > { %v4152_v49 = vadd.s32 %v976_v13, %v974_v44  ;;  %6061 = vst [vmem:[#allocation18_spill] sm:$0xff] %v4156_v2  ;;  %vm1346_vm6 = vcmp.lt.s32.totalorder %v4149_v60, %v4156_v2  ;;  %v4165_v47 = vsel %vm1130_vm5, 2139095039, %v3733_v45  ;;  %v1008_v55 = vshll.u32 %v1007_v30, 16 }
 0x258   : > { %v989_v50 = vpop.xlane.xlu0 %988  ;;  %1320 = vmin.xlane.f32.xlu1 %v4139_v12  ;;  %6062 = vst [vmem:[#allocation28_spill] sm:$0xff] %v4165_v47  ;;  %v4167_v13 = vcvt.s32.f32 %v1333_v7  ;;  %v4171_v24 = vsel %vm1346_vm6, %v4149_v60, %v4156_v2  ;;  %v4177_v29 = vsel %vm1131_vm7, 2139095039, %v3740_v63  ;;  %v1252_v60 = vand.u32 65535, %v3979_v52 }
 0x259   : > { %v990_v20 = vcvt.f32.s32 %v989_v50  ;;  %v1349_v39 = vshra.s32 %v4171_v24, 16  ;;  %6063 = vst [vmem:[#allocation29_spill] sm:$0xff] %v4177_v29  ;;  %vm1362_vm8 = vcmp.lt.s32.totalorder %v4165_v47, %v4177_v29  ;;  %vm1132_vm9 = vcmp.eq.s32.totalorder %v3751_v58, %v4152_v49 }
 0x25a   : > { %1336 = vmin.xlane.f32.xlu0 %v4167_v13  ;;  %vm1133_vm10 = vcmp.eq.s32.totalorder %v3758_v9, %v4152_v49  ;;  %v4195_v63 = vsel %vm1132_vm9, 2139095039, %v3751_v58 }
 0x25b   : > { %v4173_v4 = vadd.s32 %v992_v34, %v990_v20  ;;  %v4186_v45 = vcvt.s32.f32 %v1349_v39  ;;  %v4192_v20 = vsel %vm1362_vm8, %v4165_v47, %v4177_v29  ;;  %6064 = vst [vmem:[#allocation30_spill] sm:$0xff] %v4195_v63  ;;  %v4199_v34 = vsel %vm1133_vm10, 2139095039, %v3758_v9 }
 0x25c   : > { %v1005_v50 = vpop.xlane.xlu1 %1004  ;;  %v1365_v7 = vshra.s32 %v4192_v20, 16  ;;  %6065 = vst [vmem:[#allocation31_spill] sm:$0xff] %v4199_v34  ;;  %vm1378_vm11 = vcmp.lt.s32.totalorder %v4195_v63, %v4199_v34  ;;  %v1236_v47 = vand.u32 65535, %v3960_v26 }
 0x25d   : > { %v1006_v44 = vcvt.f32.s32 %v1005_v50  ;;  %1352 = vmin.xlane.f32.xlu1 %v4186_v45  ;;  %vm1134_vm12 = vcmp.eq.s32.totalorder %v3767_v37, %v4173_v4  ;;  %vm1135_vm13 = vcmp.eq.s32.totalorder %v3774_v56, %v4173_v4  ;;  %v4212_v58 = vsel %vm1378_vm11, %v4195_v63, %v4199_v34 }
 0x25e   : > { %v4215_v9 = vsel %vm1134_vm12, 2139095039, %v3767_v37  ;;  %v1381_v50 = vshra.s32 %v4212_v58, 16 }
 0x25f   : > { %v4188_v30 = vadd.s32 %v1008_v55, %v1006_v44  ;;  %v4208_v55 = vcvt.s32.f32 %v1365_v7  ;;  %6066 = vst [vmem:[#allocation32_spill] sm:$0xff] %v4215_v9  ;;  %v4219_v44 = vsel %vm1135_vm13, 2139095039, %v3774_v56 }
 0x260   : > { %6067 = vst [vmem:[#allocation33_spill] sm:$0xff] %v4219_v44  ;;  %vm1394_vm0 = vcmp.lt.s32.totalorder %v4215_v9, %v4219_v44  ;;  %v4234_v7 = vcvt.s32.f32 %v1381_v50 }
 0x261   : > { %vm1136_vm14 = vcmp.eq.s32.totalorder %v3783_v8, %v4188_v30  ;;  %vm1137_vm15 = vcmp.eq.s32.totalorder %v3790_v1, %v4188_v30  ;;  %1368 = vmin.xlane.f32.xlu0 %v4208_v55  ;;  %v4238_v56 = vsel %vm1394_vm0, %v4215_v9, %v4219_v44  ;;  %v1204_v44 = vand.u32 65535, %v3908_v28 }
 0x262   : > { %v4229_v39 = vsel %vm1136_vm14, 2139095039, %v3783_v8  ;;  %v4232_v37 = vsel %vm1137_vm15, 2139095039, %v3790_v1  ;;  %v1397_v34 = vshra.s32 %v4238_v56, 16  ;;  %1384 = vmin.xlane.f32.xlu1 %v4234_v7 }
 0x263   : > { %6068 = vst [vmem:[#allocation34_spill] sm:$0xff] %v4229_v39  ;;  %6069 = vst [vmem:[#allocation35_spill] sm:$0xff] %v4232_v37  ;;  %vm1410_vm1 = vcmp.lt.s32.totalorder %v4229_v39, %v4232_v37  ;;  %v1206_v29 = vcvt.s32.f32 %v1204_v44  ;;  %v1238_v44 = vcvt.s32.f32 %v1236_v47 }
 0x264   : > { %v4245_v63 = vsel %vm1410_vm1, %v4229_v39, %v4232_v37  ;;  %v4249_v1 = vcvt.s32.f32 %v1397_v34  ;;  %v1220_v39 = vand.u32 65535, %v3938_v31 }
 0x265   : > { %v1413_v8 = vshra.s32 %v4245_v63, 16 }
 0x266   : > { %1400 = vmin.xlane.f32.xlu0 %v4249_v1 }
 0x267   : > { %v4251_v50 = vcvt.s32.f32 %v1413_v8  ;;  %v1222_v8 = vcvt.s32.f32 %v1220_v39 }
 0x269   : > { %1416 = vmin.xlane.f32.xlu1 %v4251_v50 }
 0x2c2   : > { %v4256_v9 = vpop.xlane.xlu0 %1208 }
 0x2c3   : > { %vm1210_vm2 = vcmp.eq.f32.partialorder %v3918_v3, %v4256_v9 }
 0x2c4   : > { %v1211_v37 = vsel %vm1210_vm2, %v1206_v29, inf  ;;  %v1254_v29 = vcvt.s32.f32 %v1252_v60 }
 0x2c5   : > { %1212 = vmin.xlane.f32.xlu0 %v1211_v37  ;;  %v1172_v37 = vand.u32 65535, %v4057_v33 }
 0x2c6   : > { %v4261_v34 = vpop.xlane.xlu1 %1224 }
 0x2c7   : > { %vm1226_vm3 = vcmp.eq.f32.partialorder %v3948_v15, %v4261_v34  ;;  %v1268_v15 = vand.u32 65535, %v4004_v51  ;;  %v1188_v51 = vand.u32 65535, %v4075_v36 }
 0x2c8   : > { %v1227_v2 = vsel %vm1226_vm3, %v1222_v8, inf }
 0x2c9   : > { %1228 = vmin.xlane.f32.xlu1 %v1227_v2  ;;  %v1270_v47 = vcvt.s32.f32 %v1268_v15 }
 0x2ca   : > { %v4266_v28 = vpop.xlane.xlu0 %1240 }
 0x2cb   : > { %vm1242_vm4 = vcmp.eq.f32.partialorder %v3971_v23, %v4266_v28  ;;  %v1284_v23 = vand.u32 65535, %v4032_v14 }
 0x2cc   : > { %v1243_v3 = vsel %vm1242_vm4, %v1238_v44, inf  ;;  %v1174_v44 = vcvt.s32.f32 %v1172_v37 }
 0x2cd   : > { %1244 = vmin.xlane.f32.xlu0 %v1243_v3  ;;  %v1286_v60 = vcvt.s32.f32 %v1284_v23  ;;  %v1348_v23 = vand.u32 65535, %v4171_v24 }
 0x2cf   : > { %v4271_v31 = vpop.xlane.xlu1 %1256 }
 0x2d0   : > { %vm1258_vm5 = vcmp.eq.f32.partialorder %v3995_v48, %v4271_v31 }
 0x2d1   : > { %v1259_v26 = vsel %vm1258_vm5, %v1254_v29, inf  ;;  %v1190_v29 = vcvt.s32.f32 %v1188_v51 }
 0x2d2   : > { %1260 = vmin.xlane.f32.xlu1 %v1259_v26  ;;  %v1316_v26 = vand.u32 65535, %v4122_v53 }
 0x2d3   : > { %v4276_v2 = vpop.xlane.xlu0 %1272 }
 0x2d4   : > { %vm1274_vm6 = vcmp.eq.f32.partialorder %v4021_v16, %v4276_v2  ;;  %v1300_v16 = vand.u32 65535, %v4092_v40  ;;  %v1318_v15 = vcvt.s32.f32 %v1316_v26  ;;  %v1030_v26 = vand.u32 4294967040, %v3916_v18 }
 0x2d5   : > { %v1275_v52 = vsel %vm1274_vm6, %v1270_v47, inf  ;;  %v1332_v47 = vand.u32 65535, %v4146_v43  ;;  %v1350_v43 = vcvt.s32.f32 %v1348_v23 }
 0x2d6   : > { %1276 = vmin.xlane.f32.xlu0 %v1275_v52  ;;  %v4281_v39 = vpop.xlane.xlu1 %1288  ;;  %v1302_v36 = vcvt.s32.f32 %v1300_v16  ;;  %v1062_v23 = vadd.f32 1e-08, %v1030_v26  ;;  %v1040_v26 = vand.u32 4294967040, %v4173_v4 }
 0x2d7   : > { %vm1290_vm7 = vcmp.eq.f32.partialorder %v4050_v46, %v4281_v39  ;;  %v1334_v53 = vcvt.s32.f32 %v1332_v47 }
 0x2d8   : > { %v1291_v48 = vsel %vm1290_vm7, %v1286_v60, inf  ;;  %v1364_v60 = vand.u32 65535, %v4192_v20  ;;  %v1396_v20 = vand.u32 65535, %v4238_v56 }
 0x2d9   : > { %1292 = vmin.xlane.f32.xlu1 %v1291_v48  ;;  %v4287_v8 = vpop.xlane.xlu0 %1176  ;;  %v1380_v48 = vand.u32 65535, %v4212_v58 }
 0x2da   : > { %vm1178_vm8 = vcmp.eq.f32.partialorder %v4085_v62, %v4287_v8  ;;  %v1366_v51 = vcvt.s32.f32 %v1364_v60 }
 0x2db   : > { %v1179_v14 = vsel %vm1178_vm8, %v1174_v44, inf  ;;  %v1382_v16 = vcvt.s32.f32 %v1380_v48 }
 0x2dc   : > { %v4292_v3 = vpop.xlane.xlu1 %1192  ;;  %1180 = vmin.xlane.f32.xlu0 %v1179_v14  ;;  %v1412_v14 = vand.u32 65535, %v4245_v63 }
 0x2dd   : > { %vm1194_vm9 = vcmp.eq.f32.partialorder %v4095_v22, %v4292_v3  ;;  %v4296_v46 = vpop.xlane.xlu0 %1304 }
 0x2de   : > { %v1195_v33 = vsel %vm1194_vm9, %v1190_v29, inf  ;;  %vm1306_vm10 = vcmp.eq.f32.partialorder %v4112_v11, %v4296_v46  ;;  %v1398_v29 = vcvt.s32.f32 %v1396_v20  ;;  %v1414_v56 = vcvt.s32.f32 %v1412_v14 }
 0x2df   : > { %1196 = vmin.xlane.f32.xlu1 %v1195_v33  ;;  %v1307_v40 = vsel %vm1306_vm10, %v1302_v36, inf  ;;  %v1029_v36 = vand.u32 4294967040, %v3902_v25  ;;  %v1036_v20 = vand.u32 4294967040, %v4083_v59  ;;  %v1012_v14 = vand.u32 255, %v3889_v19 }
 0x2e0   : > { %1308 = vmin.xlane.f32.xlu0 %v1307_v40  ;;  %v1026_v40 = vand.u32 4294967040, %v3997_v10 }
 0x2e1   : > { %v1061_v47 = vadd.f32 1e-08, %v1029_v36  ;;  %v1068_v36 = vadd.f32 1e-08, %v1036_v20  ;;  %v1017_v20 = vand.u32 255, %v3983_v27 }
 0x2e5   : > { %v4301_v62 = vpop.xlane.xlu1 %1320 }
 0x2e6   : > { %vm1322_vm11 = vcmp.eq.f32.partialorder %v4139_v12, %v4301_v62 }
 0x2e7   : > { %v1323_v22 = vsel %vm1322_vm11, %v1318_v15, inf  ;;  %v4307_v52 = vpop.xlane.xlu0 %1336 }
 0x2e8   : > { %1324 = vmin.xlane.f32.xlu1 %v1323_v22  ;;  %vm1338_vm12 = vcmp.eq.f32.partialorder %v4167_v13, %v4307_v52  ;;  %v1031_v22 = vand.u32 4294967040, %v3934_v38 }
 0x2e9   : > { %v1339_v11 = vsel %vm1338_vm12, %v1334_v53, inf  ;;  %v1033_v53 = vand.u32 4294967040, %v3983_v27 }
 0x2ea   : > { %1340 = vmin.xlane.f32.xlu0 %v1339_v11  ;;  %v4312_v37 = vpop.xlane.xlu1 %1352  ;;  %v1058_v11 = vadd.f32 1e-08, %v1026_v40 }
 0x2eb   : > { %vm1354_vm13 = vcmp.eq.f32.partialorder %v4186_v45, %v4312_v37 }
 0x2ec   : > { %v1355_v12 = vsel %vm1354_vm13, %v1350_v43, inf  ;;  %v1063_v43 = vadd.f32 1e-08, %v1031_v22 }
 0x2ed   : > { %1356 = vmin.xlane.f32.xlu1 %v1355_v12  ;;  %v1034_v12 = vand.u32 4294967040, %v4027_v0 }
 0x2ee   : > { %v4317_v24 = vpop.xlane.xlu0 %1368 }
 0x2ef   : > { %vm1370_vm14 = vcmp.eq.f32.partialorder %v4208_v55, %v4317_v24  ;;  %v4322_v44 = vpop.xlane.xlu1 %1384 }
 0x2f0   : > { %v1371_v13 = vsel %vm1370_vm14, %v1366_v51, inf  ;;  %vm1386_vm15 = vcmp.eq.f32.partialorder %v4234_v7, %v4322_v44  ;;  %v1028_v7 = vand.u32 4294967040, %v3889_v19  ;;  %v1035_v51 = vand.u32 4294967040, %v4065_v6  ;;  %v6070_v19 = vld [vmem:[#allocation9_spill] sm:$0xff] }
 0x2f1   : > { %1372 = vmin.xlane.f32.xlu0 %v1371_v13  ;;  %v1387_v45 = vsel %vm1386_vm15, %v1382_v16, inf  ;;  %v1065_v13 = vadd.f32 1e-08, %v1033_v53  ;;  %v1037_v16 = vand.u32 4294967040, %v4102_v35  ;;  %vm4355_vm2 = vcmp.eq.s32.totalorder %v6070_v19, %v1012_v14 }
 0x2f2   : > { %1388 = vmin.xlane.f32.xlu1 %v1387_v45  ;;  %v1060_v15 = vadd.f32 1e-08, %v1028_v7  ;;  %v1066_v45 = vadd.f32 1e-08, %v1034_v12  ;;  %v1039_v7 = vand.u32 4294967040, %v4152_v49  ;;  %v1015_v53 = vand.u32 255, %v3934_v38 }
 0x2f3   : > { %v4327_v58 = vpop.xlane.xlu0 %1400  ;;  %v1069_v40 = vadd.f32 1e-08, %v1037_v16  ;;  %v1016_v12 = vand.u32 255, %v3956_v61  ;;  %v1011_v38 = vand.u32 255, %v4019_v57  ;;  %vm4466_vm13 = vcmp.eq.s32.totalorder %v6070_v19, %v1017_v20 }
 0x2f4   : > { %vm1402_vm0 = vcmp.eq.f32.partialorder %v4249_v1, %v4327_v58  ;;  %v1027_v1 = vand.u32 4294967040, %v4019_v57  ;;  %3054 = vrcp.f32 %v1060_v15  ;;  %v1041_v15 = vand.u32 4294967040, %v4188_v30 }
 0x2f5   : > { %v1403_v33 = vsel %vm1402_vm0, %v1398_v29, inf  ;;  %3056 = vrcp.f32 %v1061_v47  ;;  %v1038_v29 = vand.u32 4294967040, %v4118_v54  ;;  %v6073_v47 = vld [vmem:[#allocation8_spill] sm:$0xff]  ;;  %vm4434_vm9 = vcmp.eq.s32.totalorder %v6070_v19, %v1015_v53 }
 0x2f6   : > { %v4331_v55 = vpop.xlane.xlu1 %1416  ;;  %1404 = vmin.xlane.f32.xlu0 %v1403_v33  ;;  %v1059_v60 = vadd.f32 1e-08, %v1027_v1  ;;  %3058 = vrcp.f32 %v1062_v23  ;;  %v1014_v33 = vand.u32 255, %v3916_v18  ;;  %vm4360_vm3 = vcmp.eq.s32.totalorder %v6073_v47, %v1012_v14  ;;  %v6206_v23 = vld [vmem:[#allocation26_spill] sm:$0xff] }
 0x2f7   : > { %vm1418_vm1 = vcmp.eq.f32.partialorder %v4251_v50, %v4331_v55  ;;  %v1032_v50 = vand.u32 4294967040, %v3956_v61  ;;  %3060 = vrcp.f32 %v1058_v11  ;;  %v1070_v18 = vadd.f32 1e-08, %v1038_v29 }
 0x2f8   : > { %v1419_v63 = vsel %vm1418_vm1, %v1414_v56, inf  ;;  %3062 = vrcp.f32 %v1059_v60  ;;  %v1013_v56 = vand.u32 255, %v3902_v25  ;;  %v1071_v11 = vadd.f32 1e-08, %v1039_v7  ;;  %v6201_v25 = vld [vmem:[#allocation24_spill] sm:$0xff] }
 0x2f9   : > { %1420 = vmin.xlane.f32.xlu1 %v1419_v63  ;;  %v1064_v48 = vadd.f32 1e-08, %v1032_v50  ;;  %3064 = vrcp.f32 %v1063_v43  ;;  %v1067_v63 = vadd.f32 1e-08, %v1035_v51  ;;  %vm4378_vm6 = vcmp.eq.s32.totalorder %v6070_v19, %v1014_v33 }
 0x2fa   : > { %vm4365_vm4 = vcmp.eq.s32.totalorder %v6070_v19, %v1013_v56  ;;  %vm4370_vm5 = vcmp.eq.s32.totalorder %v6073_v47, %v1013_v56  ;;  %v1072_v51 = vadd.f32 1e-08, %v1040_v26  ;;  %v1073_v16 = vadd.f32 1e-08, %v1041_v15 }
 0x2fb   : > { %3066 = vrcp.f32 %v1064_v48  ;;  %v1010_v48 = vand.u32 255, %v3997_v10  ;;  %v1019_v29 = vand.u32 255, %v4065_v6  ;;  %vm4415_vm8 = vcmp.eq.s32.totalorder %v6073_v47, %v1011_v38 }
 0x2fc   : > { %3068 = vrcp.f32 %v1065_v13  ;;  %vm4448_vm10 = vcmp.eq.s32.totalorder %v6073_v47, %v1014_v33  ;;  %v1215_v7 = vcvt.f32.s32 %v4256_v9  ;;  %vm4456_vm11 = vcmp.eq.s32.totalorder %v6073_v47, %v1015_v53 }
 0x2fd   : > { %3070 = vrcp.f32 %v1066_v45  ;;  %v1018_v45 = vand.u32 255, %v4027_v0  ;;  %vm4405_vm7 = vcmp.eq.s32.totalorder %v6073_v47, %v1010_v48  ;;  %v6094_v15 = vmov 0 }
 0x2fe   : > { %v4374_v50 = vpop.eup %3054  ;;  %3072 = vrcp.f32 %v1067_v63  ;;  %v6095_v15 = vsel %vm4456_vm11, 4294967295, %v6094_v15  ;;  %vm4461_vm12 = vcmp.eq.s32.totalorder %v6070_v19, %v1016_v12  ;;  %v6100_v33 = vmov 0 }
 0x2ff   : > { %6080 = vst [vmem:[#allocation9_spill] sm:$0xff] %v4374_v50  ;;  %v4382_v43 = vpop.eup %3056  ;;  %3074 = vrcp.f32 %v1068_v36  ;;  %6096 = vst [vmem:[#allocation38_spill] sm:$0xff] %v6095_v15  ;;  %v6101_v33 = vsel %vm4466_vm13, 4294967295, %v6100_v33  ;;  %vm4487_vm14 = vcmp.eq.s32.totalorder %v6073_v47, %v1016_v12  ;;  %v6104_v61 = vmov 0 }
 0x300   : > { %6083 = vst [vmem:[#allocation8_spill] sm:$0xff] %v4382_v43  ;;  %v4386_v13 = vpop.eup %3058  ;;  %3076 = vrcp.f32 %v1069_v40  ;;  %6102 = vst [vmem:[#allocation40_spill] sm:$0xff] %v6101_v33  ;;  %v6105_v61 = vsel %vm4487_vm14, 4294967295, %v6104_v61  ;;  %vm4492_vm15 = vcmp.eq.s32.totalorder %v6073_v47, %v1017_v20  ;;  %v6107_v9 = vmov 0 }
 0x301   : > { %v4390_v14 = vpop.eup %3060  ;;  %3078 = vrcp.f32 %v1070_v18  ;;  %6106 = vst [vmem:[#allocation42_spill] sm:$0xff] %v6105_v61  ;;  %v6108_v9 = vsel %vm4492_vm15, 4294967295, %v6107_v9  ;;  %vm4497_vm0 = vcmp.eq.s32.totalorder %v6070_v19, %v1010_v48  ;;  %v6109_v53 = vmov 0 }
 0x302   : > { %v4395_v10 = vpop.eup %3062  ;;  %3080 = vrcp.f32 %v1071_v11  ;;  %v6097_v11 = vmov 0  ;;  %v6110_v53 = vsel %vm4497_vm0, 4294967295, %v6109_v53  ;;  %vm4502_vm1 = vcmp.eq.s32.totalorder %v6070_v19, %v1011_v38 }
 0x303   : > { %v4400_v57 = vpop.eup %3064  ;;  %3082 = vrcp.f32 %v1072_v51  ;;  %v6098_v11 = vsel %vm4461_vm12, 4294967295, %v6097_v11  ;;  %6111 = vst [vmem:[#allocation43_spill] sm:$0xff] %v6110_v53  ;;  %v6112_v63 = vmov 0  ;;  %v1216_v15 = vshll.u32 %v1215_v7, 16 }
 0x304   : > { %3084 = vrcp.f32 %v1073_v16  ;;  %v6090_v16 = vmov 0  ;;  %6099 = vst [vmem:[#allocation39_spill] sm:$0xff] %v6098_v11  ;;  %v6113_v63 = vsel %vm4502_vm1, 4294967295, %v6112_v63  ;;  %vm4523_vm13 = vcmp.eq.s32.totalorder %v6070_v19, %v1018_v45 }
 0x305   : > { %v4409_v36 = vpop.eup %3066  ;;  %v6091_v16 = vsel %vm4448_vm10, 4294967295, %v6090_v16  ;;  %6114 = vst [vmem:[#allocation44_spill] sm:$0xff] %v6113_v63  ;;  %v6117_v61 = vmov 0  ;;  %vm4528_vm14 = vcmp.eq.s32.totalorder %v6070_v19, %v1019_v29  ;;  %v6120_v33 = vmov 0 }
 0x306   : > { %v4422_v18 = vpop.eup %3068  ;;  %6092 = vst [vmem:[#allocation36_spill] sm:$0xff] %v6091_v16  ;;  %v6118_v61 = vsel %vm4523_vm13, 4294967295, %v6117_v61  ;;  %v6121_v33 = vsel %vm4528_vm14, 4294967295, %v6120_v33  ;;  %vm4541_vm1 = vcmp.eq.s32.totalorder %v6073_v47, %v1018_v45  ;;  %vm4546_vm0 = vcmp.eq.s32.totalorder %v6073_v47, %v1019_v29 }
 0x307   : > { %v4452_v0 = vpop.eup %3070  ;;  %6119 = vst [vmem:[#allocation47_spill] sm:$0xff] %v6118_v61  ;;  %6122 = vst [vmem:[#allocation48_spill] sm:$0xff] %v6121_v33  ;;  %v6127_v48 = vmov 0  ;;  %v6131_v7 = vand.u32 255, %v4083_v59  ;;  %v6132_v45 = vmov 0  ;;  %v6135_v29 = vand.u32 255, %v4102_v35 }
 0x308   : > { %6093 = vst [vmem:[#allocation37_spill] sm:$0xff] %v4452_v0  ;;  %v4470_v51 = vpop.eup %3072  ;;  %v6128_v48 = vsel %vm4546_vm0, 4294967295, %v6127_v48  ;;  %v6136_v33 = vmov 0  ;;  %v6141_v38 = vmov 0  ;;  %v6150_v61 = vand.u32 255, %v4152_v49  ;;  %v6273_v40 = vld [vmem:[#allocation40_spill] sm:$0xff] }
 0x309   : > { %6103 = vst [vmem:[#allocation41_spill] sm:$0xff] %v4470_v51  ;;  %v4484_v56 = vpop.eup %3074  ;;  %6129 = vst [vmem:[#allocation51_spill] sm:$0xff] %v6128_v48  ;;  %vm4560_vm14 = vcmp.eq.s32.totalorder %v6070_v19, %v6131_v7  ;;  %vm4567_vm13 = vcmp.eq.s32.totalorder %v6070_v19, %v6135_v29  ;;  %v6151_v59 = vmov 0  ;;  %v6259_v60 = vsel %vm4434_vm9, %v4400_v57, 0.0 }
 0x30a   : > { %v4506_v27 = vpop.eup %3076  ;;  %v6133_v45 = vsel %vm4560_vm14, 4294967295, %v6132_v45  ;;  %v6137_v33 = vsel %vm4567_vm13, 4294967295, %v6136_v33  ;;  %v6261_v6 = vsel %vm4415_vm8, %v4395_v10, 0.0 }
 0x30b   : > { %6115 = vst [vmem:[#allocation45_spill] sm:$0xff] %v4506_v27  ;;  %v4520_v11 = vpop.eup %3078  ;;  %6134 = vst [vmem:[#allocation53_spill] sm:$0xff] %v6133_v45  ;;  %v6144_v45 = vmov 0 }
 0x30c   : > { %6116 = vst [vmem:[#allocation46_spill] sm:$0xff] %v4520_v11  ;;  %v4532_v20 = vpop.eup %3080  ;;  %6138 = vst [vmem:[#allocation54_spill] sm:$0xff] %v6137_v33 }
 0x30d   : > { %6123 = vst [vmem:[#allocation49_spill] sm:$0xff] %v4532_v20  ;;  %v4550_v63 = vpop.eup %3082 }
 0x30e   : > { %6130 = vst [vmem:[#allocation52_spill] sm:$0xff] %v4550_v63  ;;  %v6247_v63 = vld [vmem:[#allocation35_spill] sm:$0xff] }
 0x352   : > { %v1213_v12 = vpop.xlane.xlu0 %1212 }
 0x353   : > { %v1214_v16 = vcvt.f32.s32 %v1213_v12  ;;  %v6124_v12 = vmov 0 }
 0x354   : > { %v6125_v12 = vsel %vm4541_vm1, 4294967295, %v6124_v12 }
 0x355   : > { %6126 = vst [vmem:[#allocation50_spill] sm:$0xff] %v6125_v12  ;;  %v4552_v53 = vadd.s32 %v1216_v15, %v1214_v16  ;;  %v4571_v15 = vpop.eup %3084  ;;  %v1231_v16 = vcvt.f32.s32 %v4261_v34  ;;  %v6140_v34 = vmov %v6131_v7  ;;  %v6143_v12 = vand.u32 255, %v4102_v35 }
 0x356   : > { %6139 = vst [vmem:[#allocation55_spill] sm:$0xff] %v4571_v15  ;;  %vm4591_vm0 = vcmp.eq.s32.totalorder %v6073_v47, %v6140_v34  ;;  %v1247_v34 = vcvt.f32.s32 %v4266_v28  ;;  %v1229_v51 = vpop.xlane.xlu1 %1228 }
 0x357   : > { %v1444_v29 = vand.u32 4294967040, %v4552_v53  ;;  %vm1526_vm1 = vcmp.eq.s32.totalorder %v3897_v42, %v4552_v53  ;;  %vm1527_vm15 = vcmp.eq.s32.totalorder %v3900_v17, %v4552_v53  ;;  %v6142_v38 = vsel %vm4591_vm0, 4294967295, %v6141_v38 }
 0x358   : > { %v1558_v7 = vsel %vm1526_vm1, 2139095039, %v3897_v42  ;;  %v1559_v33 = vsel %vm1527_vm15, 2139095039, %v3900_v17  ;;  %vm4600_vm13 = vcmp.eq.s32.totalorder %v6073_v47, %v6143_v12  ;;  %v6146_v42 = vand.u32 255, %v4118_v54 }
 0x359   : > { %v6145_v45 = vsel %vm4600_vm13, 4294967295, %v6144_v45  ;;  %v1476_v48 = vadd.f32 1e-08, %v1444_v29  ;;  %vm1618_vm14 = vcmp.lt.s32.totalorder %v1558_v7, %v1559_v33  ;;  %v6147_v17 = vmov 0 }
 0x35a   : > { %vm4611_vm15 = vcmp.eq.s32.totalorder %v6070_v19, %v6146_v42  ;;  %v1232_v35 = vshll.u32 %v1231_v16, 16  ;;  %v1230_v12 = vcvt.f32.s32 %v1229_v51  ;;  %v4615_v0 = vsel %vm1618_vm14, %v1558_v7, %v1559_v33 }
 0x35b   : > { %v6148_v17 = vsel %vm4611_vm15, 4294967295, %v6147_v17  ;;  %6149 = vst [vmem:[#allocation56_spill] sm:$0xff] %v4615_v0  ;;  %vm4620_vm1 = vcmp.eq.s32.totalorder %v6070_v19, %v6150_v61  ;;  %v1621_v28 = vshra.s32 %v4615_v0, 16  ;;  %3086 = vrcp.f32 %v1476_v48  ;;  %v1245_v48 = vpop.xlane.xlu0 %1244 }
 0x35c   : > { %v6152_v59 = vsel %vm4620_vm1, 4294967295, %v6151_v59  ;;  %v4634_v33 = vadd.s32 %v1232_v35, %v1230_v12  ;;  %v6153_v61 = vmov %v6146_v42  ;;  %v6154_v7 = vmov 0 }
 0x35d   : > { %vm4639_vm14 = vcmp.eq.s32.totalorder %v6073_v47, %v6153_v61  ;;  %v6157_v42 = vand.u32 255, %v4152_v49  ;;  %v6158_v29 = vmov 0  ;;  %v1248_v16 = vshll.u32 %v1247_v34, 16 }
 0x35e   : > { %v6155_v7 = vsel %vm4639_vm14, 4294967295, %v6154_v7  ;;  %v1263_v51 = vcvt.f32.s32 %v4271_v31  ;;  %v4651_v35 = vcvt.s32.f32 %v1621_v28  ;;  %v1445_v12 = vand.u32 4294967040, %v4634_v33 }
 0x35f   : > { %6156 = vst [vmem:[#allocation57_spill] sm:$0xff] %v6155_v7  ;;  %vm4646_vm13 = vcmp.eq.s32.totalorder %v6073_v47, %v6157_v42  ;;  %v1246_v61 = vcvt.f32.s32 %v1245_v48  ;;  %vm1528_vm1 = vcmp.eq.s32.totalorder %v3921_v41, %v4634_v33  ;;  %vm1529_vm15 = vcmp.eq.s32.totalorder %v3924_v21, %v4634_v33  ;;  %v1261_v0 = vpop.xlane.xlu1 %1260 }
 0x360   : > { %v6159_v29 = vsel %vm4646_vm13, 4294967295, %v6158_v29  ;;  %6161 = vst [vmem:[#allocation59_spill] sm:$0xff] %v4651_v35  ;;  %1624 = vmin.xlane.f32.xlu0 %v4651_v35  ;;  %v1560_v49 = vsel %vm1528_vm1, 2139095039, %v3921_v41  ;;  %v1561_v31 = vsel %vm1529_vm15, 2139095039, %v3924_v21  ;;  %v1279_v34 = vcvt.f32.s32 %v4276_v2 }
 0x361   : > { %6160 = vst [vmem:[#allocation58_spill] sm:$0xff] %v6159_v29  ;;  %v6162_v28 = vand.u32 255, %v4173_v4  ;;  %v6163_v42 = vmov 0  ;;  %v1477_v48 = vadd.f32 1e-08, %v1445_v12  ;;  %v4674_v54 = vadd.s32 %v1248_v16, %v1246_v61 }
 0x362   : > { %vm1634_vm0 = vcmp.lt.s32.totalorder %v1560_v49, %v1561_v31  ;;  %v6166_v35 = vand.u32 255, %v4188_v30  ;;  %v6167_v41 = vmov 0  ;;  %v1264_v21 = vshll.u32 %v1263_v51, 16 }
 0x363   : > { %vm4670_vm14 = vcmp.eq.s32.totalorder %v6070_v19, %v6162_v28  ;;  %v4684_v29 = vsel %vm1634_vm0, %v1560_v49, %v1561_v31  ;;  %v1295_v16 = vcvt.f32.s32 %v4281_v39  ;;  %v1183_v61 = vcvt.f32.s32 %v4287_v8 }
 0x364   : > { %v6164_v42 = vsel %vm4670_vm14, 4294967295, %v6163_v42  ;;  %vm4679_vm1 = vcmp.eq.s32.totalorder %v6070_v19, %v6166_v35  ;;  %6170 = vst [vmem:[#allocation62_spill] sm:$0xff] %v4684_v29  ;;  %3088 = vrcp.f32 %v1477_v48  ;;  %v1262_v28 = vcvt.f32.s32 %v1261_v0 }
 0x365   : > { %6165 = vst [vmem:[#allocation60_spill] sm:$0xff] %v6164_v42  ;;  %v6168_v41 = vsel %vm4679_vm1, 4294967295, %v6167_v41  ;;  %v1637_v35 = vshra.s32 %v4684_v29, 16  ;;  %vm1530_vm15 = vcmp.eq.s32.totalorder %v3941_v32, %v4674_v54  ;;  %vm1531_vm13 = vcmp.eq.s32.totalorder %v3945_v5, %v4674_v54 }
 0x366   : > { %6169 = vst [vmem:[#allocation61_spill] sm:$0xff] %v6168_v41  ;;  %v6171_v2 = vand.u32 255, %v4173_v4  ;;  %v6172_v51 = vmov 0  ;;  %v4703_v39 = vadd.s32 %v1264_v21, %v1262_v28  ;;  %v1562_v8 = vsel %vm1530_vm15, 2139095039, %v3941_v32  ;;  %v6179_v4 = vld [vmem:[#allocation20_spill] sm:$0xff] }
 0x367   : > { %v1563_v0 = vsel %vm1531_vm13, 2139095039, %v3945_v5  ;;  %v1428_v49 = vand.u32 255, %v4552_v53  ;;  %v4708_v31 = vcvt.s32.f32 %v1637_v35  ;;  %v1280_v21 = vshll.u32 %v1279_v34, 16  ;;  %v1277_v5 = vpop.xlane.xlu0 %1276  ;;  %v6178_v35 = vld [vmem:[#allocation19_spill] sm:$0xff] }
 0x368   : > { %vm4699_vm0 = vcmp.eq.s32.totalorder %v6073_v47, %v6171_v2  ;;  %vm1650_vm14 = vcmp.lt.s32.totalorder %v1562_v8, %v1563_v0  ;;  %v4716_v2 = vpop.eup %3086  ;;  %v1296_v28 = vshll.u32 %v1295_v16, 16  ;;  %v1184_v32 = vshll.u32 %v1183_v61, 16 }
 0x369   : > { %v6173_v51 = vsel %vm4699_vm0, 4294967295, %v6172_v51  ;;  %6175 = vst [vmem:[#allocation64_spill] sm:$0xff] %v4708_v31  ;;  %6176 = vst [vmem:[#allocation65_spill] sm:$0xff] %v4716_v2  ;;  %v4718_v12 = vsel %vm1650_vm14, %v1562_v8, %v1563_v0  ;;  %1640 = vmin.xlane.f32.xlu1 %v4708_v31  ;;  %vm1532_vm13 = vcmp.eq.s32.totalorder %v6178_v35, %v4703_v39  ;;  %v1429_v48 = vand.u32 255, %v4634_v33 }
 0x36a   : > { %6174 = vst [vmem:[#allocation63_spill] sm:$0xff] %v6173_v51  ;;  %6177 = vst [vmem:[#allocation66_spill] sm:$0xff] %v4718_v12  ;;  %v1653_v53 = vshra.s32 %v4718_v12, 16  ;;  %vm1533_vm15 = vcmp.eq.s32.totalorder %v6179_v4, %v4703_v39  ;;  %v1278_v29 = vcvt.f32.s32 %v1277_v5  ;;  %v1564_v34 = vsel %vm1532_vm13, 2139095039, %v6178_v35  ;;  %v6190_v35 = vld [vmem:[#allocation22_spill] sm:$0xff] }
 0x36b   : > { %v1565_v16 = vsel %vm1533_vm15, 2139095039, %v6179_v4  ;;  %vm2039_vm14 = vcmp.eq.s32.totalorder %v6070_v19, %v1428_v49  ;;  %v1199_v61 = vcvt.f32.s32 %v4292_v3  ;;  %v1311_v31 = vcvt.f32.s32 %v4296_v46 }
 0x36c   : > { %v4731_v8 = vcvt.s32.f32 %v1653_v53  ;;  %vm1666_vm0 = vcmp.lt.s32.totalorder %v1564_v34, %v1565_v16  ;;  %v2071_v0 = vsel %vm2039_vm14, %v4716_v2, 0.0  ;;  %v4735_v12 = vadd.s32 %v1280_v21, %v1278_v29  ;;  %v1293_v21 = vpop.xlane.xlu1 %1292 }
 0x36d   : > { %v4737_v51 = vsel %vm1666_vm0, %v1564_v34, %v1565_v16  ;;  %v6182_v33 = vsel %vm4355_vm2, %v4374_v50, 0.0  ;;  %v1327_v5 = vcvt.f32.s32 %v4301_v62  ;;  %vm4749_vm13 = vcmp.eq.s32.totalorder %v6070_v19, %v1429_v48  ;;  %v6189_v62 = vld [vmem:[#allocation21_spill] sm:$0xff] }
 0x36e   : > { %6180 = vst [vmem:[#allocation19_spill] sm:$0xff] %v4731_v8  ;;  %6181 = vst [vmem:[#allocation20_spill] sm:$0xff] %v4737_v51  ;;  %v4743_v4 = vadd.f32 %v2071_v0, %v6182_v33  ;;  %1656 = vmin.xlane.f32.xlu0 %v4731_v8  ;;  %v1669_v3 = vshra.s32 %v4737_v51, 16  ;;  %vm4754_vm0 = vcmp.eq.s32.totalorder %v6073_v47, %v1428_v49  ;;  %v4758_v1 = vpop.eup %3088  ;;  %v1446_v29 = vand.u32 4294967040, %v4674_v54 }
 0x36f   : > { %6188 = vst [vmem:[#allocation68_spill] sm:$0xff] %v4758_v1  ;;  %vm1534_vm2 = vcmp.eq.s32.totalorder %v6189_v62, %v4735_v12  ;;  %vm1535_vm15 = vcmp.eq.s32.totalorder %v6190_v35, %v4735_v12  ;;  %v2070_v34 = vsel %vm4754_vm0, %v4716_v2, 0.0  ;;  %v1294_v16 = vcvt.f32.s32 %v1293_v21 }
 0x370   : > { %6183 = vst [vmem:[#allocation67_spill] sm:$0xff] %v4743_v4  ;;  %v4768_v49 = vcvt.s32.f32 %v1669_v3  ;;  %v1566_v0 = vsel %vm1534_vm2, 2139095039, %v6189_v62  ;;  %v1567_v33 = vsel %vm1535_vm15, 2139095039, %v6190_v35  ;;  %v1200_v4 = vshll.u32 %v1199_v61, 16 }
 0x371   : > { %v1343_v8 = vcvt.f32.s32 %v4307_v52  ;;  %vm1682_vm14 = vcmp.lt.s32.totalorder %v1566_v0, %v1567_v33  ;;  %v2073_v51 = vsel %vm4749_vm13, %v4758_v1, 0.0  ;;  %v1312_v15 = vshll.u32 %v1311_v31, 16  ;;  %v1181_v52 = vpop.xlane.xlu0 %1180 }
 0x372   : > { %6191 = vst [vmem:[#allocation21_spill] sm:$0xff] %v4768_v49  ;;  %v4776_v41 = vadd.s32 %v1296_v28, %v1294_v16  ;;  %1672 = vmin.xlane.f32.xlu1 %v4768_v49  ;;  %v4779_v46 = vsel %vm1682_vm14, %v1566_v0, %v1567_v33  ;;  %v6193_v3 = vsel %vm4365_vm4, %v4382_v43, 0.0  ;;  %v1478_v61 = vadd.f32 1e-08, %v1446_v29 }
 0x373   : > { %6192 = vst [vmem:[#allocation22_spill] sm:$0xff] %v4779_v46  ;;  %v4785_v21 = vadd.f32 %v2073_v51, %v6193_v3  ;;  %v1685_v62 = vshra.s32 %v4779_v46, 16  ;;  %vm4789_vm0 = vcmp.eq.s32.totalorder %v6073_v47, %v1429_v48  ;;  %v6197_v31 = vsel %vm4360_vm3, %v4374_v50, 0.0  ;;  %v6199_v51 = vld [vmem:[#allocation23_spill] sm:$0xff]  ;;  %v1197_v48 = vpop.xlane.xlu1 %1196 }
 0x374   : > { %v4797_v28 = vadd.f32 %v2070_v34, %v6197_v31  ;;  %v1328_v22 = vshll.u32 %v1327_v5, 16  ;;  %v1182_v35 = vcvt.f32.s32 %v1181_v52  ;;  %vm1536_vm4 = vcmp.eq.s32.totalorder %v6199_v51, %v4776_v41 }
 0x375   : > { %6194 = vst [vmem:[#allocation69_spill] sm:$0xff] %v4785_v21  ;;  %v2072_v29 = vsel %vm4789_vm0, %v4758_v1, 0.0  ;;  %v4804_v16 = vshll.u32 %v1343_v8, 16  ;;  %v4806_v0 = vcvt.s32.f32 %v1685_v62  ;;  %vm1537_vm13 = vcmp.eq.s32.totalorder %v6201_v25, %v4776_v41  ;;  %v1309_v8 = vpop.xlane.xlu0 %1308 }
 0x376   : > { %6198 = vst [vmem:[#allocation70_spill] sm:$0xff] %v4797_v28  ;;  %v1568_v34 = vsel %vm1536_vm4, 2139095039, %v6199_v51  ;;  %v1359_v5 = vcvt.f32.s32 %v4312_v37  ;;  %v4812_v33 = vadd.s32 %v1184_v32, %v1182_v35  ;;  %v1198_v3 = vcvt.f32.s32 %v1197_v48  ;;  %v6205_v48 = vld [vmem:[#allocation25_spill] sm:$0xff] }
 0x377   : > { %6200 = vst [vmem:[#allocation23_spill] sm:$0xff] %v4806_v0  ;;  %v1569_v52 = vsel %vm1537_vm13, 2139095039, %v6201_v25  ;;  %v1375_v53 = vcvt.f32.s32 %v4317_v24  ;;  %3090 = vrcp.f32 %v1478_v61  ;;  %1688 = vmin.xlane.f32.xlu0 %v4806_v0  ;;  %v6202_v62 = vsel %vm4370_vm5, %v4382_v43, 0.0 }
 0x378   : > { %vm1698_vm3 = vcmp.lt.s32.totalorder %v1568_v34, %v1569_v52  ;;  %v4821_v31 = vadd.f32 %v2072_v29, %v6202_v62  ;;  %v1391_v37 = vcvt.f32.s32 %v4322_v44  ;;  %v1407_v32 = vcvt.f32.s32 %v4327_v58 }
 0x379   : > { %v1447_v35 = vand.u32 4294967040, %v4703_v39  ;;  %v4826_v51 = vadd.s32 %v1200_v4, %v1198_v3  ;;  %v1310_v24 = vcvt.f32.s32 %v1309_v8  ;;  %v4828_v61 = vsel %vm1698_vm3, %v1568_v34, %v1569_v52  ;;  %v1325_v34 = vpop.xlane.xlu1 %1324 }
 0x37a   : > { %6203 = vst [vmem:[#allocation24_spill] sm:$0xff] %v4821_v31  ;;  %6204 = vst [vmem:[#allocation71_spill] sm:$0xff] %v4828_v61  ;;  %vm1522_vm2 = vcmp.eq.s32.totalorder %v6205_v48, %v4812_v33  ;;  %vm1523_vm15 = vcmp.eq.s32.totalorder %v6206_v23, %v4812_v33  ;;  %v4834_v25 = vshll.u32 %v1359_v5, 16  ;;  %v1423_v29 = vcvt.f32.s32 %v4331_v55 }
 0x37b   : > { %v1701_v58 = vshra.s32 %v4828_v61, 16  ;;  %v4839_v62 = vshll.u32 %v1375_v53, 16  ;;  %v1448_v4 = vand.u32 4294967040, %v4735_v12  ;;  %v1554_v3 = vsel %vm1522_vm2, 2139095039, %v6205_v48  ;;  %v6208_v53 = vld [vmem:[#allocation10_spill] sm:$0xff] }
 0x37c   : > { %v1555_v52 = vsel %vm1523_vm15, 2139095039, %v6206_v23  ;;  %v4844_v8 = vshll.u32 %v1391_v37, 16  ;;  %v4846_v1 = vshll.u32 %v1407_v32, 16  ;;  %v1479_v5 = vadd.f32 1e-08, %v1447_v35  ;;  %v1341_v23 = vpop.xlane.xlu0 %1340 }
 0x37d   : > { %v4848_v43 = vcvt.s32.f32 %v1701_v58  ;;  %v4850_v55 = vadd.s32 %v1312_v15, %v1310_v24  ;;  %v1326_v44 = vcvt.f32.s32 %v1325_v34  ;;  %vm1586_vm5 = vcmp.lt.s32.totalorder %v1554_v3, %v1555_v52  ;;  %v6210_v37 = vld [vmem:[#allocation11_spill] sm:$0xff]  ;;  %v1357_v28 = vpop.xlane.xlu1 %1356  ;;  %v6227_v61 = vld [vmem:[#allocation17_spill] sm:$0xff] }
 0x37e   : > { %vm1524_vm14 = vcmp.eq.s32.totalorder %v6208_v53, %v4826_v51  ;;  %v4854_v2 = vshll.u32 %v1423_v29, 16  ;;  %v4857_v48 = vsel %vm1586_vm5, %v1554_v3, %v1555_v52  ;;  %vm1525_vm0 = vcmp.eq.s32.totalorder %v6210_v37, %v4826_v51 }
 0x37f   : > { %6207 = vst [vmem:[#allocation25_spill] sm:$0xff] %v4848_v43  ;;  %1704 = vmin.xlane.f32.xlu1 %v4848_v43  ;;  %6209 = vst [vmem:[#allocation26_spill] sm:$0xff] %v4857_v48  ;;  %v6211_v32 = vand.u32 255, %v4674_v54  ;;  %v1480_v35 = vadd.f32 1e-08, %v1448_v4  ;;  %v1449_v24 = vand.u32 4294967040, %v4776_v41  ;;  %3092 = vrcp.f32 %v1479_v5 }
 0x380   : > { %v1589_v29 = vshra.s32 %v4857_v48, 16  ;;  %v1556_v58 = vsel %vm1524_vm14, 2139095039, %v6208_v53  ;;  %v1442_v3 = vand.u32 4294967040, %v4812_v33  ;;  %v1557_v52 = vsel %vm1525_vm0, 2139095039, %v6210_v37 }
 0x381   : > { %vm4864_vm4 = vcmp.eq.s32.totalorder %v6070_v19, %v6211_v32  ;;  %v4874_v50 = vpop.eup %3090  ;;  %v4876_v32 = vadd.s32 %v1328_v22, %v1326_v44  ;;  %vm1602_vm13 = vcmp.lt.s32.totalorder %v1556_v58, %v1557_v52  ;;  %v6215_v4 = vld [vmem:[#allocation12_spill] sm:$0xff]  ;;  %v1342_v53 = vcvt.f32.s32 %v1341_v23  ;;  %v6217_v5 = vld [vmem:[#allocation27_spill] sm:$0xff] }
 0x382   : > { %v4878_v31 = vcvt.s32.f32 %v1589_v29  ;;  %vm1538_vm3 = vcmp.eq.s32.totalorder %v6215_v4, %v4850_v55  ;;  %v4883_v34 = vsel %vm1602_vm13, %v1556_v58, %v1557_v52  ;;  %vm1539_vm2 = vcmp.eq.s32.totalorder %v6217_v5, %v4850_v55 }
 0x383   : > { %6216 = vst [vmem:[#allocation11_spill] sm:$0xff] %v4883_v34  ;;  %3094 = vrcp.f32 %v1480_v35  ;;  %v1481_v37 = vadd.f32 1e-08, %v1449_v24  ;;  %v1605_v22 = vshra.s32 %v4883_v34, 16  ;;  %v1570_v44 = vsel %vm1538_vm3, 2139095039, %v6215_v4 }
 0x384   : > { %6214 = vst [vmem:[#allocation10_spill] sm:$0xff] %v4878_v31  ;;  %1592 = vmin.xlane.f32.xlu0 %v4878_v31  ;;  %v1358_v43 = vcvt.f32.s32 %v1357_v28  ;;  %v1571_v21 = vsel %vm1539_vm2, 2139095039, %v6217_v5  ;;  %v1474_v58 = vadd.f32 1e-08, %v1442_v3  ;;  %v6219_v35 = vld [vmem:[#allocation13_spill] sm:$0xff]  ;;  %v4901_v4 = vadd.s32 %v4804_v16, %v1342_v53  ;;  %v1373_v28 = vpop.xlane.xlu0 %1372  ;;  %v1389_v31 = vpop.xlane.xlu1 %1388 }
 0x385   : > { %v4895_v52 = vcvt.s32.f32 %v1605_v22  ;;  %vm1714_vm15 = vcmp.lt.s32.totalorder %v1570_v44, %v1571_v21  ;;  %vm1540_vm5 = vcmp.eq.s32.totalorder %v6219_v35, %v4876_v32  ;;  %v1443_v24 = vand.u32 4294967040, %v4826_v51  ;;  %v6221_v5 = vld [vmem:[#allocation14_spill] sm:$0xff] }
 0x386   : > { %v4903_v29 = vsel %vm1714_vm15, %v1570_v44, %v1571_v21  ;;  %vm1541_vm14 = vcmp.eq.s32.totalorder %v6221_v5, %v4876_v32  ;;  %3096 = vrcp.f32 %v1481_v37  ;;  %v1450_v3 = vand.u32 4294967040, %v4850_v55 }
 0x387   : > { %6218 = vst [vmem:[#allocation12_spill] sm:$0xff] %v4895_v52  ;;  %6220 = vst [vmem:[#allocation27_spill] sm:$0xff] %v4903_v29  ;;  %v1451_v22 = vand.u32 4294967040, %v4876_v32  ;;  %1608 = vmin.xlane.f32.xlu1 %v4895_v52  ;;  %v1717_v23 = vshra.s32 %v4903_v29, 16  ;;  %v4913_v16 = vadd.s32 %v4834_v25, %v1358_v43  ;;  %v1572_v21 = vsel %vm1540_vm5, 2139095039, %v6219_v35 }
 0x388   : > { %v1573_v53 = vsel %vm1541_vm14, 2139095039, %v6221_v5  ;;  %v1374_v34 = vcvt.f32.s32 %v1373_v28  ;;  %3098 = vrcp.f32 %v1474_v58  ;;  %v1475_v52 = vadd.f32 1e-08, %v1443_v24  ;;  %v6224_v43 = vld [vmem:[#allocation15_spill] sm:$0xff]  ;;  %v1405_v28 = vpop.xlane.xlu0 %1404  ;;  %v6225_v24 = vld [vmem:[#allocation16_spill] sm:$0xff]  ;;  %v1421_v0 = vpop.xlane.xlu1 %1420 }
 0x389   : > { %v4918_v37 = vcvt.s32.f32 %v1717_v23  ;;  %vm1730_vm0 = vcmp.lt.s32.totalorder %v1572_v21, %v1573_v53  ;;  %v4920_v48 = vpop.eup %3092  ;;  %vm1542_vm13 = vcmp.eq.s32.totalorder %v6224_v43, %v4901_v4  ;;  %v1482_v35 = vadd.f32 1e-08, %v1450_v3 }
 0x38a   : > { %v4922_v29 = vsel %vm1730_vm0, %v1572_v21, %v1573_v53  ;;  %v1483_v5 = vadd.f32 1e-08, %v1451_v22  ;;  %v1452_v44 = vand.u32 4294967040, %v4901_v4  ;;  %v1453_v58 = vand.u32 4294967040, %v4913_v16 }
 0x38b   : > { %6222 = vst [vmem:[#allocation13_spill] sm:$0xff] %v4918_v37  ;;  %6223 = vst [vmem:[#allocation14_spill] sm:$0xff] %v4922_v29  ;;  %1720 = vmin.xlane.f32.xlu0 %v4918_v37  ;;  %v1733_v23 = vshra.s32 %v4922_v29, 16  ;;  %vm1543_vm3 = vcmp.eq.s32.totalorder %v6225_v24, %v4901_v4  ;;  %v1574_v21 = vsel %vm1542_vm13, 2139095039, %v6224_v43  ;;  %v4937_v25 = vadd.s32 %v4839_v62, %v1374_v34  ;;  %v6229_v62 = vld [vmem:[#allocation18_spill] sm:$0xff] }
 0x38c   : > { %v1390_v22 = vcvt.f32.s32 %v1389_v31  ;;  %v1575_v37 = vsel %vm1543_vm3, 2139095039, %v6225_v24  ;;  %3100 = vrcp.f32 %v1475_v52  ;;  %v1406_v29 = vcvt.f32.s32 %v1405_v28 }
 0x38d   : > { %v4934_v53 = vpop.eup %3094  ;;  %v4939_v3 = vcvt.s32.f32 %v1733_v23  ;;  %vm1746_vm2 = vcmp.lt.s32.totalorder %v1574_v21, %v1575_v37  ;;  %vm1544_vm15 = vcmp.eq.s32.totalorder %v6227_v61, %v4913_v16  ;;  %3102 = vrcp.f32 %v1482_v35 }
 0x38e   : > { %v4945_v43 = vsel %vm1746_vm2, %v1574_v21, %v1575_v37  ;;  %vm1545_vm5 = vcmp.eq.s32.totalorder %v6229_v62, %v4913_v16  ;;  %v1576_v34 = vsel %vm1544_vm15, 2139095039, %v6227_v61  ;;  %3104 = vrcp.f32 %v1483_v5  ;;  %v6230_v37 = vld [vmem:[#allocation28_spill] sm:$0xff] }
 0x38f   : > { %6226 = vst [vmem:[#allocation15_spill] sm:$0xff] %v4939_v3  ;;  %1736 = vmin.xlane.f32.xlu1 %v4939_v3  ;;  %6228 = vst [vmem:[#allocation16_spill] sm:$0xff] %v4945_v43  ;;  %v1484_v31 = vadd.f32 1e-08, %v1452_v44  ;;  %v1485_v23 = vadd.f32 1e-08, %v1453_v58  ;;  %v4954_v24 = vadd.s32 %v4844_v8, %v1390_v22  ;;  %v1422_v3 = vcvt.f32.s32 %v1421_v0 }
 0x390   : > { %v1749_v52 = vshra.s32 %v4945_v43, 16  ;;  %v4951_v28 = vpop.eup %3096  ;;  %v1577_v35 = vsel %vm1545_vm5, 2139095039, %v6229_v62  ;;  %vm1546_vm14 = vcmp.eq.s32.totalorder %v6230_v37, %v4937_v25  ;;  %v4962_v61 = vadd.s32 %v4846_v1, %v1406_v29  ;;  %v6232_v44 = vld [vmem:[#allocation29_spill] sm:$0xff] }
 0x391   : > { %vm1762_vm0 = vcmp.lt.s32.totalorder %v1576_v34, %v1577_v35  ;;  %vm1547_vm13 = vcmp.eq.s32.totalorder %v6232_v44, %v4937_v25  ;;  %v4969_v8 = vadd.s32 %v4854_v2, %v1422_v3  ;;  %v1578_v58 = vsel %vm1546_vm14, 2139095039, %v6230_v37  ;;  %v6235_v2 = vld [vmem:[#allocation30_spill] sm:$0xff] }
 0x392   : > { %v4959_v21 = vcvt.s32.f32 %v1749_v52  ;;  %v4966_v5 = vsel %vm1762_vm0, %v1576_v34, %v1577_v35  ;;  %v1579_v0 = vsel %vm1547_vm13, 2139095039, %v6232_v44  ;;  %v4973_v22 = vpop.eup %3098  ;;  %3106 = vrcp.f32 %v1484_v31  ;;  %v6237_v35 = vld [vmem:[#allocation31_spill] sm:$0xff] }
 0x393   : > { %6233 = vst [vmem:[#allocation18_spill] sm:$0xff] %v4966_v5  ;;  %v1454_v62 = vand.u32 4294967040, %v4937_v25  ;;  %v1765_v1 = vshra.s32 %v4966_v5, 16  ;;  %vm1778_vm3 = vcmp.lt.s32.totalorder %v1578_v58, %v1579_v0  ;;  %3108 = vrcp.f32 %v1485_v23 }
 0x394   : > { %6231 = vst [vmem:[#allocation17_spill] sm:$0xff] %v4959_v21  ;;  %1752 = vmin.xlane.f32.xlu0 %v4959_v21  ;;  %v1455_v29 = vand.u32 4294967040, %v4954_v24  ;;  %v4979_v34 = vsel %vm1778_vm3, %v1578_v58, %v1579_v0  ;;  %vm1548_vm2 = vcmp.eq.s32.totalorder %v6235_v2, %v4954_v24  ;;  %v1456_v3 = vand.u32 4294967040, %v4962_v61  ;;  %v6238_v58 = vld [vmem:[#allocation32_spill] sm:$0xff] }
 0x395   : > { %6234 = vst [vmem:[#allocation28_spill] sm:$0xff] %v4979_v34  ;;  %v4984_v52 = vcvt.s32.f32 %v1765_v1  ;;  %v1781_v31 = vshra.s32 %v4979_v34, 16  ;;  %vm1549_vm15 = vcmp.eq.s32.totalorder %v6237_v35, %v4954_v24  ;;  %v1457_v37 = vand.u32 4294967040, %v4969_v8  ;;  %v6240_v34 = vld [vmem:[#allocation33_spill] sm:$0xff] }
 0x396   : > { %v1580_v23 = vsel %vm1548_vm2, 2139095039, %v6235_v2  ;;  %v1581_v44 = vsel %vm1549_vm15, 2139095039, %v6237_v35  ;;  %vm1550_vm5 = vcmp.eq.s32.totalorder %v6238_v58, %v4962_v61  ;;  %v4994_v0 = vpop.eup %3100  ;;  %vm1551_vm0 = vcmp.eq.s32.totalorder %v6240_v34, %v4962_v61 }
 0x397   : > { %6236 = vst [vmem:[#allocation29_spill] sm:$0xff] %v4984_v52  ;;  %1768 = vmin.xlane.f32.xlu1 %v4984_v52  ;;  %v4997_v1 = vcvt.s32.f32 %v1781_v31  ;;  %vm1794_vm14 = vcmp.lt.s32.totalorder %v1580_v23, %v1581_v44  ;;  %v1582_v21 = vsel %vm1550_vm5, 2139095039, %v6238_v58  ;;  %v6241_v5 = vand.u32 255, %v4703_v39  ;;  %v5009_v35 = vpop.eup %3102  ;;  %v6245_v52 = vld [vmem:[#allocation34_spill] sm:$0xff] }
 0x398   : > { %v1486_v43 = vadd.f32 1e-08, %v1454_v62  ;;  %v5011_v49 = vsel %vm1794_vm14, %v1580_v23, %v1581_v44  ;;  %v1583_v31 = vsel %vm1551_vm0, 2139095039, %v6240_v34  ;;  %vm1552_vm3 = vcmp.eq.s32.totalorder %v6245_v52, %v4969_v8  ;;  %v5016_v46 = vpop.eup %3104 }
 0x399   : > { %6239 = vst [vmem:[#allocation30_spill] sm:$0xff] %v4997_v1  ;;  %vm5005_vm13 = vcmp.eq.s32.totalorder %v6070_v19, %v6241_v5  ;;  %6244 = vst [vmem:[#allocation31_spill] sm:$0xff] %v5011_v49  ;;  %v1487_v58 = vadd.f32 1e-08, %v1455_v29  ;;  %1784 = vmin.xlane.f32.xlu0 %v4997_v1  ;;  %v1797_v5 = vshra.s32 %v5011_v49, 16  ;;  %vm1810_vm2 = vcmp.lt.s32.totalorder %v1582_v21, %v1583_v31 }
 0x39a   : > { %6246 = vst [vmem:[#allocation32_spill] sm:$0xff] %v5016_v46  ;;  %vm1553_vm15 = vcmp.eq.s32.totalorder %v6247_v63, %v4969_v8  ;;  %v6248_v62 = vand.u32 255, %v4674_v54  ;;  %v1488_v34 = vadd.f32 1e-08, %v1456_v3  ;;  %v5029_v44 = vsel %vm1810_vm2, %v1582_v21, %v1583_v31  ;;  %v6297_v21 = vld [vmem:[#allocation47_spill] sm:$0xff] }
 0x39b   : > { %v1584_v29 = vsel %vm1552_vm3, 2139095039, %v6245_v52  ;;  %v1585_v1 = vsel %vm1553_vm15, 2139095039, %v6247_v63  ;;  %v1489_v42 = vadd.f32 1e-08, %v1457_v37  ;;  %v5033_v49 = vcvt.s32.f32 %v1797_v5 }
 0x39c   : > { %vm5025_vm5 = vcmp.eq.s32.totalorder %v6073_v47, %v6248_v62  ;;  %v1813_v7 = vshra.s32 %v5029_v44, 16  ;;  %vm1826_vm14 = vcmp.lt.s32.totalorder %v1584_v29, %v1585_v1  ;;  %v6009_v54 = vand.u32 255, %v4876_v32  ;;  %v5040_v3 = vpop.eup %3106  ;;  %v6299_v62 = vld [vmem:[#allocation37_spill] sm:$0xff] }
 0x39d   : > { %3110 = vrcp.f32 %v1486_v43  ;;  %v5038_v20 = vsel %vm1826_vm14, %v1584_v29, %v1585_v1  ;;  %6251 = vst [vmem:[#allocation33_spill] sm:$0xff] %v5040_v3  ;;  %1800 = vmin.xlane.f32.xlu1 %v5033_v49  ;;  %v5047_v37 = vpop.eup %3108  ;;  %v6254_v31 = vand.u32 255, %v4826_v51  ;;  %v6260_v15 = vand.u32 255, %v4703_v39 }
 0x39e   : > { %3112 = vrcp.f32 %v1487_v58  ;;  %v5044_v63 = vcvt.s32.f32 %v1813_v7  ;;  %v1829_v52 = vshra.s32 %v5038_v20, 16  ;;  %6252 = vst [vmem:[#allocation34_spill] sm:$0xff] %v5047_v37  ;;  %v6253_v7 = vand.u32 255, %v4812_v33 }
 0x39f   : > { %3114 = vrcp.f32 %v1488_v34  ;;  %vm2036_vm3 = vcmp.eq.s32.totalorder %v6073_v47, %v6254_v31  ;;  %v2077_v34 = vsel %vm5005_vm13, %v4920_v48, 0.0  ;;  %v6257_v31 = vsel %vm4405_vm7, %v4390_v14, 0.0 }
 0x3a0   : > { %3116 = vrcp.f32 %v1489_v42  ;;  %1816 = vmin.xlane.f32.xlu0 %v5044_v63  ;;  %v5054_v58 = vcvt.s32.f32 %v1829_v52  ;;  %vm2034_vm0 = vcmp.eq.s32.totalorder %v6073_v47, %v6253_v7  ;;  %v6255_v42 = vsel %vm4378_vm6, %v4386_v13, 0.0 }
 0x3a1   : > { %v2066_v29 = vsel %vm2034_vm0, %v4973_v22, 0.0  ;;  %v6256_v52 = vsel %vm4864_vm4, %v4874_v50, 0.0  ;;  %v2068_v2 = vsel %vm2036_vm3, %v4994_v0, 0.0  ;;  %v5088_v43 = vadd.f32 %v2077_v34, %v6259_v60 }
 0x3a2   : > { %v5074_v1 = vadd.f32 %v6256_v52, %v6255_v42  ;;  %1832 = vmin.xlane.f32.xlu1 %v5054_v58  ;;  %v5081_v7 = vadd.f32 %v2066_v29, %v6257_v31  ;;  %vm2044_vm6 = vcmp.eq.s32.totalorder %v6073_v47, %v6260_v15  ;;  %v5097_v42 = vadd.f32 %v2068_v2, %v6261_v6 }
 0x3a3   : > { %v2074_v29 = vsel %vm5025_vm5, %v4874_v50, 0.0  ;;  %v2076_v26 = vsel %vm2044_vm6, %v4920_v48, 0.0  ;;  %v6263_v52 = vand.u32 255, %v4735_v12  ;;  %v6265_v39 = vsel %vm4448_vm10, %v4386_v13, 0.0 }
 0x3a4   : > { %6258 = vst [vmem:[#allocation35_spill] sm:$0xff] %v5081_v7  ;;  %6262 = vst [vmem:[#allocation72_spill] sm:$0xff] %v5097_v42  ;;  %v5110_v31 = vadd.f32 %v2074_v29, %v6265_v39  ;;  %v6267_v2 = vsel %vm4456_vm11, %v4400_v57, 0.0  ;;  %v6268_v23 = vand.u32 255, %v4776_v41  ;;  %v6270_v34 = vsel %vm4461_vm12, %v4409_v36, 0.0  ;;  %v6306_v7 = vld [vmem:[#allocation50_spill] sm:$0xff] }
 0x3a5   : > { %vm2047_vm7 = vcmp.eq.s32.totalorder %v6070_v19, %v6263_v52  ;;  %v5116_v60 = vadd.f32 %v2076_v26, %v6267_v2  ;;  %v6271_v39 = vand.u32 255, %v4735_v12  ;;  %vm6274_vm11 = vnez %v6273_v40 }
 0x3a6   : > { %vm2049_vm8 = vcmp.eq.s32.totalorder %v6070_v19, %v6268_v23  ;;  %v2079_v15 = vsel %vm2047_vm7, %v4934_v53, 0.0  ;;  %v6272_v26 = vmov %v6268_v23  ;;  %v6275_v2 = vsel %vm6274_vm11, %v4422_v18, 0.0 }
 0x3a7   : > { %v2081_v6 = vsel %vm2049_vm8, %v4951_v28, 0.0  ;;  %v5127_v29 = vadd.f32 %v2079_v15, %v6270_v34  ;;  %vm2046_vm9 = vcmp.eq.s32.totalorder %v6073_v47, %v6271_v39  ;;  %vm2048_vm10 = vcmp.eq.s32.totalorder %v6073_v47, %v6272_v26  ;;  %v5146_v12 = vpop.eup %3110  ;;  %v6278_v34 = vld [vmem:[#allocation42_spill] sm:$0xff] }
 0x3a8   : > { %v5139_v23 = vadd.f32 %v2081_v6, %v6275_v2  ;;  %v2078_v52 = vsel %vm2046_vm9, %v4934_v53, 0.0  ;;  %v2080_v5 = vsel %vm2048_vm10, %v4951_v28, 0.0  ;;  %v6276_v15 = vand.u32 255, %v4812_v33  ;;  %6277 = vst [vmem:[#allocation36_spill] sm:$0xff] %v5146_v12  ;;  %v5164_v2 = vpop.eup %3112 }
 0x3a9   : > { %vm6279_vm4 = vnez %v6278_v34  ;;  %vm6281_vm13 = vnez %v6108_v9  ;;  %v6283_v40 = vand.u32 255, %v4826_v51  ;;  %6284 = vst [vmem:[#allocation38_spill] sm:$0xff] %v5164_v2  ;;  %v6285_v34 = vld [vmem:[#allocation43_spill] sm:$0xff]  ;;  %v6289_v9 = vand.u32 255, %v4850_v55  ;;  %v5179_v51 = vpop.eup %3114 }
 0x3aa   : > { %vm2035_vm12 = vcmp.eq.s32.totalorder %v6070_v19, %v6276_v15  ;;  %v6280_v41 = vsel %vm6279_vm4, %v4409_v36, 0.0  ;;  %v6282_v6 = vsel %vm6281_vm13, %v4422_v18, 0.0  ;;  %vm6286_vm15 = vnez %v6285_v34  ;;  %6290 = vst [vmem:[#allocation40_spill] sm:$0xff] %v5179_v51 }
 0x3ab   : > { %v5152_v39 = vadd.f32 %v2078_v52, %v6280_v41  ;;  %v5158_v26 = vadd.f32 %v2080_v5, %v6282_v6  ;;  %vm2037_vm2 = vcmp.eq.s32.totalorder %v6070_v19, %v6283_v40  ;;  %v2067_v33 = vsel %vm2035_vm12, %v4973_v22, 0.0  ;;  %v6291_v5 = vld [vmem:[#allocation44_spill] sm:$0xff] }
 0x3ac   : > { %v2069_v15 = vsel %vm2037_vm2, %v4994_v0, 0.0  ;;  %v6287_v52 = vsel %vm6286_vm15, %v4390_v14, 0.0  ;;  %vm2051_vm5 = vcmp.eq.s32.totalorder %v6070_v19, %v6289_v9  ;;  %vm2053_vm14 = vcmp.eq.s32.totalorder %v6070_v19, %v6009_v54 }
 0x3ad   : > { %v5171_v41 = vadd.f32 %v2067_v33, %v6287_v52  ;;  %vm6292_vm0 = vnez %v6291_v5  ;;  %v2083_v34 = vsel %vm2051_vm5, %v5009_v35, 0.0  ;;  %v2085_v33 = vsel %vm2053_vm14, %v5016_v46, 0.0  ;;  %v6301_v5 = vld [vmem:[#allocation48_spill] sm:$0xff] }
 0x3ae   : > { %v6293_v6 = vsel %vm6292_vm0, %v4395_v10, 0.0  ;;  %v6295_v52 = vmov %v6289_v9  ;;  %v5192_v9 = vpop.eup %3116  ;;  %vm6298_vm6 = vnez %v6297_v21  ;;  %vm6302_vm7 = vnez %v6301_v5 }
 0x3af   : > { %6288 = vst [vmem:[#allocation39_spill] sm:$0xff] %v5171_v41  ;;  %v5185_v40 = vadd.f32 %v2069_v15, %v6293_v6  ;;  %vm2050_vm3 = vcmp.eq.s32.totalorder %v6073_v47, %v6295_v52  ;;  %6296 = vst [vmem:[#allocation43_spill] sm:$0xff] %v5192_v9  ;;  %v6300_v54 = vsel %vm6298_vm6, %v6299_v62, 0.0  ;;  %v6303_v15 = vld [vmem:[#allocation41_spill] sm:$0xff]  ;;  %v6305_v41 = vand.u32 255, %v4876_v32 }
 0x3b0   : > { %v5198_v42 = vadd.f32 %v2083_v34, %v6300_v54  ;;  %v6304_v6 = vsel %vm6302_vm7, %v6303_v15, 0.0  ;;  %v2082_v55 = vsel %vm2050_vm3, %v5009_v35, 0.0  ;;  %vm6307_vm9 = vnez %v6306_v7  ;;  %v6314_v7 = vld [vmem:[#allocation51_spill] sm:$0xff] }
 0x3b1   : > { %6294 = vst [vmem:[#allocation42_spill] sm:$0xff] %v5185_v40  ;;  %v5204_v40 = vadd.f32 %v2085_v33, %v6304_v6  ;;  %vm2052_vm8 = vcmp.eq.s32.totalorder %v6073_v47, %v6305_v41  ;;  %v6308_v21 = vsel %vm6307_vm9, %v6299_v62, 0.0  ;;  %v6309_v34 = vand.u32 255, %v4901_v4  ;;  %v6368_v41 = vld [vmem:[#allocation56_spill] sm:$0xff] }
 0x3b2   : > { %v2084_v52 = vsel %vm2052_vm8, %v5016_v46, 0.0  ;;  %v5215_v54 = vadd.f32 %v2082_v55, %v6308_v21  ;;  %v6310_v33 = vand.u32 255, %v4913_v16  ;;  %v6311_v32 = vand.u32 255, %v4188_v30  ;;  %v6317_v30 = vld [vmem:[#allocation53_spill] sm:$0xff]  ;;  %v6321_v46 = vld [vmem:[#allocation54_spill] sm:$0xff] }
 0x3b3   : > { %vm2055_vm10 = vcmp.eq.s32.totalorder %v6070_v19, %v6309_v34  ;;  %vm6315_vm4 = vnez %v6314_v7  ;;  %vm2054_vm13 = vcmp.eq.s32.totalorder %v6073_v47, %v6309_v34  ;;  %vm6318_vm2 = vnez %v6317_v30 }
 0x3b4   : > { %vm2057_vm11 = vcmp.eq.s32.totalorder %v6070_v19, %v6310_v33  ;;  %vm5226_vm12 = vcmp.eq.s32.totalorder %v6073_v47, %v6311_v32  ;;  %v6316_v5 = vsel %vm6315_vm4, %v6303_v15, 0.0  ;;  %v2087_v55 = vsel %vm2055_vm10, %v5040_v3, 0.0 }
 0x3b5   : > { %v5234_v6 = vadd.f32 %v2084_v52, %v6316_v5  ;;  %v2089_v21 = vsel %vm2057_vm11, %v5047_v37, 0.0  ;;  %v6319_v33 = vsel %vm6318_vm2, %v4484_v56, 0.0  ;;  %vm6322_vm15 = vnez %v6321_v46 }
 0x3b6   : > { %v5245_v32 = vadd.f32 %v2087_v55, %v6319_v33  ;;  %v6323_v7 = vsel %vm6322_vm15, %v4506_v27, 0.0  ;;  %v6325_v5 = vand.u32 255, %v4913_v16  ;;  %v2086_v4 = vsel %vm2054_vm13, %v5040_v3, 0.0 }
 0x3b7   : > { %v5251_v52 = vadd.f32 %v2089_v21, %v6323_v7  ;;  %vm6326_vm14 = vnez %v6142_v38  ;;  %v6329_v46 = vand.u32 255, %v4937_v25  ;;  %v6330_v21 = vand.u32 255, %v4954_v24  ;;  %v3038_v24 = vld [vmem:[%s5854_s2 + $0x40] sm:$0xff]  }
 0x3b8   : > { %6320 = vst [vmem:[#allocation44_spill] sm:$0xff] %v5245_v32  ;;  %vm2056_vm5 = vcmp.eq.s32.totalorder %v6073_v47, %v6325_v5  ;;  %v6327_v30 = vsel %vm6326_vm14, %v4484_v56, 0.0  ;;  %vm6331_vm6 = vnez %v6145_v45  ;;  %vm6335_vm8 = vnez %v6148_v17  ;;  %v6339_v45 = vld [vmem:[#allocation49_spill] sm:$0xff]  ;;  %2910 = vmatprep.subr.bf16.mxu0 %v3038_v24  ;;  %2974 = vmatprep.subr.bf16.mxu1 %v3038_v24 }
 0x3b9   : > { %6324 = vst [vmem:[#allocation47_spill] sm:$0xff] %v5251_v52  ;;  %v2088_v34 = vsel %vm2056_vm5, %v5047_v37, 0.0  ;;  %v5262_v55 = vadd.f32 %v2086_v4, %v6327_v30  ;;  %vm2059_vm0 = vcmp.eq.s32.totalorder %v6070_v19, %v6329_v46  ;;  %vm2061_vm3 = vcmp.eq.s32.totalorder %v6070_v19, %v6330_v21 }
 0x3ba   : > { %v6332_v16 = vsel %vm6331_vm6, %v4506_v27, 0.0  ;;  %v2091_v38 = vsel %vm2059_vm0, %v5146_v12, 0.0  ;;  %v2093_v7 = vsel %vm2061_vm3, %v5164_v2, 0.0  ;;  %v6334_v5 = vmov %v6329_v46 }
 0x3bb   : > { %6328 = vst [vmem:[#allocation37_spill] sm:$0xff] %v5262_v55  ;;  %v5274_v33 = vadd.f32 %v2088_v34, %v6332_v16  ;;  %vm2058_vm7 = vcmp.eq.s32.totalorder %v6073_v47, %v6334_v5  ;;  %v6336_v4 = vsel %vm6335_vm8, %v4520_v11, 0.0  ;;  %vm6338_vm9 = vnez %v6152_v59  ;;  %v6342_v5 = vld [vmem:[#allocation57_spill] sm:$0xff] }
 0x3bc   : > { %v5285_v30 = vadd.f32 %v2091_v38, %v6336_v4  ;;  %v6340_v46 = vsel %vm6338_vm9, %v6339_v45, 0.0  ;;  %vm2060_vm10 = vcmp.eq.s32.totalorder %v6073_v47, %v6330_v21  ;;  %v2090_v25 = vsel %vm2058_vm7, %v5146_v12, 0.0  ;;  %v3039_v4 = vld [vmem:[%s5854_s2] sm:$0xff]  }
 0x3bd   : > { %6333 = vst [vmem:[#allocation48_spill] sm:$0xff] %v5274_v33  ;;  %v5291_v34 = vadd.f32 %v2093_v7, %v6340_v46  ;;  %v2092_v16 = vsel %vm2060_vm10, %v5164_v2, 0.0  ;;  %vm6343_vm11 = vnez %v6342_v5  ;;  %v6346_v59 = vand.u32 255, %v4962_v61  ;;  %v3040_v46 = vld [vmem:[%s5854_s2 + $0x48] sm:$0xff]   ;;  %v6348_v21 = vld [vmem:[#allocation58_spill] sm:$0xff]  ;;  %2911 = vmatpush3.bf16.msra.mxu0 %v3039_v4  ;;  %2982 = vmatpush3.bf16.msra.mxu1 %v3039_v4 }
 0x3be   : > { %6337 = vst [vmem:[#allocation41_spill] sm:$0xff] %v5285_v30  ;;  %v6344_v17 = vsel %vm6343_vm11, %v4520_v11, 0.0  ;;  %v6347_v7 = vand.u32 255, %v4969_v8  ;;  %vm6349_vm2 = vnez %v6348_v21  ;;  %v6359_v21 = vld [vmem:[#allocation55_spill] sm:$0xff]  ;;  %2912 = vmatprep.subr.bf16.mxu0 %v3040_v46  ;;  %2975 = vmatprep.subr.bf16.mxu1 %v3040_v46  ;;  %v1620_v24 = vand.u32 65535, %v6368_v41  ;;  %v6372_v46 = vld [vmem:[#allocation64_spill] sm:$0xff] }
 0x3bf   : > { %6341 = vst [vmem:[#allocation50_spill] sm:$0xff] %v5291_v34  ;;  %v5302_v38 = vadd.f32 %v2090_v25, %v6344_v17  ;;  %vm2063_vm4 = vcmp.eq.s32.totalorder %v6070_v19, %v6346_v59  ;;  %v6350_v25 = vsel %vm6349_vm2, %v6339_v45, 0.0  ;;  %v6353_v34 = vld [vmem:[#allocation60_spill] sm:$0xff]  ;;  %v6360_v45 = vsel %vm4679_vm1, %v6359_v21, 0.0 }
 0x3c0   : > { %vm2065_vm13 = vcmp.eq.s32.totalorder %v6070_v19, %v6347_v7  ;;  %v5323_v5 = vadd.f32 %v2092_v16, %v6350_v25  ;;  %v2095_v17 = vsel %vm2063_vm4, %v5179_v51, 0.0  ;;  %v6352_v7 = vand.u32 255, %v4962_v61  ;;  %v6373_v41 = vld [vmem:[#allocation20_spill] sm:$0xff] }
 0x3c1   : > { %6345 = vst [vmem:[#allocation51_spill] sm:$0xff] %v5302_v38  ;;  %v2097_v59 = vsel %vm2065_vm13, %v5192_v9, 0.0  ;;  %vm6354_vm5 = vnez %v6353_v34  ;;  %v6355_v38 = vld [vmem:[#allocation52_spill] sm:$0xff]  ;;  %v6362_v25 = vand.u32 255, %v4969_v8  ;;  %v2000_v34 = vsel %vm5226_vm12, %v6359_v21, 0.0  ;;  %v3041_v8 = vld [vmem:[%s5854_s2 + $0x8] sm:$0xff]  }
 0x3c2   : > { %6351 = vst [vmem:[#allocation53_spill] sm:$0xff] %v5323_v5  ;;  %vm2062_vm15 = vcmp.eq.s32.totalorder %v6073_v47, %v6352_v7  ;;  %v6356_v30 = vsel %vm6354_vm5, %v6355_v38, 0.0  ;;  %v5340_v16 = vadd.f32 %v2097_v59, %v6360_v45  ;;  %2913 = vmatpush3.bf16.msra.mxu0 %v3041_v8  ;;  %2983 = vmatpush3.bf16.msra.mxu1 %v3041_v8  ;;  %v3048_v5 = vld [vmem:[%s5854_s2 + $0x68] sm:$0xff]  }
 0x3c3   : > { %v5334_v2 = vadd.f32 %v2095_v17, %v6356_v30  ;;  %vm2064_vm14 = vcmp.eq.s32.totalorder %v6073_v47, %v6362_v25  ;;  %v2094_v61 = vsel %vm2062_vm15, %v5179_v51, 0.0  ;;  %v6363_v17 = vld [vmem:[#allocation63_spill] sm:$0xff]  ;;  %v1622_v25 = vcvt.s32.f32 %v1620_v24  ;;  %v6382_v51 = vld [vmem:[#allocation10_spill] sm:$0xff] }
 0x3c4   : > { %6361 = vst [vmem:[#allocation57_spill] sm:$0xff] %v5340_v16  ;;  %v2096_v30 = vsel %vm2064_vm14, %v5192_v9, 0.0  ;;  %vm6364_vm0 = vnez %v6363_v17  ;;  %v6371_v16 = vld [vmem:[#allocation66_spill] sm:$0xff]  ;;  %v6376_v9 = vld [vmem:[#allocation21_spill] sm:$0xff] }
 0x3c5   : > { %6357 = vst [vmem:[#allocation54_spill] sm:$0xff] %v5334_v2  ;;  %v6365_v12 = vsel %vm6364_vm0, %v6355_v38, 0.0  ;;  %v5359_v59 = vadd.f32 %v2096_v30, %v2000_v34  ;;  %v1652_v4 = vand.u32 65535, %v6371_v16 }
 0x3c6   : > { %v5354_v45 = vadd.f32 %v2094_v61, %v6365_v12  ;;  %v6369_v61 = vld [vmem:[#allocation59_spill] sm:$0xff]  ;;  %v6370_v12 = vld [vmem:[#allocation62_spill] sm:$0xff] }
 0x3c7   : > { %6367 = vst [vmem:[#allocation60_spill] sm:$0xff] %v5359_v59  ;;  %v1668_v59 = vand.u32 65535, %v6373_v41  ;;  %v1654_v2 = vcvt.s32.f32 %v1652_v4  ;;  %v6377_v4 = vld [vmem:[#allocation23_spill] sm:$0xff] }
 0x3c8   : > { %6366 = vst [vmem:[#allocation58_spill] sm:$0xff] %v5354_v45  ;;  %v1636_v45 = vand.u32 65535, %v6370_v12  ;;  %v6375_v12 = vld [vmem:[#allocation22_spill] sm:$0xff] }
 0x3c9   : > { %v1670_v16 = vcvt.s32.f32 %v1668_v59  ;;  %v3042_v59 = vld [vmem:[%s5854_s2 + $0x50] sm:$0xff]  }
 0x3ca   : > { %v1638_v30 = vcvt.s32.f32 %v1636_v45  ;;  %v1684_v45 = vand.u32 65535, %v6375_v12  ;;  %2914 = vmatprep.subr.bf16.mxu0 %v3042_v59  ;;  %2976 = vmatprep.subr.bf16.mxu1 %v3042_v59  ;;  %v6379_v12 = vld [vmem:[#allocation26_spill] sm:$0xff] }
 0x3ed   : > { %v5362_v7 = vpop.xlane.xlu0 %1624 }
 0x3ee   : > { %vm1626_vm1 = vcmp.eq.f32.partialorder %v6369_v61, %v5362_v7 }
 0x3ef   : > { %v1627_v17 = vsel %vm1626_vm1, %v1622_v25, inf  ;;  %v6374_v25 = vld [vmem:[#allocation19_spill] sm:$0xff] }
 0x3f0   : > { %1628 = vmin.xlane.f32.xlu0 %v1627_v17 }
 0x3f6   : > { %v5368_v34 = vpop.xlane.xlu1 %1640 }
 0x3f7   : > { %vm1642_vm12 = vcmp.eq.f32.partialorder %v6372_v46, %v5368_v34 }
 0x3f8   : > { %v1643_v8 = vsel %vm1642_vm12, %v1638_v30, inf }
 0x3f9   : > { %1644 = vmin.xlane.f32.xlu1 %v1643_v8  ;;  %v1686_v8 = vcvt.s32.f32 %v1684_v45  ;;  %v1588_v45 = vand.u32 65535, %v6379_v12 }
 0x3fb   : > { %v5373_v24 = vpop.xlane.xlu0 %1656  ;;  %v1590_v21 = vcvt.s32.f32 %v1588_v45  ;;  %v6384_v45 = vld [vmem:[#allocation12_spill] sm:$0xff] }
 0x3fc   : > { %vm1658_vm3 = vcmp.eq.f32.partialorder %v6374_v25, %v5373_v24  ;;  %v6378_v25 = vld [vmem:[#allocation71_spill] sm:$0xff] }
 0x3fd   : > { %v1659_v61 = vsel %vm1658_vm3, %v1654_v2, inf  ;;  %v1700_v2 = vand.u32 65535, %v6378_v25 }
 0x3fe   : > { %1660 = vmin.xlane.f32.xlu0 %v1659_v61 }
 0x3ff   : > { %v5377_v17 = vpop.xlane.xlu1 %1672 }
 0x400   : > { %vm1674_vm6 = vcmp.eq.f32.partialorder %v6376_v9, %v5377_v17  ;;  %v3043_v9 = vld [vmem:[%s5854_s2 + $0x10] sm:$0xff]  }
 0x401   : > { %v1675_v30 = vsel %vm1674_vm6, %v1670_v16, inf  ;;  %v1702_v16 = vcvt.s32.f32 %v1700_v2  ;;  %2915 = vmatpush3.bf16.msra.mxu0 %v3043_v9  ;;  %2984 = vmatpush3.bf16.msra.mxu1 %v3043_v9  ;;  %v6383_v2 = vld [vmem:[#allocation27_spill] sm:$0xff] }
 0x402   : > { %1676 = vmin.xlane.f32.xlu1 %v1675_v30  ;;  %v6380_v30 = vld [vmem:[#allocation25_spill] sm:$0xff]  ;;  %v1716_v38 = vand.u32 65535, %v6383_v2  ;;  %v3047_v2 = vld [vmem:[%s5854_s2 + $0x20] sm:$0xff]  }
 0x404   : > { %v5382_v46 = vpop.xlane.xlu0 %1688 }
 0x405   : > { %vm1690_vm7 = vcmp.eq.f32.partialorder %v6377_v4, %v5382_v46  ;;  %v6381_v4 = vld [vmem:[#allocation11_spill] sm:$0xff] }
 0x406   : > { %v1691_v41 = vsel %vm1690_vm7, %v1686_v8, inf }
 0x407   : > { %1692 = vmin.xlane.f32.xlu0 %v1691_v41  ;;  %v1604_v41 = vand.u32 65535, %v6381_v4 }
 0x409   : > { %v1606_v12 = vcvt.s32.f32 %v1604_v41  ;;  %v1718_v41 = vcvt.s32.f32 %v1716_v38 }
 0x40c   : > { %v5393_v61 = vpop.xlane.xlu1 %1704 }
 0x40d   : > { %vm1706_vm8 = vcmp.eq.f32.partialorder %v6380_v30, %v5393_v61  ;;  %v3045_v30 = vld [vmem:[%s5854_s2 + $0x18] sm:$0xff]  }
 0x40e   : > { %v1707_v8 = vsel %vm1706_vm8, %v1702_v16, inf  ;;  %v3044_v16 = vld [vmem:[%s5854_s2 + $0x58] sm:$0xff]  }
 0x40f   : > { %1708 = vmin.xlane.f32.xlu1 %v1707_v8  ;;  %2916 = vmatprep.subr.bf16.mxu0 %v3044_v16 }
 0x410   : > { %2977 = vmatprep.subr.bf16.mxu1 %v3044_v16  ;;  %2917 = vmatpush3.bf16.msra.mxu0 %v3045_v30 }
 0x411   : > { %v5399_v25 = vpop.xlane.xlu0 %1592  ;;  %2985 = vmatpush3.bf16.msra.mxu1 %v3045_v30  ;;  %v6387_v30 = vld [vmem:[#allocation16_spill] sm:$0xff] }
 0x412   : > { %vm1594_vm9 = vcmp.eq.f32.partialorder %v6382_v51, %v5399_v25  ;;  %v6385_v51 = vld [vmem:[#allocation14_spill] sm:$0xff] }
 0x413   : > { %v1595_v59 = vsel %vm1594_vm9, %v1590_v21, inf  ;;  %v1732_v21 = vand.u32 65535, %v6385_v51  ;;  %v6388_v51 = vld [vmem:[#allocation15_spill] sm:$0xff] }
 0x414   : > { %1596 = vmin.xlane.f32.xlu0 %v1595_v59  ;;  %v5404_v9 = vpop.xlane.xlu1 %1608  ;;  %v3046_v59 = vld [vmem:[%s5854_s2 + $0x60] sm:$0xff]  }
 0x415   : > { %vm1610_vm10 = vcmp.eq.f32.partialorder %v6384_v45, %v5404_v9  ;;  %2978 = vmatprep.subr.bf16.mxu1 %v3046_v59  ;;  %2918 = vmatprep.subr.bf16.mxu0 %v3046_v59  ;;  %v1734_v38 = vcvt.s32.f32 %v1732_v21  ;;  %v6389_v21 = vld [vmem:[#allocation18_spill] sm:$0xff] }
 0x416   : > { %v1611_v8 = vsel %vm1610_vm10, %v1606_v12, inf  ;;  %v6386_v12 = vld [vmem:[#allocation13_spill] sm:$0xff]  ;;  %2919 = vmatpush3.bf16.msra.mxu0 %v3047_v2  ;;  %2986 = vmatpush3.bf16.msra.mxu1 %v3047_v2  ;;  %v1764_v2 = vand.u32 65535, %v6389_v21 }
 0x417   : > { %1612 = vmin.xlane.f32.xlu1 %v1611_v8  ;;  %v1748_v8 = vand.u32 65535, %v6387_v30  ;;  %2979 = vmatprep.subr.bf16.mxu1 %v3048_v5  ;;  %v6390_v30 = vld [vmem:[#allocation17_spill] sm:$0xff] }
 0x418   : > { %v5415_v4 = vpop.xlane.xlu0 %1720  ;;  %2920 = vmatprep.subr.bf16.mxu0 %v3048_v5  ;;  %v6393_v5 = vld [vmem:[#allocation31_spill] sm:$0xff] }
 0x419   : > { %vm1722_vm11 = vcmp.eq.f32.partialorder %v6386_v12, %v5415_v4  ;;  %v1796_v55 = vand.u32 65535, %v6393_v5 }
 0x41a   : > { %v1723_v16 = vsel %vm1722_vm11, %v1718_v41, inf  ;;  %v3049_v41 = vld [vmem:[%s5854_s2 + $0x28] sm:$0xff]  }
 0x41b   : > { %1724 = vmin.xlane.f32.xlu0 %v1723_v16  ;;  %2987 = vmatpush3.bf16.msra.mxu1 %v3049_v41  ;;  %v1750_v16 = vcvt.s32.f32 %v1748_v8 }
 0x41c   : > { %v5425_v45 = vpop.xlane.xlu1 %1736  ;;  %2921 = vmatpush3.bf16.msra.mxu0 %v3049_v41  ;;  %v6394_v41 = vld [vmem:[#allocation30_spill] sm:$0xff] }
 0x41d   : > { %vm1738_vm4 = vcmp.eq.f32.partialorder %v6388_v51, %v5425_v45  ;;  %v6391_v51 = vld [vmem:[#allocation28_spill] sm:$0xff] }
 0x41e   : > { %v1739_v59 = vsel %vm1738_vm4, %v1734_v38, inf  ;;  %v1780_v11 = vand.u32 65535, %v6391_v51  ;;  %v1766_v38 = vcvt.s32.f32 %v1764_v2  ;;  %v1798_v51 = vcvt.s32.f32 %v1796_v55  ;;  %v3051_v55 = vld [vmem:[%s5854_s2 + $0x30] sm:$0xff]  }
 0x41f   : > { %1740 = vmin.xlane.f32.xlu1 %v1739_v59  ;;  %v6392_v59 = vld [vmem:[#allocation29_spill] sm:$0xff] }
 0x420   : > { %v1782_v8 = vcvt.s32.f32 %v1780_v11 }
 0x421   : > { %v5437_v12 = vpop.xlane.xlu0 %1752 }
 0x422   : > { %vm1754_vm13 = vcmp.eq.f32.partialorder %v6390_v30, %v5437_v12  ;;  %v1812_v30 = vand.u32 65535, %v5029_v44 }
 0x423   : > { %v1755_v33 = vsel %vm1754_vm13, %v1750_v16, inf }
 0x424   : > { %1756 = vmin.xlane.f32.xlu0 %v1755_v33  ;;  %v5442_v52 = vpop.xlane.xlu1 %1768  ;;  %v1828_v33 = vand.u32 65535, %v5038_v20  ;;  %v1814_v11 = vcvt.s32.f32 %v1812_v30 }
 0x425   : > { %vm1770_vm2 = vcmp.eq.f32.partialorder %v6392_v59, %v5442_v52 }
 0x426   : > { %v1771_v21 = vsel %vm1770_vm2, %v1766_v38, inf  ;;  %v5447_v32 = vpop.xlane.xlu0 %1784 }
 0x427   : > { %1772 = vmin.xlane.f32.xlu1 %v1771_v21  ;;  %vm1786_vm15 = vcmp.eq.f32.partialorder %v6394_v41, %v5447_v32  ;;  %v1830_v21 = vcvt.s32.f32 %v1828_v33 }
 0x428   : > { %v1787_v16 = vsel %vm1786_vm15, %v1782_v8, inf  ;;  %v1631_v8 = vcvt.f32.s32 %v5362_v7 }
 0x429   : > { %1788 = vmin.xlane.f32.xlu0 %v1787_v16 }
 0x42a   : > { %v5453_v2 = vpop.xlane.xlu1 %1800  ;;  %v1632_v30 = vshll.u32 %v1631_v8, 16 }
 0x42b   : > { %vm1802_vm5 = vcmp.eq.f32.partialorder %v5033_v49, %v5453_v2  ;;  %v3050_v49 = vld [vmem:[%s5854_s2 + $0x70] sm:$0xff]  }
 0x42c   : > { %v1803_v38 = vsel %vm1802_vm5, %v1798_v51, inf  ;;  %2980 = vmatprep.subr.bf16.mxu1 %v3050_v49  ;;  %2922 = vmatprep.subr.bf16.mxu0 %v3050_v49  ;;  %v1647_v51 = vcvt.f32.s32 %v5368_v34 }
 0x42d   : > { %v5457_v59 = vpop.xlane.xlu0 %1816  ;;  %1804 = vmin.xlane.f32.xlu1 %v1803_v38  ;;  %2988 = vmatpush3.bf16.msra.mxu1 %v3051_v55 }
 0x42e   : > { %vm1818_vm14 = vcmp.eq.f32.partialorder %v5044_v63, %v5457_v59  ;;  %2923 = vmatpush3.bf16.msra.mxu0 %v3051_v55  ;;  %v3052_v63 = vld [vmem:[%s5854_s2 + $0x78] sm:$0xff]  }
 0x42f   : > { %v1819_v5 = vsel %vm1818_vm14, %v1814_v11, inf  ;;  %v5461_v44 = vpop.xlane.xlu1 %1832  ;;  %2981 = vmatprep.subr.bf16.mxu1 %v3052_v63  ;;  %2924 = vmatprep.subr.bf16.mxu0 %v3052_v63 }
 0x430   : > { %1820 = vmin.xlane.f32.xlu0 %v1819_v5  ;;  %vm1834_vm0 = vcmp.eq.f32.partialorder %v5054_v58, %v5461_v44  ;;  %v3053_v58 = vld [vmem:[%s5854_s2 + $0x38] sm:$0xff]  }
 0x431   : > { %v1835_v20 = vsel %vm1834_vm0, %v1830_v21, inf  ;;  %2989 = vmatpush3.bf16.msra.mxu1 %v3053_v58  ;;  %v1648_v21 = vshll.u32 %v1647_v51, 16  ;;  %v1695_v51 = vcvt.f32.s32 %v5382_v46  ;;  %v6396_v46 = vld [vmem:[#allocation70_spill] sm:$0xff] }
 0x432   : > { %1836 = vmin.xlane.f32.xlu1 %v1835_v20  ;;  %2925 = vmatpush3.bf16.msra.mxu0 %v3053_v58  ;;  %v1663_v20 = vcvt.f32.s32 %v5373_v24  ;;  %v1679_v58 = vcvt.f32.s32 %v5377_v17 }
 0x434   : > { %v1664_v37 = vshll.u32 %v1663_v20, 16  ;;  %v1680_v34 = vshll.u32 %v1679_v58, 16 }
 0x47d   : > { %v1629_v41 = vpop.xlane.xlu0 %1628 }
 0x47e   : > { %v1630_v16 = vcvt.f32.s32 %v1629_v41 }
 0x480   : > { %v1633_v33 = vadd.s32 %v1632_v30, %v1630_v16 }
 0x482   : > { %v1860_v38 = vand.u32 4294967040, %v1633_v33  ;;  %v1844_v8 = vand.u32 255, %v1633_v33 }
 0x484   : > { %v1892_v11 = vadd.f32 1e-08, %v1860_v38  ;;  %vm2134_vm1 = vcmp.eq.s32.totalorder %v6073_v47, %v1844_v8  ;;  %vm2135_vm12 = vcmp.eq.s32.totalorder %v6070_v19, %v1844_v8 }
 0x486   : > { %v1645_v5 = vpop.xlane.xlu1 %1644  ;;  %3118 = vrcp.f32 %v1892_v11 }
 0x487   : > { %v1646_v49 = vcvt.f32.s32 %v1645_v5 }
 0x489   : > { %v1649_v55 = vadd.s32 %v1648_v21, %v1646_v49  ;;  %v6395_v21 = vld [vmem:[#allocation67_spill] sm:$0xff]  ;;  %v1696_v49 = vshll.u32 %v1695_v51, 16 }
 0x48b   : > { %v1661_v63 = vpop.xlane.xlu0 %1660  ;;  %v1861_v7 = vand.u32 4294967040, %v1649_v55 }
 0x48c   : > { %v1662_v27 = vcvt.f32.s32 %v1661_v63 }
 0x48d   : > { %v1893_v41 = vadd.f32 1e-08, %v1861_v7  ;;  %v1845_v7 = vand.u32 255, %v1649_v55  ;;  %v1510_v55 = vadd.f32 %v4874_v50, %v4386_v13 }
 0x48e   : > { %v1665_v30 = vadd.s32 %v1664_v37, %v1662_v27 }
 0x48f   : > { %v1677_v16 = vpop.xlane.xlu1 %1676  ;;  %3120 = vrcp.f32 %v1893_v41  ;;  %vm2137_vm3 = vcmp.eq.s32.totalorder %v6070_v19, %v1845_v7  ;;  %vm2136_vm6 = vcmp.eq.s32.totalorder %v6073_v47, %v1845_v7 }
 0x490   : > { %v1862_v38 = vand.u32 4294967040, %v1665_v30  ;;  %v1678_v3 = vcvt.f32.s32 %v1677_v16  ;;  %v5482_v24 = vpop.eup %3118  ;;  %v1846_v8 = vand.u32 255, %v1665_v30 }
 0x491   : > { %v2167_v17 = vsel %vm2135_vm12, %v5482_v24, 0.0  ;;  %v2166_v33 = vsel %vm2134_vm1, %v5482_v24, 0.0 }
 0x492   : > { %v1894_v11 = vadd.f32 1e-08, %v1862_v38  ;;  %v1681_v5 = vadd.s32 %v1680_v34, %v1678_v3  ;;  %v2199_v20 = vadd.f32 %v2167_v17, %v6395_v21  ;;  %v2198_v58 = vadd.f32 %v2166_v33, %v6396_v46 }
 0x493   : > { %v1711_v3 = vcvt.f32.s32 %v5393_v61  ;;  %v1599_v21 = vcvt.f32.s32 %v5399_v25  ;;  %vm5502_vm7 = vcmp.eq.s32.totalorder %v6073_v47, %v1846_v8  ;;  %vm2139_vm8 = vcmp.eq.s32.totalorder %v6070_v19, %v1846_v8 }
 0x494   : > { %3122 = vrcp.f32 %v1894_v11  ;;  %v1863_v27 = vand.u32 4294967040, %v1681_v5  ;;  %v1693_v37 = vpop.xlane.xlu0 %1692  ;;  %v1847_v50 = vand.u32 255, %v1681_v5  ;;  %v1615_v5 = vcvt.f32.s32 %v5404_v9 }
 0x495   : > { %v1694_v63 = vcvt.f32.s32 %v1693_v37  ;;  %v1712_v33 = vshll.u32 %v1711_v3, 16  ;;  %v6397_v37 = vld [vmem:[#allocation69_spill] sm:$0xff]  ;;  %v1600_v8 = vshll.u32 %v1599_v21, 16 }
 0x496   : > { %v1895_v41 = vadd.f32 1e-08, %v1863_v27  ;;  %vm2140_vm9 = vcmp.eq.s32.totalorder %v6073_v47, %v1847_v50  ;;  %vm2141_vm10 = vcmp.eq.s32.totalorder %v6070_v19, %v1847_v50 }
 0x497   : > { %v1697_v16 = vadd.s32 %v1696_v49, %v1694_v63  ;;  %v6400_v63 = vld [vmem:[#allocation24_spill] sm:$0xff] }
 0x498   : > { %3124 = vrcp.f32 %v1895_v41 }
 0x499   : > { %v1864_v34 = vand.u32 4294967040, %v1697_v16  ;;  %v5491_v38 = vpop.eup %3120 }
 0x49a   : > { %v2169_v51 = vsel %vm2137_vm3, %v5491_v38, 0.0  ;;  %v2168_v30 = vsel %vm2136_vm6, %v5491_v38, 0.0 }
 0x49b   : > { %v1896_v11 = vadd.f32 1e-08, %v1864_v34  ;;  %v2201_v61 = vadd.f32 %v2169_v51, %v6397_v37  ;;  %v2200_v46 = vadd.f32 %v2168_v30, %v6400_v63 }
 0x49c   : > { %v1709_v17 = vpop.xlane.xlu1 %1708 }
 0x49d   : > { %v1710_v27 = vcvt.f32.s32 %v1709_v17  ;;  %3126 = vrcp.f32 %v1896_v11  ;;  %v2261_v41 = vpack.c.bf16 %v2201_v61, %v2199_v20  ;;  %v2260_v3 = vpack.c.bf16 %v2200_v46, %v2198_v58 }
 0x49e   : > { %v3123_v7 = vpop.eup %3122  ;;  %v1511_v20 = vadd.f32 %v4920_v48, %v4400_v57  ;;  %v1848_v61 = vand.u32 255, %v1697_v16  ;;  %v1616_v48 = vshll.u32 %v1615_v5, 16  ;;  %v1512_v16 = vadd.f32 %v4934_v53, %v4409_v36 }
 0x49f   : > { %v5508_v13 = vadd.s32 %v1712_v33, %v1710_v27  ;;  %v2171_v34 = vsel %vm2139_vm8, %v3123_v7, 0.0  ;;  %v2170_v25 = vsel %vm5502_vm7, %v3123_v7, 0.0  ;;  %v5512_v17 = vadd.f32 %v3123_v7, %v1510_v55  ;;  %2410 = vmatprep.mubr.bf16.mxu1 %v2261_v41 }
 0x4a0   : > { %v2203_v11 = vadd.f32 %v2171_v34, %v5074_v1  ;;  %v2202_v30 = vadd.f32 %v2170_v25, %v5110_v31  ;;  %2411 = vmatmul.mubr.bf16.vlgmr.msra.gmra.mrb[0].mxu1 %v2260_v3  ;;  %v1727_v55 = vcvt.f32.s32 %v5415_v4  ;;  %vm5533_vm11 = vcmp.eq.s32.totalorder %v6073_v47, %v1848_v61 }
 0x4a1   : > { %v1865_v51 = vand.u32 4294967040, %v5508_v13  ;;  %v1597_v37 = vpop.xlane.xlu0 %1596  ;;  %vm2143_vm4 = vcmp.eq.s32.totalorder %v6070_v19, %v1848_v61  ;;  %v1743_v36 = vcvt.f32.s32 %v5425_v45  ;;  %v1513_v45 = vadd.f32 %v4951_v28, %v4422_v18 }
 0x4a2   : > { %v1598_v33 = vcvt.f32.s32 %v1597_v37  ;;  %v3125_v58 = vpop.eup %3124  ;;  %v1728_v34 = vshll.u32 %v1727_v55, 16  ;;  %v1506_v61 = vadd.f32 %v4973_v22, %v4390_v14  ;;  %v1791_v22 = vcvt.f32.s32 %v5447_v32 }
 0x4a3   : > { %v1897_v27 = vadd.f32 1e-08, %v1865_v51  ;;  %v2173_v31 = vsel %vm2141_vm10, %v3125_v58, 0.0  ;;  %v2172_v21 = vsel %vm2140_vm9, %v3125_v58, 0.0  ;;  %v5527_v57 = vadd.f32 %v3125_v58, %v1511_v20 }
 0x4a4   : > { %v5523_v1 = vadd.s32 %v1600_v8, %v1598_v33  ;;  %v1613_v9 = vpop.xlane.xlu1 %1612  ;;  %v2205_v49 = vadd.f32 %v2173_v31, %v5088_v43  ;;  %v2204_v63 = vadd.f32 %v2172_v21, %v5116_v60  ;;  %v1759_v8 = vcvt.f32.s32 %v5437_v12 }
 0x4a5   : > { %3128 = vrcp.f32 %v1897_v27  ;;  %v1614_v46 = vcvt.f32.s32 %v1613_v9  ;;  %v1849_v20 = vand.u32 255, %v5508_v13  ;;  %v1744_v31 = vshll.u32 %v1743_v36, 16 }
 0x4a6   : > { %v1858_v4 = vand.u32 4294967040, %v5523_v1  ;;  %v2263_v7 = vpack.c.bf16 %v2205_v49, %v2203_v11  ;;  %v2262_v50 = vpack.c.bf16 %v2204_v63, %v2202_v30  ;;  %v1760_v9 = vshll.u32 %v1759_v8, 16 }
 0x4a7   : > { %v3127_v41 = vpop.eup %3126  ;;  %v5538_v60 = vadd.s32 %v1616_v48, %v1614_v46  ;;  %v1842_v13 = vand.u32 255, %v5523_v1  ;;  %v1507_v49 = vadd.f32 %v4994_v0, %v4395_v10  ;;  %vm5562_vm13 = vcmp.eq.s32.totalorder %v6073_v47, %v1849_v20 }
 0x4a8   : > { %v1890_v43 = vadd.f32 1e-08, %v1858_v4  ;;  %v1725_v25 = vpop.xlane.xlu0 %1724  ;;  %2418 = vmatprep.mubr.bf16.mxu1 %v2263_v7  ;;  %v2175_v51 = vsel %vm2143_vm4, %v3127_v41, 0.0  ;;  %v2174_v37 = vsel %vm5533_vm11, %v3127_v41, 0.0  ;;  %v5542_v11 = vadd.f32 %v3127_v41, %v1512_v16 }
 0x4a9   : > { %v1859_v53 = vand.u32 4294967040, %v5538_v60  ;;  %v1726_v30 = vcvt.f32.s32 %v1725_v25  ;;  %2419 = vmatmul.mubr.bf16.gmra.mrb[4].mxu1 %v2262_v50  ;;  %v2207_v5 = vadd.f32 %v2175_v51, %v5127_v29  ;;  %v2206_v33 = vadd.f32 %v2174_v37, %v5152_v39  ;;  %v6407_v51 = vld [vmem:[#allocation35_spill] sm:$0xff] }
 0x4aa   : > { %3130 = vrcp.f32 %v1890_v43  ;;  %v1775_v39 = vcvt.f32.s32 %v5442_v52  ;;  %vm2145_vm2 = vcmp.eq.s32.totalorder %v6070_v19, %v1849_v20  ;;  %v1807_v10 = vcvt.f32.s32 %v5453_v2 }
 0x4ab   : > { %v1891_v58 = vadd.f32 1e-08, %v1859_v53  ;;  %v5550_v55 = vadd.s32 %v1728_v34, %v1726_v30  ;;  %vm2130_vm15 = vcmp.eq.s32.totalorder %v6073_v47, %v1842_v13  ;;  %vm5579_vm5 = vcmp.eq.s32.totalorder %v6070_v19, %v1842_v13  ;;  %v6414_v13 = vld [vmem:[#allocation42_spill] sm:$0xff] }
 0x4ac   : > { %v1741_v27 = vpop.xlane.xlu1 %1740  ;;  %v1843_v16 = vand.u32 255, %v5538_v60  ;;  %v1776_v60 = vshll.u32 %v1775_v39, 16  ;;  %v1792_v8 = vshll.u32 %v1791_v22, 16 }
 0x4ad   : > { %3132 = vrcp.f32 %v1891_v58  ;;  %v1866_v12 = vand.u32 4294967040, %v5550_v55  ;;  %v1742_v21 = vcvt.f32.s32 %v1741_v27  ;;  %v1850_v2 = vand.u32 255, %v5550_v55 }
 0x4ae   : > { %v1823_v55 = vcvt.f32.s32 %v5457_v59  ;;  %v1839_v27 = vcvt.f32.s32 %v5461_v44  ;;  %vm2132_vm14 = vcmp.eq.s32.totalorder %v6073_v47, %v1843_v16  ;;  %vm2133_vm0 = vcmp.eq.s32.totalorder %v6070_v19, %v1843_v16 }
 0x4af   : > { %v3129_v29 = vpop.eup %3128  ;;  %v1898_v14 = vadd.f32 1e-08, %v1866_v12  ;;  %v5567_v28 = vadd.s32 %v1744_v31, %v1742_v21  ;;  %vm5600_vm1 = vcmp.eq.s32.totalorder %v6073_v47, %v1850_v2  ;;  %v6411_v21 = vld [vmem:[#allocation72_spill] sm:$0xff]  ;;  %vm5608_vm12 = vcmp.eq.s32.totalorder %v6070_v19, %v1850_v2 }
 0x4b0   : > { %v2177_v63 = vsel %vm2145_vm2, %v3129_v29, 0.0  ;;  %v2176_v52 = vsel %vm5562_vm13, %v3129_v29, 0.0  ;;  %v5572_v1 = vadd.f32 %v3129_v29, %v1513_v45 }
 0x4b1   : > { %3134 = vrcp.f32 %v1898_v14  ;;  %v1867_v0 = vand.u32 4294967040, %v5567_v28  ;;  %v1757_v48 = vpop.xlane.xlu0 %1756  ;;  %v2209_v4 = vadd.f32 %v2177_v63, %v5139_v23  ;;  %v2208_v7 = vadd.f32 %v2176_v52, %v5158_v26  ;;  %v6408_v26 = vld [vmem:[#allocation39_spill] sm:$0xff] }
 0x4b2   : > { %v1758_v32 = vcvt.f32.s32 %v1757_v48  ;;  %v1851_v52 = vand.u32 255, %v5567_v28 }
 0x4b3   : > { %v1899_v41 = vadd.f32 1e-08, %v1867_v0  ;;  %v2265_v3 = vpack.c.bf16 %v2209_v4, %v2207_v5  ;;  %v2264_v23 = vpack.c.bf16 %v2208_v7, %v2206_v33  ;;  %v1808_v33 = vshll.u32 %v1807_v10, 16 }
 0x4b4   : > { %v3131_v50 = vpop.eup %3130  ;;  %v5586_v34 = vadd.s32 %v1760_v9, %v1758_v32  ;;  %v1773_v36 = vpop.xlane.xlu1 %1772  ;;  %vm5628_vm3 = vcmp.eq.s32.totalorder %v6073_v47, %v1851_v52  ;;  %vm2149_vm6 = vcmp.eq.s32.totalorder %v6070_v19, %v1851_v52 }
 0x4b5   : > { %v2162_v43 = vsel %vm2130_vm15, %v3131_v50, 0.0  ;;  %v2163_v25 = vsel %vm5579_vm5, %v3131_v50, 0.0  ;;  %3136 = vrcp.f32 %v1899_v41  ;;  %2426 = vmatprep.mubr.bf16.mxu1 %v2265_v3  ;;  %v5592_v30 = vadd.f32 %v3131_v50, %v1506_v61  ;;  %v6417_v61 = vld [vmem:[#allocation32_spill] sm:$0xff] }
 0x4b6   : > { %v2194_v37 = vadd.f32 %v2162_v43, %v6407_v51  ;;  %v2195_v53 = vadd.f32 %v2163_v25, %v6408_v26  ;;  %v1868_v5 = vand.u32 4294967040, %v5586_v34  ;;  %v1774_v20 = vcvt.f32.s32 %v1773_v36  ;;  %2427 = vmatmul.mubr.bf16.gmra.mrb[8].mxu1 %v2264_v23  ;;  %v1789_v45 = vpop.xlane.xlu0 %1788  ;;  %v6429_v25 = vld [vmem:[#allocation49_spill] sm:$0xff] }
 0x4b7   : > { %v3133_v58 = vpop.eup %3132  ;;  %v1790_v39 = vcvt.f32.s32 %v1789_v45  ;;  %v1824_v50 = vshll.u32 %v1823_v55, 16  ;;  %v1840_v23 = vshll.u32 %v1839_v27, 16 }
 0x4b8   : > { %v2164_v31 = vsel %vm2132_vm14, %v3133_v58, 0.0  ;;  %v1900_v12 = vadd.f32 1e-08, %v1868_v5  ;;  %v5605_v9 = vadd.s32 %v1776_v60, %v1774_v20  ;;  %v2165_v59 = vsel %vm2133_vm0, %v3133_v58, 0.0 }
 0x4b9   : > { %v2196_v29 = vadd.f32 %v2164_v31, %v6411_v21  ;;  %v2197_v18 = vadd.f32 %v2165_v59, %v6414_v13  ;;  %v5613_v14 = vadd.f32 %v3133_v58, %v1507_v49  ;;  %v5617_v0 = vadd.s32 %v1792_v8, %v1790_v39 }
 0x4ba   : > { %3138 = vrcp.f32 %v1900_v12  ;;  %v1869_v10 = vand.u32 4294967040, %v5605_v9  ;;  %v1805_v48 = vpop.xlane.xlu1 %1804  ;;  %v1514_v58 = vadd.f32 %v5009_v35, %v6299_v62  ;;  %v1515_v12 = vadd.f32 %v6417_v61, %v6303_v15  ;;  %v6418_v62 = vld [vmem:[#allocation33_spill] sm:$0xff]  ;;  %v6423_v15 = vld [vmem:[#allocation44_spill] sm:$0xff] }
 0x4bb   : > { %v3135_v22 = vpop.eup %3134  ;;  %v2258_v63 = vpack.c.bf16 %v2196_v29, %v2194_v37  ;;  %v1806_v4 = vcvt.f32.s32 %v1805_v48  ;;  %v2259_v46 = vpack.c.bf16 %v2197_v18, %v2195_v53  ;;  %v1870_v2 = vand.u32 4294967040, %v5617_v0  ;;  %v6419_v29 = vld [vmem:[#allocation45_spill] sm:$0xff] }
 0x4bc   : > { %v2179_v32 = vsel %vm5608_vm12, %v3135_v22, 0.0  ;;  %v2178_v7 = vsel %vm5600_vm1, %v3135_v22, 0.0  ;;  %v1901_v49 = vadd.f32 1e-08, %v1869_v10  ;;  %v5648_v31 = vadd.f32 %v3135_v22, %v1514_v58  ;;  %v6424_v48 = vld [vmem:[#allocation37_spill] sm:$0xff] }
 0x4bd   : > { %v1821_v16 = vpop.xlane.xlu0 %1820  ;;  %v5624_v41 = vadd.s32 %v1808_v33, %v1806_v4  ;;  %2402 = vmatprep.mubr.bf16.mxu0 %v2259_v46  ;;  %v2211_v3 = vadd.f32 %v2179_v32, %v5198_v42  ;;  %v2210_v37 = vadd.f32 %v2178_v7, %v5215_v54  ;;  %v1902_v36 = vadd.f32 1e-08, %v1870_v2  ;;  %v6426_v2 = vld [vmem:[#allocation48_spill] sm:$0xff]  ;;  %v6433_v58 = vld [vmem:[#allocation41_spill] sm:$0xff] }
 0x4be   : > { %v1822_v28 = vcvt.f32.s32 %v1821_v16  ;;  %3140 = vrcp.f32 %v1901_v49  ;;  %2403 = vmatmul.mubr.bf16.vlgmr.msra.gmra.mrb[32].mxu0 %v2258_v63  ;;  %v1852_v42 = vand.u32 255, %v5586_v34  ;;  %v1853_v54 = vand.u32 255, %v5605_v9  ;;  %v6420_v9 = vld [vmem:[#allocation34_spill] sm:$0xff]  ;;  %v6425_v49 = vld [vmem:[#allocation47_spill] sm:$0xff] }
 0x4bf   : > { %v3137_v43 = vpop.eup %3136  ;;  %v1837_v51 = vpop.xlane.xlu1 %1836  ;;  %v1871_v26 = vand.u32 4294967040, %v5624_v41  ;;  %3142 = vrcp.f32 %v1902_v36  ;;  %v1516_v21 = vadd.f32 %v6418_v62, %v4484_v56  ;;  %v1517_v39 = vadd.f32 %v6420_v9, %v6419_v29  ;;  %v6435_v62 = vld [vmem:[#allocation50_spill] sm:$0xff]  ;;  %v6436_v29 = vld [vmem:[#allocation53_spill] sm:$0xff]  ;;  %v6450_v36 = vld [vmem:[#allocation68_spill] sm:$0xff] }
 0x4c0   : > { %v5635_v53 = vadd.s32 %v1824_v50, %v1822_v28  ;;  %v1838_v60 = vcvt.f32.s32 %v1837_v51  ;;  %v2181_v8 = vsel %vm2149_vm6, %v3137_v43, 0.0  ;;  %v2180_v5 = vsel %vm5628_vm3, %v3137_v43, 0.0  ;;  %v6427_v28 = vld [vmem:[#allocation46_spill] sm:$0xff] }
 0x4c1   : > { %v1903_v20 = vadd.f32 1e-08, %v1871_v26  ;;  %v2213_v27 = vadd.f32 %v2181_v8, %v5204_v40  ;;  %v2212_v34 = vadd.f32 %v2180_v5, %v5234_v6  ;;  %vm2151_vm7 = vcmp.eq.s32.totalorder %v6070_v19, %v1852_v42  ;;  %v6430_v51 = vld [vmem:[#allocation38_spill] sm:$0xff] }
 0x4c2   : > { %v1872_v33 = vand.u32 4294967040, %v5635_v53  ;;  %v5644_v55 = vadd.s32 %v1840_v23, %v1838_v60  ;;  %vm2150_vm8 = vcmp.eq.s32.totalorder %v6073_v47, %v1852_v42  ;;  %vm5660_vm9 = vcmp.eq.s32.totalorder %v6073_v47, %v1853_v54 }
 0x4c3   : > { %3144 = vrcp.f32 %v1903_v20  ;;  %v2267_v59 = vpack.c.bf16 %v2213_v27, %v2211_v3  ;;  %v2266_v44 = vpack.c.bf16 %v2212_v34, %v2210_v37  ;;  %v1854_v56 = vand.u32 255, %v5617_v0  ;;  %v6428_v3 = vld [vmem:[#allocation36_spill] sm:$0xff] }
 0x4c4   : > { %v3139_v45 = vpop.eup %3138  ;;  %v1904_v35 = vadd.f32 1e-08, %v1872_v33  ;;  %v1873_v40 = vand.u32 4294967040, %v5644_v55  ;;  %v1855_v22 = vand.u32 255, %v5624_v41  ;;  %vm2153_vm10 = vcmp.eq.s32.totalorder %v6070_v19, %v1853_v54  ;;  %v6434_v33 = vld [vmem:[#allocation51_spill] sm:$0xff] }
 0x4c5   : > { %v2183_v13 = vsel %vm2151_vm7, %v3139_v45, 0.0  ;;  %2434 = vmatprep.mubr.bf16.mxu1 %v2267_v59  ;;  %v2182_v52 = vsel %vm2150_vm8, %v3139_v45, 0.0  ;;  %v5669_v46 = vadd.f32 %v3137_v43, %v1515_v12  ;;  %v5671_v32 = vadd.f32 %v3139_v45, %v1516_v21 }
 0x4c6   : > { %3146 = vrcp.f32 %v1904_v35  ;;  %v2215_v18 = vadd.f32 %v2183_v13, %v6423_v15  ;;  %v1905_v63 = vadd.f32 1e-08, %v1873_v40  ;;  %2435 = vmatmul.mubr.bf16.gmra.mrb[12].mxu1 %v2266_v44  ;;  %v2214_v4 = vadd.f32 %v2182_v52, %v6424_v48  ;;  %v6438_v40 = vld [vmem:[#allocation40_spill] sm:$0xff] }
 0x4c7   : > { %v1518_v23 = vadd.f32 %v6428_v3, %v6427_v28  ;;  %v1519_v43 = vadd.f32 %v6430_v51, %v6429_v25  ;;  %vm2154_vm11 = vcmp.eq.s32.totalorder %v6073_v47, %v1854_v56  ;;  %vm2155_vm4 = vcmp.eq.s32.totalorder %v6070_v19, %v1854_v56  ;;  %v6441_v56 = vld [vmem:[#allocation55_spill] sm:$0xff]  ;;  %v6446_v28 = vld [vmem:[#allocation60_spill] sm:$0xff] }
 0x4c8   : > { %v3141_v10 = vpop.eup %3140  ;;  %3148 = vrcp.f32 %v1905_v63  ;;  %vm5686_vm13 = vcmp.eq.s32.totalorder %v6073_v47, %v1855_v22  ;;  %vm2157_vm2 = vcmp.eq.s32.totalorder %v6070_v19, %v1855_v22  ;;  %v1856_v20 = vand.u32 255, %v5635_v53  ;;  %v6442_v22 = vld [vmem:[#allocation43_spill] sm:$0xff] }
 0x4c9   : > { %v2185_v7 = vsel %vm2153_vm10, %v3141_v10, 0.0  ;;  %v2184_v0 = vsel %vm5660_vm9, %v3141_v10, 0.0  ;;  %v5675_v50 = vadd.f32 %v3141_v10, %v1517_v39  ;;  %v3143_v37 = vpop.eup %3142  ;;  %v1857_v35 = vand.u32 255, %v5644_v55  ;;  %v6437_v39 = vld [vmem:[#allocation52_spill] sm:$0xff] }
 0x4ca   : > { %v2217_v16 = vadd.f32 %v2185_v7, %v6425_v49  ;;  %v2216_v41 = vadd.f32 %v2184_v0, %v6426_v2  ;;  %v2187_v60 = vsel %vm2155_vm4, %v3143_v37, 0.0  ;;  %v2186_v8 = vsel %vm2154_vm11, %v3143_v37, 0.0  ;;  %v6443_v7 = vld [vmem:[#allocation54_spill] sm:$0xff]  ;;  %v6444_v49 = vld [vmem:[#allocation57_spill] sm:$0xff] }
 0x4cb   : > { %v2219_v54 = vadd.f32 %v2187_v60, %v6433_v58  ;;  %v2218_v27 = vadd.f32 %v2186_v8, %v6434_v33  ;;  %v5694_v45 = vadd.f32 %v3143_v37, %v1518_v23  ;;  %v1520_v59 = vadd.f32 %v6438_v40, %v6437_v39  ;;  %v6445_v2 = vld [vmem:[#allocation58_spill] sm:$0xff]  ;;  %v6449_v37 = vld [vmem:[#allocation8_spill] sm:$0xff] }
 0x4cc   : > { %v2269_v26 = vpack.c.bf16 %v2217_v16, %v2215_v18  ;;  %v2268_v42 = vpack.c.bf16 %v2216_v41, %v2214_v4  ;;  %vm5706_vm15 = vcmp.eq.s32.totalorder %v6073_v47, %v1856_v20  ;;  %vm2159_vm5 = vcmp.eq.s32.totalorder %v6070_v19, %v1856_v20 }
 0x4cd   : > { %v3145_v5 = vpop.eup %3144  ;;  %v1521_v63 = vadd.f32 %v6442_v22, %v6441_v56  ;;  %vm2160_vm14 = vcmp.eq.s32.totalorder %v6073_v47, %v1857_v35  ;;  %vm2161_vm0 = vcmp.eq.s32.totalorder %v6070_v19, %v1857_v35  ;;  %v6447_v19 = vld [vmem:[#allocation9_spill] sm:$0xff]  ;;  %v2472_v20 = vadd.f32 1e-08, %v5527_v57 }
 0x4ce   : > { %2442 = vmatprep.mubr.bf16.mxu1 %v2269_v26  ;;  %v2189_v34 = vsel %vm2157_vm2, %v3145_v5, 0.0  ;;  %v2188_v61 = vsel %vm5686_vm13, %v3145_v5, 0.0  ;;  %v5698_v12 = vadd.f32 %v3145_v5, %v1519_v43  ;;  %v6448_v47 = vld [vmem:[#allocation65_spill] sm:$0xff]  ;;  %v1509_v26 = vadd.f32 %v6450_v36, %v6449_v37 }
 0x4cf   : > { %v2221_v21 = vadd.f32 %v2189_v34, %v6435_v62  ;;  %v2220_v9 = vadd.f32 %v2188_v61, %v6436_v29  ;;  %2443 = vmatmul.mubr.bf16.gmra.mrb[16].mxu1 %v2268_v42  ;;  %v1508_v51 = vadd.f32 %v6448_v47, %v6447_v19  ;;  %v2471_v5 = vadd.f32 1e-08, %v5512_v17 }
 0x4d0   : > { %v3147_v53 = vpop.eup %3146  ;;  %v1925_v42 = vadd.f32 %v5491_v38, %v1509_v26  ;;  %v2467_v56 = vadd.f32 1e-08, %v5592_v30  ;;  %v2477_v36 = vadd.f32 1e-08, %v5671_v32 }
 0x4d1   : > { %v2271_v13 = vpack.c.bf16 %v2221_v21, %v2219_v54  ;;  %v2270_v6 = vpack.c.bf16 %v2220_v9, %v2218_v27  ;;  %v2190_v55 = vsel %vm5706_vm15, %v3147_v53, 0.0  ;;  %v2191_v15 = vsel %vm2159_vm5, %v3147_v53, 0.0 }
 0x4d2   : > { %v5713_v18 = vadd.f32 %v3147_v53, %v1520_v59  ;;  %v3149_v52 = vpop.eup %3148  ;;  %v2223_v0 = vadd.f32 %v2191_v15, %v6443_v7  ;;  %v2222_v41 = vadd.f32 %v2190_v55, %v6445_v2  ;;  %v1924_v43 = vadd.f32 %v5482_v24, %v1508_v51 }
 0x4d3   : > { %2450 = vmatprep.mubr.bf16.mxu1 %v2271_v13  ;;  %v2192_v10 = vsel %vm2160_vm14, %v3149_v52, 0.0  ;;  %v2193_v48 = vsel %vm2161_vm0, %v3149_v52, 0.0  ;;  %v5719_v4 = vadd.f32 %v3149_v52, %v1521_v63  ;;  %v2470_v8 = vadd.f32 1e-08, %v1925_v42 }
 0x4d4   : > { %v2225_v16 = vadd.f32 %v2193_v48, %v6444_v49  ;;  %v2224_v3 = vadd.f32 %v2192_v10, %v6446_v28  ;;  %v2469_v60 = vadd.f32 1e-08, %v1924_v43  ;;  %v2473_v53 = vadd.f32 1e-08, %v5542_v11 }
 0x4d5   : > { %v2474_v13 = vadd.f32 1e-08, %v5572_v1  ;;  %v2468_v11 = vadd.f32 1e-08, %v5613_v14 }
 0x4d6   : > { %v2273_v23 = vpack.c.bf16 %v2225_v16, %v2223_v0  ;;  %v2272_v25 = vpack.c.bf16 %v2224_v3, %v2222_v41  ;;  %3150 = vrcp.f32 %v2469_v60  ;;  %v2475_v41 = vadd.f32 1e-08, %v5648_v31 }
 0x4d7   : > { %2451 = vmatmul.mubr.bf16.gmra.mrb[20].mxu1 %v2270_v6  ;;  %3152 = vrcp.f32 %v2470_v8  ;;  %v2476_v3 = vadd.f32 1e-08, %v5669_v46  ;;  %v2478_v8 = vadd.f32 1e-08, %v5675_v50 }
 0x4d8   : > { %2458 = vmatprep.mubr.bf16.mxu1 %v2273_v23  ;;  %3154 = vrcp.f32 %v2471_v5 }
 0x4d9   : > { %3156 = vrcp.f32 %v2472_v20 }
 0x4da   : > { %3158 = vrcp.f32 %v2473_v53 }
 0x4db   : > { %3160 = vrcp.f32 %v2474_v13 }
 0x4dc   : > { %3162 = vrcp.f32 %v2467_v56 }
 0x4dd   : > { %3164 = vrcp.f32 %v2468_v11 }
 0x4de   : > { %3166 = vrcp.f32 %v2475_v41  ;;  %v2481_v41 = vadd.f32 1e-08, %v5713_v18 }
 0x4df   : > { %2459 = vmatmul.mubr.bf16.gmra.mrb[24].mxu1 %v2272_v25  ;;  %3168 = vrcp.f32 %v2476_v3 }
 0x4e0   : > { %v3151_v27 = vpop.eup %3150  ;;  %3170 = vrcp.f32 %v2477_v36 }
 0x4e1   : > { %v3153_v35 = vpop.eup %3152  ;;  %3172 = vrcp.f32 %v2478_v8 }
 0x4e2   : > { %v3155_v39 = vpop.eup %3154 }
 0x4e3   : > { %v3157_v6 = vpop.eup %3156 }
 0x4e4   : > { %v3159_v48 = vpop.eup %3158 }
 0x4e5   : > { %v3161_v49 = vpop.eup %3160 }
 0x4e6   : > { %v3163_v25 = vpop.eup %3162 }
 0x4e7   : > { %v3165_v43 = vpop.eup %3164 }
 0x573   : > { %v2932_v58 = vpop.f32.mrb[0].mxu1 }
 0x574   : > { %v2933_v54 = vpop.f32.mrb[1].mxu1 }
 0x575   : > { %v2934_v24 = vadd.f32 %v2933_v54, %v2932_v58  ;;  %v2935_v33 = vpop.f32.mrb[2].mxu1 }
 0x576   : > { %v2936_v34 = vpop.f32.mrb[3].mxu1 }
 0x577   : > { %v2501_v38 = vmul.f32 %v3151_v27, %v2934_v24  ;;  %v2937_v61 = vadd.f32 %v2936_v34, %v2935_v33 }
 0x579   : > { %v5737_v62 = vmul.f32 %v3153_v35, %v2937_v61  ;;  %v2619_v46 = vmul.f32 %v2501_v38, %v2501_v38  ;;  %v3167_v61 = vpop.eup %3166 }
 0x57b   : > { %v2871_v17 = vpack.c.bf16 %v5737_v62, %v2501_v38  ;;  %v2620_v24 = vmul.f32 %v5737_v62, %v5737_v62 }
 0x57c   : > { %v2938_v57 = vpop.f32.mrb[4].mxu1 }
 0x57d   : > { %v2939_v21 = vpop.f32.mrb[5].mxu1  ;;  %2903 = vst [vmem:[%s5740_s8 + $0x8] sm:$0xff] %v2871_v17  }
 0x57e   : > { %v2940_v29 = vadd.f32 %v2939_v21, %v2938_v57  ;;  %v2941_v9 = vpop.f32.mrb[6].mxu1 }
 0x57f   : > { %v2942_v40 = vpop.f32.mrb[7].mxu1 }
 0x580   : > { %v2503_v59 = vmul.f32 %v3155_v39, %v2940_v29  ;;  %v2943_v44 = vadd.f32 %v2942_v40, %v2941_v9  ;;  %v3169_v29 = vpop.eup %3168  ;;  %v2479_v9 = vadd.f32 1e-08, %v5694_v45 }
 0x582   : > { %v5745_v55 = vmul.f32 %v3157_v6, %v2943_v44  ;;  %v2621_v35 = vmul.f32 %v2503_v59, %v2503_v59  ;;  %v2480_v44 = vadd.f32 1e-08, %v5698_v12  ;;  %3174 = vrcp.f32 %v2479_v9 }
 0x584   : > { %v2876_v15 = vpack.c.bf16 %v5745_v55, %v2503_v59  ;;  %v2622_v53 = vmul.f32 %v5745_v55, %v5745_v55  ;;  %3176 = vrcp.f32 %v2480_v44 }
 0x585   : > { %3178 = vrcp.f32 %v2481_v41 }
 0x586   : > { %2904 = vst [vmem:[%s5740_s8 + $0x10] sm:$0xff] %v2876_v15  }
 0x589   : > { %v2944_v22 = vpop.f32.mrb[8].mxu1 }
 0x58a   : > { %v2945_v63 = vpop.f32.mrb[9].mxu1 }
 0x58b   : > { %v2946_v52 = vadd.f32 %v2945_v63, %v2944_v22  ;;  %v2947_v10 = vpop.f32.mrb[10].mxu1 }
 0x58c   : > { %v2948_v1 = vpop.f32.mrb[11].mxu1 }
 0x58d   : > { %v2505_v7 = vmul.f32 %v3159_v48, %v2946_v52  ;;  %v2949_v0 = vadd.f32 %v2948_v1, %v2947_v10  ;;  %v3171_v48 = vpop.eup %3170 }
 0x58f   : > { %v2506_v16 = vmul.f32 %v3161_v49, %v2949_v0  ;;  %v2623_v13 = vmul.f32 %v2505_v7, %v2505_v7 }
 0x591   : > { %v2881_v2 = vpack.c.bf16 %v2506_v16, %v2505_v7  ;;  %v2926_v28 = vpop.f32.mrb[32].mxu0  ;;  %v2624_v11 = vmul.f32 %v2506_v16, %v2506_v16 }
 0x592   : > { %v2927_v30 = vpop.f32.mrb[33].mxu0 }
 0x593   : > { %2905 = vst [vmem:[%s5740_s8 + $0x18] sm:$0xff] %v2881_v2   ;;  %v2928_v14 = vadd.f32 %v2927_v30, %v2926_v28  ;;  %v2929_v23 = vpop.f32.mrb[34].mxu0 }
 0x594   : > { %v2930_v19 = vpop.f32.mrb[35].mxu0 }
 0x595   : > { %v2499_v47 = vmul.f32 %v3163_v25, %v2928_v14  ;;  %v2931_v51 = vadd.f32 %v2930_v19, %v2929_v23  ;;  %v2482_v14 = vadd.f32 1e-08, %v5719_v4 }
 0x597   : > { %v2500_v37 = vmul.f32 %v3165_v43, %v2931_v51  ;;  %v2617_v26 = vmul.f32 %v2499_v47, %v2499_v47  ;;  %3180 = vrcp.f32 %v2482_v14 }
 0x599   : > { %v2866_v31 = vpack.c.bf16 %v2500_v37, %v2499_v47  ;;  %v2595_v42 = vadd.f32 %v2500_v37, %v2499_v47  ;;  %v2618_v60 = vmul.f32 %v2500_v37, %v2500_v37  ;;  %v2950_v58 = vpop.f32.mrb[12].mxu1 }
 0x59a   : > { %v2951_v54 = vpop.f32.mrb[13].mxu1 }
 0x59b   : > { %2867 = vst [vmem:[%s5740_s8] sm:$0xff] %v2866_v31   ;;  %v2596_v5 = vadd.f32 %v2595_v42, %v2501_v38  ;;  %v2633_v20 = vadd.f32 %v2618_v60, %v2617_v26  ;;  %v2952_v32 = vadd.f32 %v2951_v54, %v2950_v58  ;;  %v2953_v34 = vpop.f32.mrb[14].mxu1 }
 0x59c   : > { %v2954_v17 = vpop.f32.mrb[15].mxu1 }
 0x59d   : > { %v2597_v33 = vadd.f32 %v2596_v5, %v5737_v62  ;;  %v2634_v27 = vadd.f32 %v2633_v20, %v2619_v46  ;;  %v2507_v21 = vmul.f32 %v3167_v61, %v2952_v32  ;;  %v2955_v38 = vadd.f32 %v2954_v17, %v2953_v34 }
 0x59f   : > { %v2598_v50 = vadd.f32 %v2597_v33, %v2503_v59  ;;  %v2635_v57 = vadd.f32 %v2634_v27, %v2620_v24  ;;  %v2508_v40 = vmul.f32 %v3169_v29, %v2955_v38  ;;  %v2625_v1 = vmul.f32 %v2507_v21, %v2507_v21 }
 0x5a1   : > { %v2636_v39 = vadd.f32 %v2635_v57, %v2621_v35  ;;  %v2599_v62 = vadd.f32 %v2598_v50, %v5745_v55  ;;  %v2886_v59 = vpack.c.bf16 %v2508_v40, %v2507_v21  ;;  %v2626_v3 = vmul.f32 %v2508_v40, %v2508_v40 }
 0x5a2   : > { %v2956_v56 = vpop.f32.mrb[16].mxu1 }
 0x5a3   : > { %v2600_v6 = vadd.f32 %v2599_v62, %v2505_v7  ;;  %v2637_v15 = vadd.f32 %v2636_v39, %v2622_v53  ;;  %v2957_v22 = vpop.f32.mrb[17].mxu1  ;;  %2906 = vst [vmem:[%s5740_s8 + $0x20] sm:$0xff] %v2886_v59   ;;  %v3173_v7 = vpop.eup %3172 }
 0x5a4   : > { %v2958_v52 = vadd.f32 %v2957_v22, %v2956_v56  ;;  %v2959_v10 = vpop.f32.mrb[18].mxu1  ;;  %v3175_v18 = vpop.eup %3174 }
 0x5a5   : > { %v2601_v63 = vadd.f32 %v2600_v6, %v2506_v16  ;;  %v2638_v45 = vadd.f32 %v2637_v15, %v2623_v13  ;;  %v2960_v0 = vpop.f32.mrb[19].mxu1  ;;  %v3177_v5 = vpop.eup %3176 }
 0x5a6   : > { %v2509_v12 = vmul.f32 %v3171_v48, %v2958_v52  ;;  %v2961_v2 = vadd.f32 %v2960_v0, %v2959_v10  ;;  %v3179_v57 = vpop.eup %3178 }
 0x5a7   : > { %v2602_v55 = vadd.f32 %v2601_v63, %v2507_v21  ;;  %v2639_v49 = vadd.f32 %v2638_v45, %v2624_v11  ;;  %v3181_v9 = vpop.eup %3180 }
 0x5a8   : > { %v2510_v16 = vmul.f32 %v3173_v7, %v2961_v2  ;;  %v2627_v19 = vmul.f32 %v2509_v12, %v2509_v12 }
 0x5a9   : > { %v2640_v28 = vadd.f32 %v2639_v49, %v2625_v1  ;;  %v2603_v30 = vadd.f32 %v2602_v55, %v2508_v40 }
 0x5aa   : > { %v2891_v47 = vpack.c.bf16 %v2510_v16, %v2509_v12  ;;  %v2962_v51 = vpop.f32.mrb[20].mxu1  ;;  %v2628_v26 = vmul.f32 %v2510_v16, %v2510_v16 }
 0x5ab   : > { %v2641_v23 = vadd.f32 %v2640_v28, %v2626_v3  ;;  %v2604_v25 = vadd.f32 %v2603_v30, %v2509_v12  ;;  %v2963_v43 = vpop.f32.mrb[21].mxu1 }
 0x5ac   : > { %2907 = vst [vmem:[%s5740_s8 + $0x28] sm:$0xff] %v2891_v47   ;;  %v2964_v31 = vadd.f32 %v2963_v43, %v2962_v51  ;;  %v2965_v42 = vpop.f32.mrb[22].mxu1 }
 0x5ad   : > { %v2642_v37 = vadd.f32 %v2641_v23, %v2627_v19  ;;  %v2605_v36 = vadd.f32 %v2604_v25, %v2510_v16  ;;  %v2966_v60 = vpop.f32.mrb[23].mxu1 }
 0x5ae   : > { %v2511_v46 = vmul.f32 %v3175_v18, %v2964_v31  ;;  %v2967_v4 = vadd.f32 %v2966_v60, %v2965_v42 }
 0x5af   : > { %v2643_v8 = vadd.f32 %v2642_v37, %v2628_v26 }
 0x5b0   : > { %v2606_v20 = vadd.f32 %v2605_v36, %v2511_v46  ;;  %v2629_v58 = vmul.f32 %v2511_v46, %v2511_v46  ;;  %v2512_v54 = vmul.f32 %v3177_v5, %v2967_v4 }
 0x5b2   : > { %v2644_v24 = vadd.f32 %v2643_v8, %v2629_v58  ;;  %v2896_v33 = vpack.c.bf16 %v2512_v54, %v2511_v46  ;;  %v2607_v27 = vadd.f32 %v2606_v20, %v2512_v54  ;;  %v2630_v32 = vmul.f32 %v2512_v54, %v2512_v54  ;;  %v2968_v34 = vpop.f32.mrb[24].mxu1 }
 0x5b3   : > { %v2969_v61 = vpop.f32.mrb[25].mxu1 }
 0x5b4   : > { %2908 = vst [vmem:[%s5740_s8 + $0x30] sm:$0xff] %v2896_v33   ;;  %v2645_v35 = vadd.f32 %v2644_v24, %v2630_v32  ;;  %v2970_v17 = vadd.f32 %v2969_v61, %v2968_v34  ;;  %v2971_v50 = vpop.f32.mrb[26].mxu1 }
 0x5b5   : > { %v2972_v21 = vpop.f32.mrb[27].mxu1 }
 0x5b6   : > { %v2513_v38 = vmul.f32 %v3179_v57, %v2970_v17  ;;  %v2973_v29 = vadd.f32 %v2972_v21, %v2971_v50 }
 0x5b8   : > { %v2608_v53 = vadd.f32 %v2607_v27, %v2513_v38  ;;  %v2631_v39 = vmul.f32 %v2513_v38, %v2513_v38  ;;  %v2514_v62 = vmul.f32 %v3181_v9, %v2973_v29 }
 0x5ba   : > { %v2646_v40 = vadd.f32 %v2645_v35, %v2631_v39  ;;  %v2901_v44 = vpack.c.bf16 %v2514_v62, %v2513_v38  ;;  %v2609_v13 = vadd.f32 %v2608_v53, %v2514_v62  ;;  %v2632_v6 = vmul.f32 %v2514_v62, %v2514_v62 }
 0x5bc   : > { %2909 = vst [vmem:[%s5740_s8 + $0x38] sm:$0xff] %v2901_v44   ;;  %v2610_v15 = vrot.slane %v2609_v13, 4  ;;  %v2647_v59 = vadd.f32 %v2646_v40, %v2632_v6 }
 0x5bd   : > { %3195 = shalt.err (!%p3192_p3)
}
 0x5be   : > { %s3196_s28 = scalar_lea.hbm %s5775_s13, 1024  ;;  %s3200_s5 = scalar_lea.hbm %s5855_s3, 2048 }
 0x5bf   : > { %p3197_p4 = scmp.ne.s32.totalorder %s5775_s13, %s3196_s28  ;;  %p3201_p9 = scmp.lt.u32.totalorder %s5775_s13, %s5855_s3 }
 0x5c0   : > { %p3202_p10 = scmp.lt.u32.totalorder %s3200_s5, %s3196_s28  ;;  %p3204_p12 = scmp.lt.u32.totalorder %s3196_s28, %s5775_s13 }
 0x5c1   : > { %p3198_p7 = pnand %p3197_p4, %p3346_p5 }
 0x5c2   : > { %p3203_p11 = por %p3202_p10, %p3201_p9 }
 0x5c3   : > { %p3199_p8 = pneg %p3198_p7 }
 0x5c4   : > { %p3205_p13 = por %p3204_p12, %p3203_p11 }
 0x5c6   : > { %p3206_p0 = pnand %p3205_p13, %p3199_p8 }
 0x5c8   : > { %3209 = shalt.err (!%p3206_p0)
}
 0x5c9   : > { %s3280_s9 = smov 64   ;;  %s3281_s11 = smov 4   ;;  %v2611_v56 = vadd.f32 %v2610_v15, %v2609_v13  ;;  %v2648_v22 = vrot.slane %v2647_v59, 4 }
 0x5ca   : > { %2990 = dma.vmem_to_hbm [thread:$0]  (%p3346_p5), %s5777_s10, 1024, %s5775_s13, %s2656_s14, %s3280_s9, %s3280_s9, %s3281_s11  }
 0x5cb   : > { %s2786_s12 = sshll.u32 %s5734_s6, 3  ;;  %v2612_v11 = vrot.slane %v2611_v56, 2  ;;  %v2649_v63 = vadd.f32 %v2648_v22, %v2647_v59  ;;  %s2843_s20 = sshll.u32 %s3329_s19, 7 }
 0x5cc   : > { %s202_s22 = scalar_lea.vmem [#allocation4], %s2786_s12  ;;  %s5809_s13 = scalar_lea.hbm %s5856_s4, %s2843_s20 }
 0x5cd   : > { %v2613_v45 = vadd.f32 %v2612_v11, %v2611_v56  ;;  %v2650_v52 = vrot.slane %v2649_v63, 2  ;;  %s2690_s23 = sshll.u32 %s202_s22, 4  ;;  %s2661_s14 = scalar_lea.sflag [#allocation5], %s5734_s6  ;;  %s5811_s23 = int_to_ptr.vmem [resolvable:$true] %s2690_s23 }
 0x5ce   : > { %s3210_s28 = scalar_lea.vmem %s5811_s23, 128  ;;  %s3282_s19 = smov [#allocation4]  }
 0x5cf   : > { %v2614_v10 = vrot.slane %v2613_v45, 1  ;;  %v2651_v48 = vadd.f32 %v2650_v52, %v2649_v63  ;;  %p3211_p1 = scmp.ne.s32.totalorder %s5811_s23, %s3210_s28  ;;  %s3214_s29 = sshll.u32 %s3282_s19, 4  ;;  %s3215_s29 = int_to_ptr.vmem [resolvable:$false] %s3214_s29 }
 0x5d0   : > { %s3216_s30 = scalar_lea.vmem %s3215_s29, 256  ;;  %p3217_p4 = scmp.lt.s32.totalorder %s5811_s23, %s3215_s29 }
 0x5d1   : > { %v2615_v1 = vadd.f32 %v2614_v10, %v2613_v45  ;;  %v2652_v0 = vrot.slane %v2651_v48, 1  ;;  %p3212_p2 = pnand %p3211_p1, %p3346_p5  ;;  %p3218_p7 = scmp.lt.s32.totalorder %s3216_s30, %s3210_s28 }
 0x5d3   : > { %2616 = vst [vmem:[%s202_s22] sm:$0x1] %v2615_v1  ;;  %v2653_v55 = vadd.f32 %v2652_v0, %v2651_v48  ;;  %p3213_p3 = pneg %p3212_p2  ;;  %p3219_p8 = por %p3218_p7, %p3217_p4 }
 0x5d5   : > { %2654 = vst [vmem:[%s202_s22 + $0x1] sm:$0x1] %v2653_v55  ;;  %p3220_p9 = pnand %p3219_p8, %p3213_p3 }
 0x5d7   : > { %3223 = shalt.err (!%p3220_p9)
}
 0x5d8   : > { %s3224_s6 = scalar_lea.hbm %s5809_s13, 128  ;;  %s3228_s8 = scalar_lea.hbm %s5856_s4, 256 }
 0x5d9   : > { %p3225_p10 = scmp.ne.s32.totalorder %s5809_s13, %s3224_s6  ;;  %p3229_p13 = scmp.lt.u32.totalorder %s5809_s13, %s5856_s4 }
 0x5da   : > { %p3230_p0 = scmp.lt.u32.totalorder %s3228_s8, %s3224_s6  ;;  %p3232_p2 = scmp.lt.u32.totalorder %s3224_s6, %s5809_s13 }
 0x5db   : > { %p3226_p11 = pnand %p3225_p10, %p3346_p5 }
 0x5dc   : > { %p3231_p1 = por %p3230_p0, %p3229_p13 }
 0x5dd   : > { %p3227_p12 = pneg %p3226_p11 }
 0x5de   : > { %p3233_p3 = por %p3232_p2, %p3231_p1 }
 0x5e0   : > { %p3234_p4 = pnand %p3233_p3, %p3227_p12 }
 0x5e2   : > { %3237 = shalt.err (!%p3234_p4)
}
 0x5e3   : > { %2991 = dma.vmem_to_hbm [thread:$0]  (%p3346_p5), %s5811_s23, 128, %s5809_s13, %s2661_s14  }
 0x5e4 PF: > { %p3001_p7 = scmp.ge.s32.totalorder %s3276_s18, 2  ;;  %s2702_s12 = sand.u32 1, %s3264_s15  }
 0x5e5   : > { %s2703_s20 = scalar_lea.sflag [#allocation3], %s2702_s12 }
 0x5e6   : > { %p2995_p8 = pnand %p3001_p7, %p3350_p6 }
 0x5e8   : > { %3255 = dma.done.wait (!%p2995_p8), %s2703_s20, 1024  }
 0x5e9   : > { %3257 = vsyncadd (!%p2995_p8), %s2703_s20, 4294966272  ;;  %s2712_s22 = scalar_lea.sflag [#allocation5], %s2702_s12 }
 0x5ea   : > { %3259 = dma.done.wait (!%p2995_p8), %s2712_s22, 128  }
 0x5eb   : > { %3261 = vsyncadd (!%p2995_p8), %s2712_s22, 4294967168  ;;  %p18_p5 = scmp.ge.s32.totalorder %s3333_s21, 4   ;;  %s6451_s15 = smov %s3268_s16 }
 0x5ec   : > { %s6452_s16 = smov %s3272_s17  ;;  %s6453_s17 = smov %s3344_s24 }
 0x5ed   : > { %s6454_s18 = smov %s3333_s21  ;;  %20 = sbr.rel (!%p18_p5) target bundleno = 5 (0x5), region = 84 }
 0x5f4   :  { %2717 = vsyncpa [#allocation3], 1 }
 0x5f5   :  { %2719 = vsyncpa [#allocation3 + $0x1], 1 }
 0x5f6   :  { %2720 = vsyncpa [#allocation5], 1 }
 0x5f7   :  { %2722 = vsyncpa [#allocation5 + $0x1], 1 }

</bundles_post_ra>
